<compile_context>
chip_gen: v7x
topology: tpu7x:2x2x1
jax: 0.10.0
libtpu: 0.0.40
codegen_flags: <defaults>
</compile_context>

<pallas_src>
import functools

import jax
import jax.numpy as jnp
from jax.experimental import pallas as pl
from jax.experimental.pallas import tpu as pltpu

C8 = 8  # every channel dimension is zero-padded to 8 (one f32 sublane tile)


# ------------------------------------------------------------------
# Generic fused "conv as one matmul" Pallas kernel
# ------------------------------------------------------------------
def _make_conv_kernel(tap_offsets, l_out, activation, has_bn):
    """Build (T*8, l_out) patches in VMEM from the flat padded input, run ONE MXU
    matmul against the (M, T*8) weight, and apply the fused epilogue lane-dense."""
    n_taps = len(tap_offsets)

    def kernel(*refs):
        if has_bn:
            x_ref, w_ref, b_ref, scale_ref, shift_ref, o_ref, patch_ref = refs
        else:
            x_ref, w_ref, b_ref, o_ref, patch_ref = refs
            scale_ref = shift_ref = None

        # In-kernel im2col: T shifted windows of the lane-flattened padded input.
        # All slices are static; stores land at 8-aligned sublane rows.
        for t in range(n_taps):
            off = tap_offsets[t]
            patch_ref[t * C8:(t + 1) * C8, :] = x_ref[0, :, off:off + l_out]

        # Single MXU matmul: bf16 inputs, f32 accumulation.
        patches = patch_ref[...].astype(jnp.bfloat16)
        y = jnp.dot(w_ref[...], patches, preferred_element_type=jnp.float32)

        # Epilogue in f32 (v5e has no bf16 VPU/EUP). Every op broadcasts an
        # (M, 1) vector across the lane-dense (M, l_out) result.
        y = y + b_ref[...]
        if activation == "relu":
            y = jnp.maximum(y, 0.0)
        if has_bn:
            # Conv -> ReLU -> BatchNorm (the original nn.Sequential order).
            y = y * scale_ref[...] + shift_ref[...]
        if activation == "sigmoid":
            y = 1.0 / (1.0 + jnp.exp(-y))
        o_ref[0] = y

    return kernel


def _conv_matmul(xflat, w_mat, bias, scale, shift, tap_offsets, l_out,
                 activation, has_bn):
    """xflat: (N, 8, Lpad) f32 flat padded input; w_mat: (M, T*8) bf16.
    Returns (N, M, l_out) f32."""
    n, c8, lpad = xflat.shape
    m, tk = w_mat.shape
    n_taps = len(tap_offsets)

    kernel = _make_conv_kernel(tuple(tap_offsets), l_out, activation, has_bn)

    in_specs = [
        pl.BlockSpec((1, c8, lpad), lambda i: (i, 0, 0)),
        pl.BlockSpec((m, tk), lambda i: (0, 0)),
        pl.BlockSpec((m, 1), lambda i: (0, 0)),
    ]
    args = [xflat, w_mat, bias]
    if has_bn:
        in_specs += [pl.BlockSpec((m, 1), lambda i: (0, 0)),
                     pl.BlockSpec((m, 1), lambda i: (0, 0))]
        args += [scale, shift]

    return pl.pallas_call(
        kernel,
        out_shape=jax.ShapeDtypeStruct((n, m, l_out), jnp.float32),
        grid_spec=pltpu.PrefetchScalarGridSpec(
            num_scalar_prefetch=0,
            grid=(n,),  # batch only: one matmul per (layer, sample)
            in_specs=in_specs,
            out_specs=pl.BlockSpec((1, m, l_out), lambda i: (i, 0, 0)),
            scratch_shapes=[pltpu.VMEM((n_taps * c8, l_out), jnp.float32)],
        ),
        compiler_params=pltpu.CompilerParams(
            dimension_semantics=("parallel",)),  # batch=2 -> both v7x TCs busy
    )(*args)


# ------------------------------------------------------------------
# Layer wrappers (padding / packing glue is plain JAX on kilobyte tensors)
# ------------------------------------------------------------------
def _pad_vec(v, fill=0.0):
    out = jnp.full((C8,), fill, jnp.float32)
    return out.at[: v.shape[0]].set(v.astype(jnp.float32))


def _pack_conv_weight(w_oihw):
    """PyTorch (Cout, Cin, K, K) -> (8, K*K*8) bf16, column order tap-major, ci-minor."""
    cout, cin, k, _ = w_oihw.shape
    wpad = jnp.zeros((C8, C8, k, k), jnp.float32).at[:cout, :cin].set(w_oihw)
    wpad = jnp.transpose(wpad, (0, 2, 3, 1)).reshape(C8, k * k * C8)
    return wpad.astype(jnp.bfloat16)


def conv2d_same(x, w_oihw, b, *, activation=None, scale=None, shift=None):
    """Conv2d(stride=1, padding='same') with fused bias/ReLU/BN/sigmoid epilogue.
    x: (N, 8, H, W) channel-padded NCHW f32. Returns (N, 8, H, W)."""
    n, _, h, w = x.shape
    k = w_oihw.shape[2]
    p = k // 2
    hp, wp = h + 2 * p, w + 2 * p

    xflat = jnp.pad(x, ((0, 0), (0, 0), (p, p), (p, p))).reshape(n, C8, hp * wp)
    taps = tuple(kh * wp + kw for kh in range(k) for kw in range(k))
    l_out = (h - 1) * wp + w  # valid conv of the padded rows, flattened

    has_bn = scale is not None
    w_mat = _pack_conv_weight(w_oihw)
    bias = _pad_vec(b).reshape(C8, 1)
    scale_p = _pad_vec(scale, 1.0).reshape(C8, 1) if has_bn else None
    shift_p = _pad_vec(shift, 0.0).reshape(C8, 1) if has_bn else None

    y = _conv_matmul(xflat, w_mat, bias, scale_p, shift_p, taps, l_out,
                     activation, has_bn)
    # (N, 8, Lout) -> (N, 8, H, W): drop the per-row horizontal-padding columns.
    y = jnp.pad(y, ((0, 0), (0, 0), (0, wp - w)))
    return y.reshape(n, C8, h, wp)[:, :, :, :w]


def conv_transpose2d_s2(x, w_iohw, b):
    """ConvTranspose2d(k=3, stride=2, padding=1, output_padding=1) via a subpixel
    (parity-class) decomposition folded into one matmul.
    x: (N, 8, H, W); w: PyTorch (Cin, Cout, 3, 3). Returns (N, 8, 2H, 2W)."""
    n, _, h, w = x.shape
    cin, cout = w_iohw.shape[0], w_iohw.shape[1]
    wp = w + 1
    # Pad bottom/right by 1 so in[a+1, b+1] boundary reads are zeros.
    xflat = jnp.pad(x, ((0, 0), (0, 0), (0, 1), (0, 1))).reshape(n, C8, (h + 1) * wp)
    taps = (0, 1, wp, wp + 1)  # (di, dj) in {0,1}^2
    l_out = (h - 1) * wp + w

    # Channel-padded (Cout, Cin, 3, 3) kernel.
    wk = jnp.zeros((C8, C8, 3, 3), jnp.float32).at[:cout, :cin].set(
        jnp.transpose(w_iohw, (1, 0, 2, 3)))
    # Parity classes: out[2a+r, 2b+s] = sum over (di,dj) of wk[:,:,kh,kw] . in[a+di, b+dj]
    wb = jnp.zeros((2, 2, C8, 2, 2, C8), jnp.float32)  # [r, s, co, di, dj, ci]
    wb = wb.at[0, 0, :, 0, 0, :].set(wk[:, :, 1, 1])
    wb = wb.at[0, 1, :, 0, 1, :].set(wk[:, :, 1, 0])
    wb = wb.at[0, 1, :, 0, 0, :].set(wk[:, :, 1, 2])
    wb = wb.at[1, 0, :, 1, 0, :].set(wk[:, :, 0, 1])
    wb = wb.at[1, 0, :, 0, 0, :].set(wk[:, :, 2, 1])
    wb = wb.at[1, 1, :, 1, 1, :].set(wk[:, :, 0, 0])
    wb = wb.at[1, 1, :, 1, 0, :].set(wk[:, :, 0, 2])
    wb = wb.at[1, 1, :, 0, 1, :].set(wk[:, :, 2, 0])
    wb = wb.at[1, 1, :, 0, 0, :].set(wk[:, :, 2, 2])
    w_mat = wb.reshape(4 * C8, 4 * C8).astype(jnp.bfloat16)
    bias = jnp.tile(_pad_vec(b), 4).reshape(4 * C8, 1)

    y = _conv_matmul(xflat, w_mat, bias, None, None, taps, l_out, None, False)
    # (N, 32, Lout) -> interleave the 4 parity classes -> (N, 8, 2H, 2W).
    y = jnp.pad(y, ((0, 0), (0, 0), (0, wp - w)))
    y = y.reshape(n, 2, 2, C8, h, wp)[:, :, :, :, :, :w]  # (n, r, s, co, a, b)
    y = jnp.transpose(y, (0, 3, 4, 1, 5, 2))              # (n, co, a, r, b, s)
    return y.reshape(n, C8, 2 * h, 2 * w)


def maxpool2x2(x):
    """MaxPool2d(2, 2) as plain JAX reshape+max (fused by XLA)."""
    n, c, h, w = x.shape
    return x.reshape(n, c, h // 2, 2, w // 2, 2).max(axis=(3, 5))


# ------------------------------------------------------------------
# Parameters (deterministic synthetic init, PyTorch weight layouts)
# ------------------------------------------------------------------
def _conv_w(key, cout, cin, k):
    fan_in = cin * k * k
    bound = 1.0 / (fan_in ** 0.5)
    kw, kb = jax.random.split(key)
    w = jax.random.uniform(kw, (cout, cin, k, k), jnp.float32, -bound, bound)
    b = jax.random.uniform(kb, (cout,), jnp.float32, -bound, bound)
    return w, b


def _convt_w(key, cin, cout, k):
    fan_in = cout * k * k
    bound = 1.0 / (fan_in ** 0.5)
    kw, kb = jax.random.split(key)
    w = jax.random.uniform(kw, (cin, cout, k, k), jnp.float32, -bound, bound)
    b = jax.random.uniform(kb, (cout,), jnp.float32, -bound, bound)
    return w, b


def _bn_params(ch):
    return {
        "gamma": jnp.ones((ch,), jnp.float32),
        "beta": jnp.zeros((ch,), jnp.float32),
        "mean": jnp.zeros((ch,), jnp.float32),
        "var": jnp.ones((ch,), jnp.float32),
    }


def _bn_scale_shift(bn, eps=1e-5):
    scale = bn["gamma"] / jnp.sqrt(bn["var"] + eps)
    shift = bn["beta"] - bn["mean"] * scale
    return scale, shift


def init_params(channels, n_layer, seed=0):
    key = jax.random.PRNGKey(seed)
    counter = [0]

    def nk():
        counter[0] += 1
        return jax.random.fold_in(key, counter[0])

    params = {}
    # Encoder
    params["enc_in_conv"] = _conv_w(nk(), channels[0], 1, 7)
    params["enc_in_bn"] = _bn_params(channels[0])
    enc_down = []
    in_ch = channels[0]
    for i in range(n_layer):
        out_ch = channels[i]
        enc_down.append({"conv": _conv_w(nk(), out_ch, in_ch, 3),
                         "bn": _bn_params(out_ch)})
        in_ch = out_ch
    params["enc_down"] = enc_down

    # Decoder (AudioDecoder reverses the channel list)
    rch = list(reversed(channels))
    dec_up = []
    in_ch = rch[0]
    for i in range(n_layer):
        out_ch = rch[i]
        dec_up.append({"conv": _conv_w(nk(), out_ch, in_ch, 3),
                       "convT": _convt_w(nk(), out_ch, out_ch, 3)})
        in_ch = out_ch
    params["dec_up"] = dec_up
    params["dec_out_conv"] = _conv_w(nk(), 1, rch[-1], 1)
    return params


# ------------------------------------------------------------------
# Forward pass (matches AudioAE.forward)
# ------------------------------------------------------------------
def audio_ae_forward(params, x_nchw):
    n, c, h, w = x_nchw.shape
    # Channel-pad to 8 once; everything stays channel-first (NCHW-like) and 8-padded.
    x = jnp.zeros((n, C8, h, w), jnp.float32).at[:, :c].set(
        x_nchw.astype(jnp.float32))

    # --- Encoder ---
    wgt, b = params["enc_in_conv"]
    s, sh = _bn_scale_shift(params["enc_in_bn"])
    x = conv2d_same(x, wgt, b, activation="relu", scale=s, shift=sh)
    for blk in params["enc_down"]:
        wgt, b = blk["conv"]
        s, sh = _bn_scale_shift(blk["bn"])
        x = conv2d_same(x, wgt, b, activation="relu", scale=s, shift=sh)
        x = maxpool2x2(x)

    # --- Decoder ---
    for blk in params["dec_up"]:
        wgt, b = blk["conv"]
        x = conv2d_same(x, wgt, b, activation="relu")
        wt, bt = blk["convT"]
        x = conv_transpose2d_s2(x, wt, bt)
    wgt, b = params["dec_out_conv"]
    x = conv2d_same(x, wgt, b, activation="sigmoid")

    return x[:, :1, :, :]  # un-pad channels: final Cout = 1


# ------------------------------------------------------------------
if __name__ == "__main__":
    # Small, consistent shapes: input_shape=(1, 16, 16), n_layer=2, channels=[4, 8]
    input_shape = (1, 16, 16)
    n_layer = 2
    channels = [4, 8]
    batch = 2

    params = init_params(channels, n_layer, seed=0)
    x = jax.random.uniform(
        jax.random.PRNGKey(0),
        (batch, 1, input_shape[1], input_shape[2]),
        jnp.float32,
    )

    fwd = jax.jit(functools.partial(audio_ae_forward, params))
    out = jax.block_until_ready(fwd(x))

    assert out.shape == (batch, 1, input_shape[1], input_shape[2]), out.shape
    assert bool(jnp.all(jnp.isfinite(out)))
    assert bool(jnp.all((out >= 0.0) & (out <= 1.0)))  # sigmoid output
    print("KERNEL_OK")
</pallas_src>

<mosaic_0001>
module attributes {stable_mosaic.version = 11 : i64} {
  func.func @kernel(%arg0: i32, %arg1: memref<1x8x324xf32, #tpu.memory_space<vmem>>, %arg2: memref<8x72xbf16, #tpu.memory_space<vmem>>, %arg3: memref<8x1xf32, #tpu.memory_space<vmem>>, %arg4: memref<8x1xf32, #tpu.memory_space<vmem>>, %arg5: memref<8x1xf32, #tpu.memory_space<vmem>>, %arg6: memref<1x8x286xf32, #tpu.memory_space<vmem>>, %arg7: memref<72x286xf32, #tpu.memory_space<vmem>>) attributes {dimension_semantics = [#tpu.dimension_semantics<parallel>], iteration_bounds = array<i64: 2>, scalar_prefetch = 0 : i64, scratch_operands = 1 : i64, tpu.core_type = #tpu.core_type<tc>, window_params = [{transform_indices = @transform_0, window_bounds = array<i64: 1, 8, 324>}, {pipeline_mode = #tpu.pipeline_mode<synchronous>, transform_indices = @transform_1, window_bounds = array<i64: 8, 72>}, {pipeline_mode = #tpu.pipeline_mode<synchronous>, transform_indices = @transform_2, window_bounds = array<i64: 8, 1>}, {pipeline_mode = #tpu.pipeline_mode<synchronous>, transform_indices = @transform_3, window_bounds = array<i64: 8, 1>}, {pipeline_mode = #tpu.pipeline_mode<synchronous>, transform_indices = @transform_4, window_bounds = array<i64: 8, 1>}, {transform_indices = @transform_5, window_bounds = array<i64: 1, 8, 286>}]} {
    %c0 = arith.constant 0 : index
    %c0_0 = arith.constant 0 : index
    %c0_1 = arith.constant 0 : index
    %0 = vector.load %arg1[%c0, %c0_0, %c0_1] : memref<1x8x324xf32, #tpu.memory_space<vmem>>, vector<1x8x286xf32>
    %1 = vector.shape_cast %0 : vector<1x8x286xf32> to vector<8x286xf32>
    %c0_2 = arith.constant 0 : index
    %c0_3 = arith.constant 0 : index
    %2 = vector.load %arg7[%c0_2, %c0_3] : memref<72x286xf32, #tpu.memory_space<vmem>>, vector<8x286xf32>
    tpu.vector_store %arg7[%c0_2, %c0_3], %1 {strides = array<i32>} : memref<72x286xf32, #tpu.memory_space<vmem>>, vector<8x286xf32>,
    %c0_4 = arith.constant 0 : index
    %c0_5 = arith.constant 0 : index
    %c1 = arith.constant 1 : index
    %3 = vector.load %arg1[%c0_4, %c0_5, %c1] : memref<1x8x324xf32, #tpu.memory_space<vmem>>, vector<1x8x286xf32>
    %4 = vector.shape_cast %3 : vector<1x8x286xf32> to vector<8x286xf32>
    %c8 = arith.constant 8 : index
    %c0_6 = arith.constant 0 : index
    %5 = vector.load %arg7[%c8, %c0_6] : memref<72x286xf32, #tpu.memory_space<vmem>>, vector<8x286xf32>
    tpu.vector_store %arg7[%c8, %c0_6], %4 {strides = array<i32>} : memref<72x286xf32, #tpu.memory_space<vmem>>, vector<8x286xf32>,
    %c0_7 = arith.constant 0 : index
    %c0_8 = arith.constant 0 : index
    %c2 = arith.constant 2 : index
    %6 = vector.load %arg1[%c0_7, %c0_8, %c2] : memref<1x8x324xf32, #tpu.memory_space<vmem>>, vector<1x8x286xf32>
    %7 = vector.shape_cast %6 : vector<1x8x286xf32> to vector<8x286xf32>
    %c16 = arith.constant 16 : index
    %c0_9 = arith.constant 0 : index
    %8 = vector.load %arg7[%c16, %c0_9] : memref<72x286xf32, #tpu.memory_space<vmem>>, vector<8x286xf32>
    tpu.vector_store %arg7[%c16, %c0_9], %7 {strides = array<i32>} : memref<72x286xf32, #tpu.memory_space<vmem>>, vector<8x286xf32>,
    %c0_10 = arith.constant 0 : index
    %c0_11 = arith.constant 0 : index
    %c18 = arith.constant 18 : index
    %9 = vector.load %arg1[%c0_10, %c0_11, %c18] : memref<1x8x324xf32, #tpu.memory_space<vmem>>, vector<1x8x286xf32>
    %10 = vector.shape_cast %9 : vector<1x8x286xf32> to vector<8x286xf32>
    %c24 = arith.constant 24 : index
    %c0_12 = arith.constant 0 : index
    %11 = vector.load %arg7[%c24, %c0_12] : memref<72x286xf32, #tpu.memory_space<vmem>>, vector<8x286xf32>
    tpu.vector_store %arg7[%c24, %c0_12], %10 {strides = array<i32>} : memref<72x286xf32, #tpu.memory_space<vmem>>, vector<8x286xf32>,
    %c0_13 = arith.constant 0 : index
    %c0_14 = arith.constant 0 : index
    %c19 = arith.constant 19 : index
    %12 = vector.load %arg1[%c0_13, %c0_14, %c19] : memref<1x8x324xf32, #tpu.memory_space<vmem>>, vector<1x8x286xf32>
    %13 = vector.shape_cast %12 : vector<1x8x286xf32> to vector<8x286xf32>
    %c32 = arith.constant 32 : index
    %c0_15 = arith.constant 0 : index
    %14 = vector.load %arg7[%c32, %c0_15] : memref<72x286xf32, #tpu.memory_space<vmem>>, vector<8x286xf32>
    tpu.vector_store %arg7[%c32, %c0_15], %13 {strides = array<i32>} : memref<72x286xf32, #tpu.memory_space<vmem>>, vector<8x286xf32>,
    %c0_16 = arith.constant 0 : index
    %c0_17 = arith.constant 0 : index
    %c20 = arith.constant 20 : index
    %15 = vector.load %arg1[%c0_16, %c0_17, %c20] : memref<1x8x324xf32, #tpu.memory_space<vmem>>, vector<1x8x286xf32>
    %16 = vector.shape_cast %15 : vector<1x8x286xf32> to vector<8x286xf32>
    %c40 = arith.constant 40 : index
    %c0_18 = arith.constant 0 : index
    %17 = vector.load %arg7[%c40, %c0_18] : memref<72x286xf32, #tpu.memory_space<vmem>>, vector<8x286xf32>
    tpu.vector_store %arg7[%c40, %c0_18], %16 {strides = array<i32>} : memref<72x286xf32, #tpu.memory_space<vmem>>, vector<8x286xf32>,
    %c0_19 = arith.constant 0 : index
    %c0_20 = arith.constant 0 : index
    %c36 = arith.constant 36 : index
    %18 = vector.load %arg1[%c0_19, %c0_20, %c36] : memref<1x8x324xf32, #tpu.memory_space<vmem>>, vector<1x8x286xf32>
    %19 = vector.shape_cast %18 : vector<1x8x286xf32> to vector<8x286xf32>
    %c48 = arith.constant 48 : index
    %c0_21 = arith.constant 0 : index
    %20 = vector.load %arg7[%c48, %c0_21] : memref<72x286xf32, #tpu.memory_space<vmem>>, vector<8x286xf32>
    tpu.vector_store %arg7[%c48, %c0_21], %19 {strides = array<i32>} : memref<72x286xf32, #tpu.memory_space<vmem>>, vector<8x286xf32>,
    %c0_22 = arith.constant 0 : index
    %c0_23 = arith.constant 0 : index
    %c37 = arith.constant 37 : index
    %21 = vector.load %arg1[%c0_22, %c0_23, %c37] : memref<1x8x324xf32, #tpu.memory_space<vmem>>, vector<1x8x286xf32>
    %22 = vector.shape_cast %21 : vector<1x8x286xf32> to vector<8x286xf32>
    %c56 = arith.constant 56 : index
    %c0_24 = arith.constant 0 : index
    %23 = vector.load %arg7[%c56, %c0_24] : memref<72x286xf32, #tpu.memory_space<vmem>>, vector<8x286xf32>
    tpu.vector_store %arg7[%c56, %c0_24], %22 {strides = array<i32>} : memref<72x286xf32, #tpu.memory_space<vmem>>, vector<8x286xf32>,
    %c0_25 = arith.constant 0 : index
    %c0_26 = arith.constant 0 : index
    %c38 = arith.constant 38 : index
    %24 = vector.load %arg1[%c0_25, %c0_26, %c38] : memref<1x8x324xf32, #tpu.memory_space<vmem>>, vector<1x8x286xf32>
    %25 = vector.shape_cast %24 : vector<1x8x286xf32> to vector<8x286xf32>
    %c64 = arith.constant 64 : index
    %c0_27 = arith.constant 0 : index
    %26 = vector.load %arg7[%c64, %c0_27] : memref<72x286xf32, #tpu.memory_space<vmem>>, vector<8x286xf32>
    tpu.vector_store %arg7[%c64, %c0_27], %25 {strides = array<i32>} : memref<72x286xf32, #tpu.memory_space<vmem>>, vector<8x286xf32>,
    %c0_28 = arith.constant 0 : index
    %c0_29 = arith.constant 0 : index
    %27 = vector.load %arg7[%c0_28, %c0_29] : memref<72x286xf32, #tpu.memory_space<vmem>>, vector<72x286xf32>
    %28 = arith.truncf %27 : vector<72x286xf32> to vector<72x286xbf16>
    %c0_30 = arith.constant 0 : index
    %c0_31 = arith.constant 0 : index
    %29 = vector.load %arg2[%c0_30, %c0_31] : memref<8x72xbf16, #tpu.memory_space<vmem>>, vector<8x72xbf16>
    %cst = arith.constant dense<0.000000e+00> : vector<8x286xf32>
    %30 = tpu.matmul %29, %28, %cst {dimension_numbers = #tpu.dot_dimension_numbers<[1], [0], [0], [1], [0, 0, 1, 1], [], []>} : vector<8x72xbf16>, vector<72x286xbf16>, vector<8x286xf32> -> vector<8x286xf32>
    %c0_32 = arith.constant 0 : index
    %c0_33 = arith.constant 0 : index
    %31 = vector.load %arg3[%c0_32, %c0_33] : memref<8x1xf32, #tpu.memory_space<vmem>>, vector<8x1xf32>
    %32 = vector.broadcast %31 : vector<8x1xf32> to vector<8x286xf32>
    %33 = arith.addf %30, %32 : vector<8x286xf32>
    %cst_34 = arith.constant 0.000000e+00 : f32
    %34 = vector.broadcast %cst_34 : f32 to vector<8x286xf32>
    %35 = arith.maximumf %33, %34 : vector<8x286xf32>
    %c0_35 = arith.constant 0 : index
    %c0_36 = arith.constant 0 : index
    %36 = vector.load %arg4[%c0_35, %c0_36] : memref<8x1xf32, #tpu.memory_space<vmem>>, vector<8x1xf32>
    %37 = vector.broadcast %36 : vector<8x1xf32> to vector<8x286xf32>
    %38 = arith.mulf %35, %37 : vector<8x286xf32>
    %c0_37 = arith.constant 0 : index
    %c0_38 = arith.constant 0 : index
    %39 = vector.load %arg5[%c0_37, %c0_38] : memref<8x1xf32, #tpu.memory_space<vmem>>, vector<8x1xf32>
    %40 = vector.broadcast %39 : vector<8x1xf32> to vector<8x286xf32>
    %41 = arith.addf %38, %40 : vector<8x286xf32>
    %c0_39 = arith.constant 0 : index
    %c0_40 = arith.constant 0 : index
    %c0_41 = arith.constant 0 : index
    %42 = vector.load %arg6[%c0_39, %c0_40, %c0_41] : memref<1x8x286xf32, #tpu.memory_space<vmem>>, vector<1x8x286xf32>
    %43 = vector.shape_cast %42 : vector<1x8x286xf32> to vector<8x286xf32>
    %44 = vector.shape_cast %41 : vector<8x286xf32> to vector<1x8x286xf32>
    tpu.vector_store %arg6[%c0_39, %c0_40, %c0_41], %44 {strides = array<i32>} : memref<1x8x286xf32, #tpu.memory_space<vmem>>, vector<1x8x286xf32>,
    return
  }
  func.func @transform_0(%arg0: i32) -> (i32, i32, i32) {
    %c0_i32 = arith.constant 0 : i32
    %c0_i32_0 = arith.constant 0 : i32
    %c0_i32_1 = arith.constant 0 : i32
    return %arg0, %c0_i32, %c0_i32_0 : i32, i32, i32
  }
  func.func @transform_1(%arg0: i32) -> (i32, i32) {
    %c0_i32 = arith.constant 0 : i32
    %c0_i32_0 = arith.constant 0 : i32
    %c0_i32_1 = arith.constant 0 : i32
    return %c0_i32, %c0_i32_0 : i32, i32
  }
  func.func @transform_2(%arg0: i32) -> (i32, i32) {
    %c0_i32 = arith.constant 0 : i32
    %c0_i32_0 = arith.constant 0 : i32
    %c0_i32_1 = arith.constant 0 : i32
    return %c0_i32, %c0_i32_0 : i32, i32
  }
  func.func @transform_3(%arg0: i32) -> (i32, i32) {
    %c0_i32 = arith.constant 0 : i32
    %c0_i32_0 = arith.constant 0 : i32
    %c0_i32_1 = arith.constant 0 : i32
    return %c0_i32, %c0_i32_0 : i32, i32
  }
  func.func @transform_4(%arg0: i32) -> (i32, i32) {
    %c0_i32 = arith.constant 0 : i32
    %c0_i32_0 = arith.constant 0 : i32
    %c0_i32_1 = arith.constant 0 : i32
    return %c0_i32, %c0_i32_0 : i32, i32
  }
  func.func @transform_5(%arg0: i32) -> (i32, i32, i32) {
    %c0_i32 = arith.constant 0 : i32
    %c0_i32_0 = arith.constant 0 : i32
    %c0_i32_1 = arith.constant 0 : i32
    return %arg0, %c0_i32, %c0_i32_0 : i32, i32, i32
  }
}

module attributes {stable_mosaic.version = 11 : i64} {
  func.func @kernel(%arg0: i32, %arg1: memref<1x8x484xf32, #tpu.memory_space<vmem>>, %arg2: memref<8x392xbf16, #tpu.memory_space<vmem>>, %arg3: memref<8x1xf32, #tpu.memory_space<vmem>>, %arg4: memref<8x1xf32, #tpu.memory_space<vmem>>, %arg5: memref<8x1xf32, #tpu.memory_space<vmem>>, %arg6: memref<1x8x346xf32, #tpu.memory_space<vmem>>, %arg7: memref<392x346xf32, #tpu.memory_space<vmem>>) attributes {dimension_semantics = [#tpu.dimension_semantics<parallel>], iteration_bounds = array<i64: 2>, scalar_prefetch = 0 : i64, scratch_operands = 1 : i64, tpu.core_type = #tpu.core_type<tc>, window_params = [{transform_indices = @transform_0, window_bounds = array<i64: 1, 8, 484>}, {pipeline_mode = #tpu.pipeline_mode<synchronous>, transform_indices = @transform_1, window_bounds = array<i64: 8, 392>}, {pipeline_mode = #tpu.pipeline_mode<synchronous>, transform_indices = @transform_2, window_bounds = array<i64: 8, 1>}, {pipeline_mode = #tpu.pipeline_mode<synchronous>, transform_indices = @transform_3, window_bounds = array<i64: 8, 1>}, {pipeline_mode = #tpu.pipeline_mode<synchronous>, transform_indices = @transform_4, window_bounds = array<i64: 8, 1>}, {transform_indices = @transform_5, window_bounds = array<i64: 1, 8, 346>}]} {
    %c0 = arith.constant 0 : index
    %c0_0 = arith.constant 0 : index
    %c0_1 = arith.constant 0 : index
    %0 = vector.load %arg1[%c0, %c0_0, %c0_1] : memref<1x8x484xf32, #tpu.memory_space<vmem>>, vector<1x8x346xf32>
    %1 = vector.shape_cast %0 : vector<1x8x346xf32> to vector<8x346xf32>
    %c0_2 = arith.constant 0 : index
    %c0_3 = arith.constant 0 : index
    %2 = vector.load %arg7[%c0_2, %c0_3] : memref<392x346xf32, #tpu.memory_space<vmem>>, vector<8x346xf32>
    tpu.vector_store %arg7[%c0_2, %c0_3], %1 {strides = array<i32>} : memref<392x346xf32, #tpu.memory_space<vmem>>, vector<8x346xf32>,
    %c0_4 = arith.constant 0 : index
    %c0_5 = arith.constant 0 : index
    %c1 = arith.constant 1 : index
    %3 = vector.load %arg1[%c0_4, %c0_5, %c1] : memref<1x8x484xf32, #tpu.memory_space<vmem>>, vector<1x8x346xf32>
    %4 = vector.shape_cast %3 : vector<1x8x346xf32> to vector<8x346xf32>
    %c8 = arith.constant 8 : index
    %c0_6 = arith.constant 0 : index
    %5 = vector.load %arg7[%c8, %c0_6] : memref<392x346xf32, #tpu.memory_space<vmem>>, vector<8x346xf32>
    tpu.vector_store %arg7[%c8, %c0_6], %4 {strides = array<i32>} : memref<392x346xf32, #tpu.memory_space<vmem>>, vector<8x346xf32>,
    %c0_7 = arith.constant 0 : index
    %c0_8 = arith.constant 0 : index
    %c2 = arith.constant 2 : index
    %6 = vector.load %arg1[%c0_7, %c0_8, %c2] : memref<1x8x484xf32, #tpu.memory_space<vmem>>, vector<1x8x346xf32>
    %7 = vector.shape_cast %6 : vector<1x8x346xf32> to vector<8x346xf32>
    %c16 = arith.constant 16 : index
    %c0_9 = arith.constant 0 : index
    %8 = vector.load %arg7[%c16, %c0_9] : memref<392x346xf32, #tpu.memory_space<vmem>>, vector<8x346xf32>
    tpu.vector_store %arg7[%c16, %c0_9], %7 {strides = array<i32>} : memref<392x346xf32, #tpu.memory_space<vmem>>, vector<8x346xf32>,
    %c0_10 = arith.constant 0 : index
    %c0_11 = arith.constant 0 : index
    %c3 = arith.constant 3 : index
    %9 = vector.load %arg1[%c0_10, %c0_11, %c3] : memref<1x8x484xf32, #tpu.memory_space<vmem>>, vector<1x8x346xf32>
    %10 = vector.shape_cast %9 : vector<1x8x346xf32> to vector<8x346xf32>
    %c24 = arith.constant 24 : index
    %c0_12 = arith.constant 0 : index
    %11 = vector.load %arg7[%c24, %c0_12] : memref<392x346xf32, #tpu.memory_space<vmem>>, vector<8x346xf32>
    tpu.vector_store %arg7[%c24, %c0_12], %10 {strides = array<i32>} : memref<392x346xf32, #tpu.memory_space<vmem>>, vector<8x346xf32>,
    %c0_13 = arith.constant 0 : index
    %c0_14 = arith.constant 0 : index
    %c4 = arith.constant 4 : index
    %12 = vector.load %arg1[%c0_13, %c0_14, %c4] : memref<1x8x484xf32, #tpu.memory_space<vmem>>, vector<1x8x346xf32>
    %13 = vector.shape_cast %12 : vector<1x8x346xf32> to vector<8x346xf32>
    %c32 = arith.constant 32 : index
    %c0_15 = arith.constant 0 : index
    %14 = vector.load %arg7[%c32, %c0_15] : memref<392x346xf32, #tpu.memory_space<vmem>>, vector<8x346xf32>
    tpu.vector_store %arg7[%c32, %c0_15], %13 {strides = array<i32>} : memref<392x346xf32, #tpu.memory_space<vmem>>, vector<8x346xf32>,
    %c0_16 = arith.constant 0 : index
    %c0_17 = arith.constant 0 : index
    %c5 = arith.constant 5 : index
    %15 = vector.load %arg1[%c0_16, %c0_17, %c5] : memref<1x8x484xf32, #tpu.memory_space<vmem>>, vector<1x8x346xf32>
    %16 = vector.shape_cast %15 : vector<1x8x346xf32> to vector<8x346xf32>
    %c40 = arith.constant 40 : index
    %c0_18 = arith.constant 0 : index
    %17 = vector.load %arg7[%c40, %c0_18] : memref<392x346xf32, #tpu.memory_space<vmem>>, vector<8x346xf32>
    tpu.vector_store %arg7[%c40, %c0_18], %16 {strides = array<i32>} : memref<392x346xf32, #tpu.memory_space<vmem>>, vector<8x346xf32>,
    %c0_19 = arith.constant 0 : index
    %c0_20 = arith.constant 0 : index
    %c6 = arith.constant 6 : index
    %18 = vector.load %arg1[%c0_19, %c0_20, %c6] : memref<1x8x484xf32, #tpu.memory_space<vmem>>, vector<1x8x346xf32>
    %19 = vector.shape_cast %18 : vector<1x8x346xf32> to vector<8x346xf32>
    %c48 = arith.constant 48 : index
    %c0_21 = arith.constant 0 : index
    %20 = vector.load %arg7[%c48, %c0_21] : memref<392x346xf32, #tpu.memory_space<vmem>>, vector<8x346xf32>
    tpu.vector_store %arg7[%c48, %c0_21], %19 {strides = array<i32>} : memref<392x346xf32, #tpu.memory_space<vmem>>, vector<8x346xf32>,
    %c0_22 = arith.constant 0 : index
    %c0_23 = arith.constant 0 : index
    %c22 = arith.constant 22 : index
    %21 = vector.load %arg1[%c0_22, %c0_23, %c22] : memref<1x8x484xf32, #tpu.memory_space<vmem>>, vector<1x8x346xf32>
    %22 = vector.shape_cast %21 : vector<1x8x346xf32> to vector<8x346xf32>
    %c56 = arith.constant 56 : index
    %c0_24 = arith.constant 0 : index
    %23 = vector.load %arg7[%c56, %c0_24] : memref<392x346xf32, #tpu.memory_space<vmem>>, vector<8x346xf32>
    tpu.vector_store %arg7[%c56, %c0_24], %22 {strides = array<i32>} : memref<392x346xf32, #tpu.memory_space<vmem>>, vector<8x346xf32>,
    %c0_25 = arith.constant 0 : index
    %c0_26 = arith.constant 0 : index
    %c23 = arith.constant 23 : index
    %24 = vector.load %arg1[%c0_25, %c0_26, %c23] : memref<1x8x484xf32, #tpu.memory_space<vmem>>, vector<1x8x346xf32>
    %25 = vector.shape_cast %24 : vector<1x8x346xf32> to vector<8x346xf32>
    %c64 = arith.constant 64 : index
    %c0_27 = arith.constant 0 : index
    %26 = vector.load %arg7[%c64, %c0_27] : memref<392x346xf32, #tpu.memory_space<vmem>>, vector<8x346xf32>
    tpu.vector_store %arg7[%c64, %c0_27], %25 {strides = array<i32>} : memref<392x346xf32, #tpu.memory_space<vmem>>, vector<8x346xf32>,
    %c0_28 = arith.constant 0 : index
    %c0_29 = arith.constant 0 : index
    %c24_30 = arith.constant 24 : index
    %27 = vector.load %arg1[%c0_28, %c0_29, %c24_30] : memref<1x8x484xf32, #tpu.memory_space<vmem>>, vector<1x8x346xf32>
    %28 = vector.shape_cast %27 : vector<1x8x346xf32> to vector<8x346xf32>
    %c72 = arith.constant 72 : index
    %c0_31 = arith.constant 0 : index
    %29 = vector.load %arg7[%c72, %c0_31] : memref<392x346xf32, #tpu.memory_space<vmem>>, vector<8x346xf32>
    tpu.vector_store %arg7[%c72, %c0_31], %28 {strides = array<i32>} : memref<392x346xf32, #tpu.memory_space<vmem>>, vector<8x346xf32>,
    %c0_32 = arith.constant 0 : index
    %c0_33 = arith.constant 0 : index
    %c25 = arith.constant 25 : index
    %30 = vector.load %arg1[%c0_32, %c0_33, %c25] : memref<1x8x484xf32, #tpu.memory_space<vmem>>, vector<1x8x346xf32>
    %31 = vector.shape_cast %30 : vector<1x8x346xf32> to vector<8x346xf32>
    %c80 = arith.constant 80 : index
    %c0_34 = arith.constant 0 : index
    %32 = vector.load %arg7[%c80, %c0_34] : memref<392x346xf32, #tpu.memory_space<vmem>>, vector<8x346xf32>
    tpu.vector_store %arg7[%c80, %c0_34], %31 {strides = array<i32>} : memref<392x346xf32, #tpu.memory_space<vmem>>, vector<8x346xf32>,
    %c0_35 = arith.constant 0 : index
    %c0_36 = arith.constant 0 : index
    %c26 = arith.constant 26 : index
    %33 = vector.load %arg1[%c0_35, %c0_36, %c26] : memref<1x8x484xf32, #tpu.memory_space<vmem>>, vector<1x8x346xf32>
    %34 = vector.shape_cast %33 : vector<1x8x346xf32> to vector<8x346xf32>
    %c88 = arith.constant 88 : index
    %c0_37 = arith.constant 0 : index
    %35 = vector.load %arg7[%c88, %c0_37] : memref<392x346xf32, #tpu.memory_space<vmem>>, vector<8x346xf32>
    tpu.vector_store %arg7[%c88, %c0_37], %34 {strides = array<i32>} : memref<392x346xf32, #tpu.memory_space<vmem>>, vector<8x346xf32>,
    %c0_38 = arith.constant 0 : index
    %c0_39 = arith.constant 0 : index
    %c27 = arith.constant 27 : index
    %36 = vector.load %arg1[%c0_38, %c0_39, %c27] : memref<1x8x484xf32, #tpu.memory_space<vmem>>, vector<1x8x346xf32>
    %37 = vector.shape_cast %36 : vector<1x8x346xf32> to vector<8x346xf32>
    %c96 = arith.constant 96 : index
    %c0_40 = arith.constant 0 : index
    %38 = vector.load %arg7[%c96, %c0_40] : memref<392x346xf32, #tpu.memory_space<vmem>>, vector<8x346xf32>
    tpu.vector_store %arg7[%c96, %c0_40], %37 {strides = array<i32>} : memref<392x346xf32, #tpu.memory_space<vmem>>, vector<8x346xf32>,
    %c0_41 = arith.constant 0 : index
    %c0_42 = arith.constant 0 : index
    %c28 = arith.constant 28 : index
    %39 = vector.load %arg1[%c0_41, %c0_42, %c28] : memref<1x8x484xf32, #tpu.memory_space<vmem>>, vector<1x8x346xf32>
    %40 = vector.shape_cast %39 : vector<1x8x346xf32> to vector<8x346xf32>
    %c104 = arith.constant 104 : index
    %c0_43 = arith.constant 0 : index
    %41 = vector.load %arg7[%c104, %c0_43] : memref<392x346xf32, #tpu.memory_space<vmem>>, vector<8x346xf32>
    tpu.vector_store %arg7[%c104, %c0_43], %40 {strides = array<i32>} : memref<392x346xf32, #tpu.memory_space<vmem>>, vector<8x346xf32>,
    %c0_44 = arith.constant 0 : index
    %c0_45 = arith.constant 0 : index
    %c44 = arith.constant 44 : index
    %42 = vector.load %arg1[%c0_44, %c0_45, %c44] : memref<1x8x484xf32, #tpu.memory_space<vmem>>, vector<1x8x346xf32>
    %43 = vector.shape_cast %42 : vector<1x8x346xf32> to vector<8x346xf32>
    %c112 = arith.constant 112 : index
    %c0_46 = arith.constant 0 : index
    %44 = vector.load %arg7[%c112, %c0_46] : memref<392x346xf32, #tpu.memory_space<vmem>>, vector<8x346xf32>
    tpu.vector_store %arg7[%c112, %c0_46], %43 {strides = array<i32>} : memref<392x346xf32, #tpu.memory_space<vmem>>, vector<8x346xf32>,
    %c0_47 = arith.constant 0 : index
    %c0_48 = arith.constant 0 : index
    %c45 = arith.constant 45 : index
    %45 = vector.load %arg1[%c0_47, %c0_48, %c45] : memref<1x8x484xf32, #tpu.memory_space<vmem>>, vector<1x8x346xf32>
    %46 = vector.shape_cast %45 : vector<1x8x346xf32> to vector<8x346xf32>
    %c120 = arith.constant 120 : index
    %c0_49 = arith.constant 0 : index
    %47 = vector.load %arg7[%c120, %c0_49] : memref<392x346xf32, #tpu.memory_space<vmem>>, vector<8x346xf32>
    tpu.vector_store %arg7[%c120, %c0_49], %46 {strides = array<i32>} : memref<392x346xf32, #tpu.memory_space<vmem>>, vector<8x346xf32>,
    %c0_50 = arith.constant 0 : index
    %c0_51 = arith.constant 0 : index
    %c46 = arith.constant 46 : index
    %48 = vector.load %arg1[%c0_50, %c0_51, %c46] : memref<1x8x484xf32, #tpu.memory_space<vmem>>, vector<1x8x346xf32>
    %49 = vector.shape_cast %48 : vector<1x8x346xf32> to vector<8x346xf32>
    %c128 = arith.constant 128 : index
    %c0_52 = arith.constant 0 : index
    %50 = vector.load %arg7[%c128, %c0_52] : memref<392x346xf32, #tpu.memory_space<vmem>>, vector<8x346xf32>
    tpu.vector_store %arg7[%c128, %c0_52], %49 {strides = array<i32>} : memref<392x346xf32, #tpu.memory_space<vmem>>, vector<8x346xf32>,
    %c0_53 = arith.constant 0 : index
    %c0_54 = arith.constant 0 : index
    %c47 = arith.constant 47 : index
    %51 = vector.load %arg1[%c0_53, %c0_54, %c47] : memref<1x8x484xf32, #tpu.memory_space<vmem>>, vector<1x8x346xf32>
    %52 = vector.shape_cast %51 : vector<1x8x346xf32> to vector<8x346xf32>
    %c136 = arith.constant 136 : index
    %c0_55 = arith.constant 0 : index
    %53 = vector.load %arg7[%c136, %c0_55] : memref<392x346xf32, #tpu.memory_space<vmem>>, vector<8x346xf32>
    tpu.vector_store %arg7[%c136, %c0_55], %52 {strides = array<i32>} : memref<392x346xf32, #tpu.memory_space<vmem>>, vector<8x346xf32>,
    %c0_56 = arith.constant 0 : index
    %c0_57 = arith.constant 0 : index
    %c48_58 = arith.constant 48 : index
    %54 = vector.load %arg1[%c0_56, %c0_57, %c48_58] : memref<1x8x484xf32, #tpu.memory_space<vmem>>, vector<1x8x346xf32>
    %55 = vector.shape_cast %54 : vector<1x8x346xf32> to vector<8x346xf32>
    %c144 = arith.constant 144 : index
    %c0_59 = arith.constant 0 : index
    %56 = vector.load %arg7[%c144, %c0_59] : memref<392x346xf32, #tpu.memory_space<vmem>>, vector<8x346xf32>
    tpu.vector_store %arg7[%c144, %c0_59], %55 {strides = array<i32>} : memref<392x346xf32, #tpu.memory_space<vmem>>, vector<8x346xf32>,
    %c0_60 = arith.constant 0 : index
    %c0_61 = arith.constant 0 : index
    %c49 = arith.constant 49 : index
    %57 = vector.load %arg1[%c0_60, %c0_61, %c49] : memref<1x8x484xf32, #tpu.memory_space<vmem>>, vector<1x8x346xf32>
    %58 = vector.shape_cast %57 : vector<1x8x346xf32> to vector<8x346xf32>
    %c152 = arith.constant 152 : index
    %c0_62 = arith.constant 0 : index
    %59 = vector.load %arg7[%c152, %c0_62] : memref<392x346xf32, #tpu.memory_space<vmem>>, vector<8x346xf32>
    tpu.vector_store %arg7[%c152, %c0_62], %58 {strides = array<i32>} : memref<392x346xf32, #tpu.memory_space<vmem>>, vector<8x346xf32>,
    %c0_63 = arith.constant 0 : index
    %c0_64 = arith.constant 0 : index
    %c50 = arith.constant 50 : index
    %60 = vector.load %arg1[%c0_63, %c0_64, %c50] : memref<1x8x484xf32, #tpu.memory_space<vmem>>, vector<1x8x346xf32>
    %61 = vector.shape_cast %60 : vector<1x8x346xf32> to vector<8x346xf32>
    %c160 = arith.constant 160 : index
    %c0_65 = arith.constant 0 : index
    %62 = vector.load %arg7[%c160, %c0_65] : memref<392x346xf32, #tpu.memory_space<vmem>>, vector<8x346xf32>
    tpu.vector_store %arg7[%c160, %c0_65], %61 {strides = array<i32>} : memref<392x346xf32, #tpu.memory_space<vmem>>, vector<8x346xf32>,
    %c0_66 = arith.constant 0 : index
    %c0_67 = arith.constant 0 : index
    %c66 = arith.constant 66 : index
    %63 = vector.load %arg1[%c0_66, %c0_67, %c66] : memref<1x8x484xf32, #tpu.memory_space<vmem>>, vector<1x8x346xf32>
    %64 = vector.shape_cast %63 : vector<1x8x346xf32> to vector<8x346xf32>
    %c168 = arith.constant 168 : index
    %c0_68 = arith.constant 0 : index
    %65 = vector.load %arg7[%c168, %c0_68] : memref<392x346xf32, #tpu.memory_space<vmem>>, vector<8x346xf32>
    tpu.vector_store %arg7[%c168, %c0_68], %64 {strides = array<i32>} : memref<392x346xf32, #tpu.memory_space<vmem>>, vector<8x346xf32>,
    %c0_69 = arith.constant 0 : index
    %c0_70 = arith.constant 0 : index
    %c67 = arith.constant 67 : index
    %66 = vector.load %arg1[%c0_69, %c0_70, %c67] : memref<1x8x484xf32, #tpu.memory_space<vmem>>, vector<1x8x346xf32>
    %67 = vector.shape_cast %66 : vector<1x8x346xf32> to vector<8x346xf32>
    %c176 = arith.constant 176 : index
    %c0_71 = arith.constant 0 : index
    %68 = vector.load %arg7[%c176, %c0_71] : memref<392x346xf32, #tpu.memory_space<vmem>>, vector<8x346xf32>
    tpu.vector_store %arg7[%c176, %c0_71], %67 {strides = array<i32>} : memref<392x346xf32, #tpu.memory_space<vmem>>, vector<8x346xf32>,
    %c0_72 = arith.constant 0 : index
    %c0_73 = arith.constant 0 : index
    %c68 = arith.constant 68 : index
    %69 = vector.load %arg1[%c0_72, %c0_73, %c68] : memref<1x8x484xf32, #tpu.memory_space<vmem>>, vector<1x8x346xf32>
    %70 = vector.shape_cast %69 : vector<1x8x346xf32> to vector<8x346xf32>
    %c184 = arith.constant 184 : index
    %c0_74 = arith.constant 0 : index
    %71 = vector.load %arg7[%c184, %c0_74] : memref<392x346xf32, #tpu.memory_space<vmem>>, vector<8x346xf32>
    tpu.vector_store %arg7[%c184, %c0_74], %70 {strides = array<i32>} : memref<392x346xf32, #tpu.memory_space<vmem>>, vector<8x346xf32>,
    %c0_75 = arith.constant 0 : index
    %c0_76 = arith.constant 0 : index
    %c69 = arith.constant 69 : index
    %72 = vector.load %arg1[%c0_75, %c0_76, %c69] : memref<1x8x484xf32, #tpu.memory_space<vmem>>, vector<1x8x346xf32>
    %73 = vector.shape_cast %72 : vector<1x8x346xf32> to vector<8x346xf32>
    %c192 = arith.constant 192 : index
    %c0_77 = arith.constant 0 : index
    %74 = vector.load %arg7[%c192, %c0_77] : memref<392x346xf32, #tpu.memory_space<vmem>>, vector<8x346xf32>
    tpu.vector_store %arg7[%c192, %c0_77], %73 {strides = array<i32>} : memref<392x346xf32, #tpu.memory_space<vmem>>, vector<8x346xf32>,
    %c0_78 = arith.constant 0 : index
    %c0_79 = arith.constant 0 : index
    %c70 = arith.constant 70 : index
    %75 = vector.load %arg1[%c0_78, %c0_79, %c70] : memref<1x8x484xf32, #tpu.memory_space<vmem>>, vector<1x8x346xf32>
    %76 = vector.shape_cast %75 : vector<1x8x346xf32> to vector<8x346xf32>
    %c200 = arith.constant 200 : index
    %c0_80 = arith.constant 0 : index
    %77 = vector.load %arg7[%c200, %c0_80] : memref<392x346xf32, #tpu.memory_space<vmem>>, vector<8x346xf32>
    tpu.vector_store %arg7[%c200, %c0_80], %76 {strides = array<i32>} : memref<392x346xf32, #tpu.memory_space<vmem>>, vector<8x346xf32>,
    %c0_81 = arith.constant 0 : index
    %c0_82 = arith.constant 0 : index
    %c71 = arith.constant 71 : index
    %78 = vector.load %arg1[%c0_81, %c0_82, %c71] : memref<1x8x484xf32, #tpu.memory_space<vmem>>, vector<1x8x346xf32>
    %79 = vector.shape_cast %78 : vector<1x8x346xf32> to vector<8x346xf32>
    %c208 = arith.constant 208 : index
    %c0_83 = arith.constant 0 : index
    %80 = vector.load %arg7[%c208, %c0_83] : memref<392x346xf32, #tpu.memory_space<vmem>>, vector<8x346xf32>
    tpu.vector_store %arg7[%c208, %c0_83], %79 {strides = array<i32>} : memref<392x346xf32, #tpu.memory_space<vmem>>, vector<8x346xf32>,
    %c0_84 = arith.constant 0 : index
    %c0_85 = arith.constant 0 : index
    %c72_86 = arith.constant 72 : index
    %81 = vector.load %arg1[%c0_84, %c0_85, %c72_86] : memref<1x8x484xf32, #tpu.memory_space<vmem>>, vector<1x8x346xf32>
    %82 = vector.shape_cast %81 : vector<1x8x346xf32> to vector<8x346xf32>
    %c216 = arith.constant 216 : index
    %c0_87 = arith.constant 0 : index
    %83 = vector.load %arg7[%c216, %c0_87] : memref<392x346xf32, #tpu.memory_space<vmem>>, vector<8x346xf32>
    tpu.vector_store %arg7[%c216, %c0_87], %82 {strides = array<i32>} : memref<392x346xf32, #tpu.memory_space<vmem>>, vector<8x346xf32>,
    %c0_88 = arith.constant 0 : index
    %c0_89 = arith.constant 0 : index
    %c88_90 = arith.constant 88 : index
    %84 = vector.load %arg1[%c0_88, %c0_89, %c88_90] : memref<1x8x484xf32, #tpu.memory_space<vmem>>, vector<1x8x346xf32>
    %85 = vector.shape_cast %84 : vector<1x8x346xf32> to vector<8x346xf32>
    %c224 = arith.constant 224 : index
    %c0_91 = arith.constant 0 : index
    %86 = vector.load %arg7[%c224, %c0_91] : memref<392x346xf32, #tpu.memory_space<vmem>>, vector<8x346xf32>
    tpu.vector_store %arg7[%c224, %c0_91], %85 {strides = array<i32>} : memref<392x346xf32, #tpu.memory_space<vmem>>, vector<8x346xf32>,
    %c0_92 = arith.constant 0 : index
    %c0_93 = arith.constant 0 : index
    %c89 = arith.constant 89 : index
    %87 = vector.load %arg1[%c0_92, %c0_93, %c89] : memref<1x8x484xf32, #tpu.memory_space<vmem>>, vector<1x8x346xf32>
    %88 = vector.shape_cast %87 : vector<1x8x346xf32> to vector<8x346xf32>
    %c232 = arith.constant 232 : index
    %c0_94 = arith.constant 0 : index
    %89 = vector.load %arg7[%c232, %c0_94] : memref<392x346xf32, #tpu.memory_space<vmem>>, vector<8x346xf32>
    tpu.vector_store %arg7[%c232, %c0_94], %88 {strides = array<i32>} : memref<392x346xf32, #tpu.memory_space<vmem>>, vector<8x346xf32>,
    %c0_95 = arith.constant 0 : index
    %c0_96 = arith.constant 0 : index
    %c90 = arith.constant 90 : index
    %90 = vector.load %arg1[%c0_95, %c0_96, %c90] : memref<1x8x484xf32, #tpu.memory_space<vmem>>, vector<1x8x346xf32>
    %91 = vector.shape_cast %90 : vector<1x8x346xf32> to vector<8x346xf32>
    %c240 = arith.constant 240 : index
    %c0_97 = arith.constant 0 : index
    %92 = vector.load %arg7[%c240, %c0_97] : memref<392x346xf32, #tpu.memory_space<vmem>>, vector<8x346xf32>
    tpu.vector_store %arg7[%c240, %c0_97], %91 {strides = array<i32>} : memref<392x346xf32, #tpu.memory_space<vmem>>, vector<8x346xf32>,
    %c0_98 = arith.constant 0 : index
    %c0_99 = arith.constant 0 : index
    %c91 = arith.constant 91 : index
    %93 = vector.load %arg1[%c0_98, %c0_99, %c91] : memref<1x8x484xf32, #tpu.memory_space<vmem>>, vector<1x8x346xf32>
    %94 = vector.shape_cast %93 : vector<1x8x346xf32> to vector<8x346xf32>
    %c248 = arith.constant 248 : index
    %c0_100 = arith.constant 0 : index
    %95 = vector.load %arg7[%c248, %c0_100] : memref<392x346xf32, #tpu.memory_space<vmem>>, vector<8x346xf32>
    tpu.vector_store %arg7[%c248, %c0_100], %94 {strides = array<i32>} : memref<392x346xf32, #tpu.memory_space<vmem>>, vector<8x346xf32>,
    %c0_101 = arith.constant 0 : index
    %c0_102 = arith.constant 0 : index
    %c92 = arith.constant 92 : index
    %96 = vector.load %arg1[%c0_101, %c0_102, %c92] : memref<1x8x484xf32, #tpu.memory_space<vmem>>, vector<1x8x346xf32>
    %97 = vector.shape_cast %96 : vector<1x8x346xf32> to vector<8x346xf32>
    %c256 = arith.constant 256 : index
    %c0_103 = arith.constant 0 : index
    %98 = vector.load %arg7[%c256, %c0_103] : memref<392x346xf32, #tpu.memory_space<vmem>>, vector<8x346xf32>
    tpu.vector_store %arg7[%c256, %c0_103], %97 {strides = array<i32>} : memref<392x346xf32, #tpu.memory_space<vmem>>, vector<8x346xf32>,
    %c0_104 = arith.constant 0 : index
    %c0_105 = arith.constant 0 : index
    %c93 = arith.constant 93 : index
    %99 = vector.load %arg1[%c0_104, %c0_105, %c93] : memref<1x8x484xf32, #tpu.memory_space<vmem>>, vector<1x8x346xf32>
    %100 = vector.shape_cast %99 : vector<1x8x346xf32> to vector<8x346xf32>
    %c264 = arith.constant 264 : index
    %c0_106 = arith.constant 0 : index
    %101 = vector.load %arg7[%c264, %c0_106] : memref<392x346xf32, #tpu.memory_space<vmem>>, vector<8x346xf32>
    tpu.vector_store %arg7[%c264, %c0_106], %100 {strides = array<i32>} : memref<392x346xf32, #tpu.memory_space<vmem>>, vector<8x346xf32>,
    %c0_107 = arith.constant 0 : index
    %c0_108 = arith.constant 0 : index
    %c94 = arith.constant 94 : index
    %102 = vector.load %arg1[%c0_107, %c0_108, %c94] : memref<1x8x484xf32, #tpu.memory_space<vmem>>, vector<1x8x346xf32>
    %103 = vector.shape_cast %102 : vector<1x8x346xf32> to vector<8x346xf32>
    %c272 = arith.constant 272 : index
    %c0_109 = arith.constant 0 : index
    %104 = vector.load %arg7[%c272, %c0_109] : memref<392x346xf32, #tpu.memory_space<vmem>>, vector<8x346xf32>
    tpu.vector_store %arg7[%c272, %c0_109], %103 {strides = array<i32>} : memref<392x346xf32, #tpu.memory_space<vmem>>, vector<8x346xf32>,
    %c0_110 = arith.constant 0 : index
    %c0_111 = arith.constant 0 : index
    %c110 = arith.constant 110 : index
    %105 = vector.load %arg1[%c0_110, %c0_111, %c110] : memref<1x8x484xf32, #tpu.memory_space<vmem>>, vector<1x8x346xf32>
    %106 = vector.shape_cast %105 : vector<1x8x346xf32> to vector<8x346xf32>
    %c280 = arith.constant 280 : index
    %c0_112 = arith.constant 0 : index
    %107 = vector.load %arg7[%c280, %c0_112] : memref<392x346xf32, #tpu.memory_space<vmem>>, vector<8x346xf32>
    tpu.vector_store %arg7[%c280, %c0_112], %106 {strides = array<i32>} : memref<392x346xf32, #tpu.memory_space<vmem>>, vector<8x346xf32>,
    %c0_113 = arith.constant 0 : index
    %c0_114 = arith.constant 0 : index
    %c111 = arith.constant 111 : index
    %108 = vector.load %arg1[%c0_113, %c0_114, %c111] : memref<1x8x484xf32, #tpu.memory_space<vmem>>, vector<1x8x346xf32>
    %109 = vector.shape_cast %108 : vector<1x8x346xf32> to vector<8x346xf32>
    %c288 = arith.constant 288 : index
    %c0_115 = arith.constant 0 : index
    %110 = vector.load %arg7[%c288, %c0_115] : memref<392x346xf32, #tpu.memory_space<vmem>>, vector<8x346xf32>
    tpu.vector_store %arg7[%c288, %c0_115], %109 {strides = array<i32>} : memref<392x346xf32, #tpu.memory_space<vmem>>, vector<8x346xf32>,
    %c0_116 = arith.constant 0 : index
    %c0_117 = arith.constant 0 : index
    %c112_118 = arith.constant 112 : index
    %111 = vector.load %arg1[%c0_116, %c0_117, %c112_118] : memref<1x8x484xf32, #tpu.memory_space<vmem>>, vector<1x8x346xf32>
    %112 = vector.shape_cast %111 : vector<1x8x346xf32> to vector<8x346xf32>
    %c296 = arith.constant 296 : index
    %c0_119 = arith.constant 0 : index
    %113 = vector.load %arg7[%c296, %c0_119] : memref<392x346xf32, #tpu.memory_space<vmem>>, vector<8x346xf32>
    tpu.vector_store %arg7[%c296, %c0_119], %112 {strides = array<i32>} : memref<392x346xf32, #tpu.memory_space<vmem>>, vector<8x346xf32>,
    %c0_120 = arith.constant 0 : index
    %c0_121 = arith.constant 0 : index
    %c113 = arith.constant 113 : index
    %114 = vector.load %arg1[%c0_120, %c0_121, %c113] : memref<1x8x484xf32, #tpu.memory_space<vmem>>, vector<1x8x346xf32>
    %115 = vector.shape_cast %114 : vector<1x8x346xf32> to vector<8x346xf32>
    %c304 = arith.constant 304 : index
    %c0_122 = arith.constant 0 : index
    %116 = vector.load %arg7[%c304, %c0_122] : memref<392x346xf32, #tpu.memory_space<vmem>>, vector<8x346xf32>
    tpu.vector_store %arg7[%c304, %c0_122], %115 {strides = array<i32>} : memref<392x346xf32, #tpu.memory_space<vmem>>, vector<8x346xf32>,
    %c0_123 = arith.constant 0 : index
    %c0_124 = arith.constant 0 : index
    %c114 = arith.constant 114 : index
    %117 = vector.load %arg1[%c0_123, %c0_124, %c114] : memref<1x8x484xf32, #tpu.memory_space<vmem>>, vector<1x8x346xf32>
    %118 = vector.shape_cast %117 : vector<1x8x346xf32> to vector<8x346xf32>
    %c312 = arith.constant 312 : index
    %c0_125 = arith.constant 0 : index
    %119 = vector.load %arg7[%c312, %c0_125] : memref<392x346xf32, #tpu.memory_space<vmem>>, vector<8x346xf32>
    tpu.vector_store %arg7[%c312, %c0_125], %118 {strides = array<i32>} : memref<392x346xf32, #tpu.memory_space<vmem>>, vector<8x346xf32>,
    %c0_126 = arith.constant 0 : index
    %c0_127 = arith.constant 0 : index
    %c115 = arith.constant 115 : index
    %120 = vector.load %arg1[%c0_126, %c0_127, %c115] : memref<1x8x484xf32, #tpu.memory_space<vmem>>, vector<1x8x346xf32>
    %121 = vector.shape_cast %120 : vector<1x8x346xf32> to vector<8x346xf32>
    %c320 = arith.constant 320 : index
    %c0_128 = arith.constant 0 : index
    %122 = vector.load %arg7[%c320, %c0_128] : memref<392x346xf32, #tpu.memory_space<vmem>>, vector<8x346xf32>
    tpu.vector_store %arg7[%c320, %c0_128], %121 {strides = array<i32>} : memref<392x346xf32, #tpu.memory_space<vmem>>, vector<8x346xf32>,
    %c0_129 = arith.constant 0 : index
    %c0_130 = arith.constant 0 : index
    %c116 = arith.constant 116 : index
    %123 = vector.load %arg1[%c0_129, %c0_130, %c116] : memref<1x8x484xf32, #tpu.memory_space<vmem>>, vector<1x8x346xf32>
    %124 = vector.shape_cast %123 : vector<1x8x346xf32> to vector<8x346xf32>
    %c328 = arith.constant 328 : index
    %c0_131 = arith.constant 0 : index
    %125 = vector.load %arg7[%c328, %c0_131] : memref<392x346xf32, #tpu.memory_space<vmem>>, vector<8x346xf32>
    tpu.vector_store %arg7[%c328, %c0_131], %124 {strides = array<i32>} : memref<392x346xf32, #tpu.memory_space<vmem>>, vector<8x346xf32>,
    %c0_132 = arith.constant 0 : index
    %c0_133 = arith.constant 0 : index
    %c132 = arith.constant 132 : index
    %126 = vector.load %arg1[%c0_132, %c0_133, %c132] : memref<1x8x484xf32, #tpu.memory_space<vmem>>, vector<1x8x346xf32>
    %127 = vector.shape_cast %126 : vector<1x8x346xf32> to vector<8x346xf32>
    %c336 = arith.constant 336 : index
    %c0_134 = arith.constant 0 : index
    %128 = vector.load %arg7[%c336, %c0_134] : memref<392x346xf32, #tpu.memory_space<vmem>>, vector<8x346xf32>
    tpu.vector_store %arg7[%c336, %c0_134], %127 {strides = array<i32>} : memref<392x346xf32, #tpu.memory_space<vmem>>, vector<8x346xf32>,
    %c0_135 = arith.constant 0 : index
    %c0_136 = arith.constant 0 : index
    %c133 = arith.constant 133 : index
    %129 = vector.load %arg1[%c0_135, %c0_136, %c133] : memref<1x8x484xf32, #tpu.memory_space<vmem>>, vector<1x8x346xf32>
    %130 = vector.shape_cast %129 : vector<1x8x346xf32> to vector<8x346xf32>
    %c344 = arith.constant 344 : index
    %c0_137 = arith.constant 0 : index
    %131 = vector.load %arg7[%c344, %c0_137] : memref<392x346xf32, #tpu.memory_space<vmem>>, vector<8x346xf32>
    tpu.vector_store %arg7[%c344, %c0_137], %130 {strides = array<i32>} : memref<392x346xf32, #tpu.memory_space<vmem>>, vector<8x346xf32>,
    %c0_138 = arith.constant 0 : index
    %c0_139 = arith.constant 0 : index
    %c134 = arith.constant 134 : index
    %132 = vector.load %arg1[%c0_138, %c0_139, %c134] : memref<1x8x484xf32, #tpu.memory_space<vmem>>, vector<1x8x346xf32>
    %133 = vector.shape_cast %132 : vector<1x8x346xf32> to vector<8x346xf32>
    %c352 = arith.constant 352 : index
    %c0_140 = arith.constant 0 : index
    %134 = vector.load %arg7[%c352, %c0_140] : memref<392x346xf32, #tpu.memory_space<vmem>>, vector<8x346xf32>
    tpu.vector_store %arg7[%c352, %c0_140], %133 {strides = array<i32>} : memref<392x346xf32, #tpu.memory_space<vmem>>, vector<8x346xf32>,
    %c0_141 = arith.constant 0 : index
    %c0_142 = arith.constant 0 : index
    %c135 = arith.constant 135 : index
    %135 = vector.load %arg1[%c0_141, %c0_142, %c135] : memref<1x8x484xf32, #tpu.memory_space<vmem>>, vector<1x8x346xf32>
    %136 = vector.shape_cast %135 : vector<1x8x346xf32> to vector<8x346xf32>
    %c360 = arith.constant 360 : index
    %c0_143 = arith.constant 0 : index
    %137 = vector.load %arg7[%c360, %c0_143] : memref<392x346xf32, #tpu.memory_space<vmem>>, vector<8x346xf32>
    tpu.vector_store %arg7[%c360, %c0_143], %136 {strides = array<i32>} : memref<392x346xf32, #tpu.memory_space<vmem>>, vector<8x346xf32>,
    %c0_144 = arith.constant 0 : index
    %c0_145 = arith.constant 0 : index
    %c136_146 = arith.constant 136 : index
    %138 = vector.load %arg1[%c0_144, %c0_145, %c136_146] : memref<1x8x484xf32, #tpu.memory_space<vmem>>, vector<1x8x346xf32>
    %139 = vector.shape_cast %138 : vector<1x8x346xf32> to vector<8x346xf32>
    %c368 = arith.constant 368 : index
    %c0_147 = arith.constant 0 : index
    %140 = vector.load %arg7[%c368, %c0_147] : memref<392x346xf32, #tpu.memory_space<vmem>>, vector<8x346xf32>
    tpu.vector_store %arg7[%c368, %c0_147], %139 {strides = array<i32>} : memref<392x346xf32, #tpu.memory_space<vmem>>, vector<8x346xf32>,
    %c0_148 = arith.constant 0 : index
    %c0_149 = arith.constant 0 : index
    %c137 = arith.constant 137 : index
    %141 = vector.load %arg1[%c0_148, %c0_149, %c137] : memref<1x8x484xf32, #tpu.memory_space<vmem>>, vector<1x8x346xf32>
    %142 = vector.shape_cast %141 : vector<1x8x346xf32> to vector<8x346xf32>
    %c376 = arith.constant 376 : index
    %c0_150 = arith.constant 0 : index
    %143 = vector.load %arg7[%c376, %c0_150] : memref<392x346xf32, #tpu.memory_space<vmem>>, vector<8x346xf32>
    tpu.vector_store %arg7[%c376, %c0_150], %142 {strides = array<i32>} : memref<392x346xf32, #tpu.memory_space<vmem>>, vector<8x346xf32>,
    %c0_151 = arith.constant 0 : index
    %c0_152 = arith.constant 0 : index
    %c138 = arith.constant 138 : index
    %144 = vector.load %arg1[%c0_151, %c0_152, %c138] : memref<1x8x484xf32, #tpu.memory_space<vmem>>, vector<1x8x346xf32>
    %145 = vector.shape_cast %144 : vector<1x8x346xf32> to vector<8x346xf32>
    %c384 = arith.constant 384 : index
    %c0_153 = arith.constant 0 : index
    %146 = vector.load %arg7[%c384, %c0_153] : memref<392x346xf32, #tpu.memory_space<vmem>>, vector<8x346xf32>
    tpu.vector_store %arg7[%c384, %c0_153], %145 {strides = array<i32>} : memref<392x346xf32, #tpu.memory_space<vmem>>, vector<8x346xf32>,
    %c0_154 = arith.constant 0 : index
    %c0_155 = arith.constant 0 : index
    %147 = vector.load %arg7[%c0_154, %c0_155] : memref<392x346xf32, #tpu.memory_space<vmem>>, vector<392x346xf32>
    %148 = arith.truncf %147 : vector<392x346xf32> to vector<392x346xbf16>
    %c0_156 = arith.constant 0 : index
    %c0_157 = arith.constant 0 : index
    %149 = vector.load %arg2[%c0_156, %c0_157] : memref<8x392xbf16, #tpu.memory_space<vmem>>, vector<8x392xbf16>
    %cst = arith.constant dense<0.000000e+00> : vector<8x346xf32>
    %150 = tpu.matmul %149, %148, %cst {dimension_numbers = #tpu.dot_dimension_numbers<[1], [0], [0], [1], [0, 0, 1, 1], [], []>} : vector<8x392xbf16>, vector<392x346xbf16>, vector<8x346xf32> -> vector<8x346xf32>
    %c0_158 = arith.constant 0 : index
    %c0_159 = arith.constant 0 : index
    %151 = vector.load %arg3[%c0_158, %c0_159] : memref<8x1xf32, #tpu.memory_space<vmem>>, vector<8x1xf32>
    %152 = vector.broadcast %151 : vector<8x1xf32> to vector<8x346xf32>
    %153 = arith.addf %150, %152 : vector<8x346xf32>
    %cst_160 = arith.constant 0.000000e+00 : f32
    %154 = vector.broadcast %cst_160 : f32 to vector<8x346xf32>
    %155 = arith.maximumf %153, %154 : vector<8x346xf32>
    %c0_161 = arith.constant 0 : index
    %c0_162 = arith.constant 0 : index
    %156 = vector.load %arg4[%c0_161, %c0_162] : memref<8x1xf32, #tpu.memory_space<vmem>>, vector<8x1xf32>
    %157 = vector.broadcast %156 : vector<8x1xf32> to vector<8x346xf32>
    %158 = arith.mulf %155, %157 : vector<8x346xf32>
    %c0_163 = arith.constant 0 : index
    %c0_164 = arith.constant 0 : index
    %159 = vector.load %arg5[%c0_163, %c0_164] : memref<8x1xf32, #tpu.memory_space<vmem>>, vector<8x1xf32>
    %160 = vector.broadcast %159 : vector<8x1xf32> to vector<8x346xf32>
    %161 = arith.addf %158, %160 : vector<8x346xf32>
    %c0_165 = arith.constant 0 : index
    %c0_166 = arith.constant 0 : index
    %c0_167 = arith.constant 0 : index
    %162 = vector.load %arg6[%c0_165, %c0_166, %c0_167] : memref<1x8x346xf32, #tpu.memory_space<vmem>>, vector<1x8x346xf32>
    %163 = vector.shape_cast %162 : vector<1x8x346xf32> to vector<8x346xf32>
    %164 = vector.shape_cast %161 : vector<8x346xf32> to vector<1x8x346xf32>
    tpu.vector_store %arg6[%c0_165, %c0_166, %c0_167], %164 {strides = array<i32>} : memref<1x8x346xf32, #tpu.memory_space<vmem>>, vector<1x8x346xf32>,
    return
  }
  func.func @transform_0(%arg0: i32) -> (i32, i32, i32) {
    %c0_i32 = arith.constant 0 : i32
    %c0_i32_0 = arith.constant 0 : i32
    %c0_i32_1 = arith.constant 0 : i32
    return %arg0, %c0_i32, %c0_i32_0 : i32, i32, i32
  }
  func.func @transform_1(%arg0: i32) -> (i32, i32) {
    %c0_i32 = arith.constant 0 : i32
    %c0_i32_0 = arith.constant 0 : i32
    %c0_i32_1 = arith.constant 0 : i32
    return %c0_i32, %c0_i32_0 : i32, i32
  }
  func.func @transform_2(%arg0: i32) -> (i32, i32) {
    %c0_i32 = arith.constant 0 : i32
    %c0_i32_0 = arith.constant 0 : i32
    %c0_i32_1 = arith.constant 0 : i32
    return %c0_i32, %c0_i32_0 : i32, i32
  }
  func.func @transform_3(%arg0: i32) -> (i32, i32) {
    %c0_i32 = arith.constant 0 : i32
    %c0_i32_0 = arith.constant 0 : i32
    %c0_i32_1 = arith.constant 0 : i32
    return %c0_i32, %c0_i32_0 : i32, i32
  }
  func.func @transform_4(%arg0: i32) -> (i32, i32) {
    %c0_i32 = arith.constant 0 : i32
    %c0_i32_0 = arith.constant 0 : i32
    %c0_i32_1 = arith.constant 0 : i32
    return %c0_i32, %c0_i32_0 : i32, i32
  }
  func.func @transform_5(%arg0: i32) -> (i32, i32, i32) {
    %c0_i32 = arith.constant 0 : i32
    %c0_i32_0 = arith.constant 0 : i32
    %c0_i32_1 = arith.constant 0 : i32
    return %arg0, %c0_i32, %c0_i32_0 : i32, i32, i32
  }
}

module attributes {stable_mosaic.version = 11 : i64} {
  func.func @kernel(%arg0: i32, %arg1: memref<1x8x100xf32, #tpu.memory_space<vmem>>, %arg2: memref<8x72xbf16, #tpu.memory_space<vmem>>, %arg3: memref<8x1xf32, #tpu.memory_space<vmem>>, %arg4: memref<8x1xf32, #tpu.memory_space<vmem>>, %arg5: memref<8x1xf32, #tpu.memory_space<vmem>>, %arg6: memref<1x8x78xf32, #tpu.memory_space<vmem>>, %arg7: memref<72x78xf32, #tpu.memory_space<vmem>>) attributes {dimension_semantics = [#tpu.dimension_semantics<parallel>], iteration_bounds = array<i64: 2>, scalar_prefetch = 0 : i64, scratch_operands = 1 : i64, tpu.core_type = #tpu.core_type<tc>, window_params = [{transform_indices = @transform_0, window_bounds = array<i64: 1, 8, 100>}, {pipeline_mode = #tpu.pipeline_mode<synchronous>, transform_indices = @transform_1, window_bounds = array<i64: 8, 72>}, {pipeline_mode = #tpu.pipeline_mode<synchronous>, transform_indices = @transform_2, window_bounds = array<i64: 8, 1>}, {pipeline_mode = #tpu.pipeline_mode<synchronous>, transform_indices = @transform_3, window_bounds = array<i64: 8, 1>}, {pipeline_mode = #tpu.pipeline_mode<synchronous>, transform_indices = @transform_4, window_bounds = array<i64: 8, 1>}, {transform_indices = @transform_5, window_bounds = array<i64: 1, 8, 78>}]} {
    %c0 = arith.constant 0 : index
    %c0_0 = arith.constant 0 : index
    %c0_1 = arith.constant 0 : index
    %0 = vector.load %arg1[%c0, %c0_0, %c0_1] : memref<1x8x100xf32, #tpu.memory_space<vmem>>, vector<1x8x78xf32>
    %1 = vector.shape_cast %0 : vector<1x8x78xf32> to vector<8x78xf32>
    %c0_2 = arith.constant 0 : index
    %c0_3 = arith.constant 0 : index
    %2 = vector.load %arg7[%c0_2, %c0_3] : memref<72x78xf32, #tpu.memory_space<vmem>>, vector<8x78xf32>
    tpu.vector_store %arg7[%c0_2, %c0_3], %1 {strides = array<i32>} : memref<72x78xf32, #tpu.memory_space<vmem>>, vector<8x78xf32>,
    %c0_4 = arith.constant 0 : index
    %c0_5 = arith.constant 0 : index
    %c1 = arith.constant 1 : index
    %3 = vector.load %arg1[%c0_4, %c0_5, %c1] : memref<1x8x100xf32, #tpu.memory_space<vmem>>, vector<1x8x78xf32>
    %4 = vector.shape_cast %3 : vector<1x8x78xf32> to vector<8x78xf32>
    %c8 = arith.constant 8 : index
    %c0_6 = arith.constant 0 : index
    %5 = vector.load %arg7[%c8, %c0_6] : memref<72x78xf32, #tpu.memory_space<vmem>>, vector<8x78xf32>
    tpu.vector_store %arg7[%c8, %c0_6], %4 {strides = array<i32>} : memref<72x78xf32, #tpu.memory_space<vmem>>, vector<8x78xf32>,
    %c0_7 = arith.constant 0 : index
    %c0_8 = arith.constant 0 : index
    %c2 = arith.constant 2 : index
    %6 = vector.load %arg1[%c0_7, %c0_8, %c2] : memref<1x8x100xf32, #tpu.memory_space<vmem>>, vector<1x8x78xf32>
    %7 = vector.shape_cast %6 : vector<1x8x78xf32> to vector<8x78xf32>
    %c16 = arith.constant 16 : index
    %c0_9 = arith.constant 0 : index
    %8 = vector.load %arg7[%c16, %c0_9] : memref<72x78xf32, #tpu.memory_space<vmem>>, vector<8x78xf32>
    tpu.vector_store %arg7[%c16, %c0_9], %7 {strides = array<i32>} : memref<72x78xf32, #tpu.memory_space<vmem>>, vector<8x78xf32>,
    %c0_10 = arith.constant 0 : index
    %c0_11 = arith.constant 0 : index
    %c10 = arith.constant 10 : index
    %9 = vector.load %arg1[%c0_10, %c0_11, %c10] : memref<1x8x100xf32, #tpu.memory_space<vmem>>, vector<1x8x78xf32>
    %10 = vector.shape_cast %9 : vector<1x8x78xf32> to vector<8x78xf32>
    %c24 = arith.constant 24 : index
    %c0_12 = arith.constant 0 : index
    %11 = vector.load %arg7[%c24, %c0_12] : memref<72x78xf32, #tpu.memory_space<vmem>>, vector<8x78xf32>
    tpu.vector_store %arg7[%c24, %c0_12], %10 {strides = array<i32>} : memref<72x78xf32, #tpu.memory_space<vmem>>, vector<8x78xf32>,
    %c0_13 = arith.constant 0 : index
    %c0_14 = arith.constant 0 : index
    %c11 = arith.constant 11 : index
    %12 = vector.load %arg1[%c0_13, %c0_14, %c11] : memref<1x8x100xf32, #tpu.memory_space<vmem>>, vector<1x8x78xf32>
    %13 = vector.shape_cast %12 : vector<1x8x78xf32> to vector<8x78xf32>
    %c32 = arith.constant 32 : index
    %c0_15 = arith.constant 0 : index
    %14 = vector.load %arg7[%c32, %c0_15] : memref<72x78xf32, #tpu.memory_space<vmem>>, vector<8x78xf32>
    tpu.vector_store %arg7[%c32, %c0_15], %13 {strides = array<i32>} : memref<72x78xf32, #tpu.memory_space<vmem>>, vector<8x78xf32>,
    %c0_16 = arith.constant 0 : index
    %c0_17 = arith.constant 0 : index
    %c12 = arith.constant 12 : index
    %15 = vector.load %arg1[%c0_16, %c0_17, %c12] : memref<1x8x100xf32, #tpu.memory_space<vmem>>, vector<1x8x78xf32>
    %16 = vector.shape_cast %15 : vector<1x8x78xf32> to vector<8x78xf32>
    %c40 = arith.constant 40 : index
    %c0_18 = arith.constant 0 : index
    %17 = vector.load %arg7[%c40, %c0_18] : memref<72x78xf32, #tpu.memory_space<vmem>>, vector<8x78xf32>
    tpu.vector_store %arg7[%c40, %c0_18], %16 {strides = array<i32>} : memref<72x78xf32, #tpu.memory_space<vmem>>, vector<8x78xf32>,
    %c0_19 = arith.constant 0 : index
    %c0_20 = arith.constant 0 : index
    %c20 = arith.constant 20 : index
    %18 = vector.load %arg1[%c0_19, %c0_20, %c20] : memref<1x8x100xf32, #tpu.memory_space<vmem>>, vector<1x8x78xf32>
    %19 = vector.shape_cast %18 : vector<1x8x78xf32> to vector<8x78xf32>
    %c48 = arith.constant 48 : index
    %c0_21 = arith.constant 0 : index
    %20 = vector.load %arg7[%c48, %c0_21] : memref<72x78xf32, #tpu.memory_space<vmem>>, vector<8x78xf32>
    tpu.vector_store %arg7[%c48, %c0_21], %19 {strides = array<i32>} : memref<72x78xf32, #tpu.memory_space<vmem>>, vector<8x78xf32>,
    %c0_22 = arith.constant 0 : index
    %c0_23 = arith.constant 0 : index
    %c21 = arith.constant 21 : index
    %21 = vector.load %arg1[%c0_22, %c0_23, %c21] : memref<1x8x100xf32, #tpu.memory_space<vmem>>, vector<1x8x78xf32>
    %22 = vector.shape_cast %21 : vector<1x8x78xf32> to vector<8x78xf32>
    %c56 = arith.constant 56 : index
    %c0_24 = arith.constant 0 : index
    %23 = vector.load %arg7[%c56, %c0_24] : memref<72x78xf32, #tpu.memory_space<vmem>>, vector<8x78xf32>
    tpu.vector_store %arg7[%c56, %c0_24], %22 {strides = array<i32>} : memref<72x78xf32, #tpu.memory_space<vmem>>, vector<8x78xf32>,
    %c0_25 = arith.constant 0 : index
    %c0_26 = arith.constant 0 : index
    %c22 = arith.constant 22 : index
    %24 = vector.load %arg1[%c0_25, %c0_26, %c22] : memref<1x8x100xf32, #tpu.memory_space<vmem>>, vector<1x8x78xf32>
    %25 = vector.shape_cast %24 : vector<1x8x78xf32> to vector<8x78xf32>
    %c64 = arith.constant 64 : index
    %c0_27 = arith.constant 0 : index
    %26 = vector.load %arg7[%c64, %c0_27] : memref<72x78xf32, #tpu.memory_space<vmem>>, vector<8x78xf32>
    tpu.vector_store %arg7[%c64, %c0_27], %25 {strides = array<i32>} : memref<72x78xf32, #tpu.memory_space<vmem>>, vector<8x78xf32>,
    %c0_28 = arith.constant 0 : index
    %c0_29 = arith.constant 0 : index
    %27 = vector.load %arg7[%c0_28, %c0_29] : memref<72x78xf32, #tpu.memory_space<vmem>>, vector<72x78xf32>
    %28 = arith.truncf %27 : vector<72x78xf32> to vector<72x78xbf16>
    %c0_30 = arith.constant 0 : index
    %c0_31 = arith.constant 0 : index
    %29 = vector.load %arg2[%c0_30, %c0_31] : memref<8x72xbf16, #tpu.memory_space<vmem>>, vector<8x72xbf16>
    %cst = arith.constant dense<0.000000e+00> : vector<8x78xf32>
    %30 = tpu.matmul %29, %28, %cst {dimension_numbers = #tpu.dot_dimension_numbers<[1], [0], [0], [1], [0, 0, 1, 1], [], []>} : vector<8x72xbf16>, vector<72x78xbf16>, vector<8x78xf32> -> vector<8x78xf32>
    %c0_32 = arith.constant 0 : index
    %c0_33 = arith.constant 0 : index
    %31 = vector.load %arg3[%c0_32, %c0_33] : memref<8x1xf32, #tpu.memory_space<vmem>>, vector<8x1xf32>
    %32 = vector.broadcast %31 : vector<8x1xf32> to vector<8x78xf32>
    %33 = arith.addf %30, %32 : vector<8x78xf32>
    %cst_34 = arith.constant 0.000000e+00 : f32
    %34 = vector.broadcast %cst_34 : f32 to vector<8x78xf32>
    %35 = arith.maximumf %33, %34 : vector<8x78xf32>
    %c0_35 = arith.constant 0 : index
    %c0_36 = arith.constant 0 : index
    %36 = vector.load %arg4[%c0_35, %c0_36] : memref<8x1xf32, #tpu.memory_space<vmem>>, vector<8x1xf32>
    %37 = vector.broadcast %36 : vector<8x1xf32> to vector<8x78xf32>
    %38 = arith.mulf %35, %37 : vector<8x78xf32>
    %c0_37 = arith.constant 0 : index
    %c0_38 = arith.constant 0 : index
    %39 = vector.load %arg5[%c0_37, %c0_38] : memref<8x1xf32, #tpu.memory_space<vmem>>, vector<8x1xf32>
    %40 = vector.broadcast %39 : vector<8x1xf32> to vector<8x78xf32>
    %41 = arith.addf %38, %40 : vector<8x78xf32>
    %c0_39 = arith.constant 0 : index
    %c0_40 = arith.constant 0 : index
    %c0_41 = arith.constant 0 : index
    %42 = vector.load %arg6[%c0_39, %c0_40, %c0_41] : memref<1x8x78xf32, #tpu.memory_space<vmem>>, vector<1x8x78xf32>
    %43 = vector.shape_cast %42 : vector<1x8x78xf32> to vector<8x78xf32>
    %44 = vector.shape_cast %41 : vector<8x78xf32> to vector<1x8x78xf32>
    tpu.vector_store %arg6[%c0_39, %c0_40, %c0_41], %44 {strides = array<i32>} : memref<1x8x78xf32, #tpu.memory_space<vmem>>, vector<1x8x78xf32>,
    return
  }
  func.func @transform_0(%arg0: i32) -> (i32, i32, i32) {
    %c0_i32 = arith.constant 0 : i32
    %c0_i32_0 = arith.constant 0 : i32
    %c0_i32_1 = arith.constant 0 : i32
    return %arg0, %c0_i32, %c0_i32_0 : i32, i32, i32
  }
  func.func @transform_1(%arg0: i32) -> (i32, i32) {
    %c0_i32 = arith.constant 0 : i32
    %c0_i32_0 = arith.constant 0 : i32
    %c0_i32_1 = arith.constant 0 : i32
    return %c0_i32, %c0_i32_0 : i32, i32
  }
  func.func @transform_2(%arg0: i32) -> (i32, i32) {
    %c0_i32 = arith.constant 0 : i32
    %c0_i32_0 = arith.constant 0 : i32
    %c0_i32_1 = arith.constant 0 : i32
    return %c0_i32, %c0_i32_0 : i32, i32
  }
  func.func @transform_3(%arg0: i32) -> (i32, i32) {
    %c0_i32 = arith.constant 0 : i32
    %c0_i32_0 = arith.constant 0 : i32
    %c0_i32_1 = arith.constant 0 : i32
    return %c0_i32, %c0_i32_0 : i32, i32
  }
  func.func @transform_4(%arg0: i32) -> (i32, i32) {
    %c0_i32 = arith.constant 0 : i32
    %c0_i32_0 = arith.constant 0 : i32
    %c0_i32_1 = arith.constant 0 : i32
    return %c0_i32, %c0_i32_0 : i32, i32
  }
  func.func @transform_5(%arg0: i32) -> (i32, i32, i32) {
    %c0_i32 = arith.constant 0 : i32
    %c0_i32_0 = arith.constant 0 : i32
    %c0_i32_1 = arith.constant 0 : i32
    return %arg0, %c0_i32, %c0_i32_0 : i32, i32, i32
  }
}

module attributes {stable_mosaic.version = 11 : i64} {
  func.func @kernel(%arg0: i32, %arg1: memref<1x8x36xf32, #tpu.memory_space<vmem>>, %arg2: memref<8x72xbf16, #tpu.memory_space<vmem>>, %arg3: memref<8x1xf32, #tpu.memory_space<vmem>>, %arg4: memref<1x8x22xf32, #tpu.memory_space<vmem>>, %arg5: memref<72x22xf32, #tpu.memory_space<vmem>>) attributes {dimension_semantics = [#tpu.dimension_semantics<parallel>], iteration_bounds = array<i64: 2>, scalar_prefetch = 0 : i64, scratch_operands = 1 : i64, tpu.core_type = #tpu.core_type<tc>, window_params = [{transform_indices = @transform_0, window_bounds = array<i64: 1, 8, 36>}, {pipeline_mode = #tpu.pipeline_mode<synchronous>, transform_indices = @transform_1, window_bounds = array<i64: 8, 72>}, {pipeline_mode = #tpu.pipeline_mode<synchronous>, transform_indices = @transform_2, window_bounds = array<i64: 8, 1>}, {transform_indices = @transform_3, window_bounds = array<i64: 1, 8, 22>}]} {
    %c0 = arith.constant 0 : index
    %c0_0 = arith.constant 0 : index
    %c0_1 = arith.constant 0 : index
    %0 = vector.load %arg1[%c0, %c0_0, %c0_1] : memref<1x8x36xf32, #tpu.memory_space<vmem>>, vector<1x8x22xf32>
    %1 = vector.shape_cast %0 : vector<1x8x22xf32> to vector<8x22xf32>
    %c0_2 = arith.constant 0 : index
    %c0_3 = arith.constant 0 : index
    %2 = vector.load %arg5[%c0_2, %c0_3] : memref<72x22xf32, #tpu.memory_space<vmem>>, vector<8x22xf32>
    tpu.vector_store %arg5[%c0_2, %c0_3], %1 {strides = array<i32>} : memref<72x22xf32, #tpu.memory_space<vmem>>, vector<8x22xf32>,
    %c0_4 = arith.constant 0 : index
    %c0_5 = arith.constant 0 : index
    %c1 = arith.constant 1 : index
    %3 = vector.load %arg1[%c0_4, %c0_5, %c1] : memref<1x8x36xf32, #tpu.memory_space<vmem>>, vector<1x8x22xf32>
    %4 = vector.shape_cast %3 : vector<1x8x22xf32> to vector<8x22xf32>
    %c8 = arith.constant 8 : index
    %c0_6 = arith.constant 0 : index
    %5 = vector.load %arg5[%c8, %c0_6] : memref<72x22xf32, #tpu.memory_space<vmem>>, vector<8x22xf32>
    tpu.vector_store %arg5[%c8, %c0_6], %4 {strides = array<i32>} : memref<72x22xf32, #tpu.memory_space<vmem>>, vector<8x22xf32>,
    %c0_7 = arith.constant 0 : index
    %c0_8 = arith.constant 0 : index
    %c2 = arith.constant 2 : index
    %6 = vector.load %arg1[%c0_7, %c0_8, %c2] : memref<1x8x36xf32, #tpu.memory_space<vmem>>, vector<1x8x22xf32>
    %7 = vector.shape_cast %6 : vector<1x8x22xf32> to vector<8x22xf32>
    %c16 = arith.constant 16 : index
    %c0_9 = arith.constant 0 : index
    %8 = vector.load %arg5[%c16, %c0_9] : memref<72x22xf32, #tpu.memory_space<vmem>>, vector<8x22xf32>
    tpu.vector_store %arg5[%c16, %c0_9], %7 {strides = array<i32>} : memref<72x22xf32, #tpu.memory_space<vmem>>, vector<8x22xf32>,
    %c0_10 = arith.constant 0 : index
    %c0_11 = arith.constant 0 : index
    %c6 = arith.constant 6 : index
    %9 = vector.load %arg1[%c0_10, %c0_11, %c6] : memref<1x8x36xf32, #tpu.memory_space<vmem>>, vector<1x8x22xf32>
    %10 = vector.shape_cast %9 : vector<1x8x22xf32> to vector<8x22xf32>
    %c24 = arith.constant 24 : index
    %c0_12 = arith.constant 0 : index
    %11 = vector.load %arg5[%c24, %c0_12] : memref<72x22xf32, #tpu.memory_space<vmem>>, vector<8x22xf32>
    tpu.vector_store %arg5[%c24, %c0_12], %10 {strides = array<i32>} : memref<72x22xf32, #tpu.memory_space<vmem>>, vector<8x22xf32>,
    %c0_13 = arith.constant 0 : index
    %c0_14 = arith.constant 0 : index
    %c7 = arith.constant 7 : index
    %12 = vector.load %arg1[%c0_13, %c0_14, %c7] : memref<1x8x36xf32, #tpu.memory_space<vmem>>, vector<1x8x22xf32>
    %13 = vector.shape_cast %12 : vector<1x8x22xf32> to vector<8x22xf32>
    %c32 = arith.constant 32 : index
    %c0_15 = arith.constant 0 : index
    %14 = vector.load %arg5[%c32, %c0_15] : memref<72x22xf32, #tpu.memory_space<vmem>>, vector<8x22xf32>
    tpu.vector_store %arg5[%c32, %c0_15], %13 {strides = array<i32>} : memref<72x22xf32, #tpu.memory_space<vmem>>, vector<8x22xf32>,
    %c0_16 = arith.constant 0 : index
    %c0_17 = arith.constant 0 : index
    %c8_18 = arith.constant 8 : index
    %15 = vector.load %arg1[%c0_16, %c0_17, %c8_18] : memref<1x8x36xf32, #tpu.memory_space<vmem>>, vector<1x8x22xf32>
    %16 = vector.shape_cast %15 : vector<1x8x22xf32> to vector<8x22xf32>
    %c40 = arith.constant 40 : index
    %c0_19 = arith.constant 0 : index
    %17 = vector.load %arg5[%c40, %c0_19] : memref<72x22xf32, #tpu.memory_space<vmem>>, vector<8x22xf32>
    tpu.vector_store %arg5[%c40, %c0_19], %16 {strides = array<i32>} : memref<72x22xf32, #tpu.memory_space<vmem>>, vector<8x22xf32>,
    %c0_20 = arith.constant 0 : index
    %c0_21 = arith.constant 0 : index
    %c12 = arith.constant 12 : index
    %18 = vector.load %arg1[%c0_20, %c0_21, %c12] : memref<1x8x36xf32, #tpu.memory_space<vmem>>, vector<1x8x22xf32>
    %19 = vector.shape_cast %18 : vector<1x8x22xf32> to vector<8x22xf32>
    %c48 = arith.constant 48 : index
    %c0_22 = arith.constant 0 : index
    %20 = vector.load %arg5[%c48, %c0_22] : memref<72x22xf32, #tpu.memory_space<vmem>>, vector<8x22xf32>
    tpu.vector_store %arg5[%c48, %c0_22], %19 {strides = array<i32>} : memref<72x22xf32, #tpu.memory_space<vmem>>, vector<8x22xf32>,
    %c0_23 = arith.constant 0 : index
    %c0_24 = arith.constant 0 : index
    %c13 = arith.constant 13 : index
    %21 = vector.load %arg1[%c0_23, %c0_24, %c13] : memref<1x8x36xf32, #tpu.memory_space<vmem>>, vector<1x8x22xf32>
    %22 = vector.shape_cast %21 : vector<1x8x22xf32> to vector<8x22xf32>
    %c56 = arith.constant 56 : index
    %c0_25 = arith.constant 0 : index
    %23 = vector.load %arg5[%c56, %c0_25] : memref<72x22xf32, #tpu.memory_space<vmem>>, vector<8x22xf32>
    tpu.vector_store %arg5[%c56, %c0_25], %22 {strides = array<i32>} : memref<72x22xf32, #tpu.memory_space<vmem>>, vector<8x22xf32>,
    %c0_26 = arith.constant 0 : index
    %c0_27 = arith.constant 0 : index
    %c14 = arith.constant 14 : index
    %24 = vector.load %arg1[%c0_26, %c0_27, %c14] : memref<1x8x36xf32, #tpu.memory_space<vmem>>, vector<1x8x22xf32>
    %25 = vector.shape_cast %24 : vector<1x8x22xf32> to vector<8x22xf32>
    %c64 = arith.constant 64 : index
    %c0_28 = arith.constant 0 : index
    %26 = vector.load %arg5[%c64, %c0_28] : memref<72x22xf32, #tpu.memory_space<vmem>>, vector<8x22xf32>
    tpu.vector_store %arg5[%c64, %c0_28], %25 {strides = array<i32>} : memref<72x22xf32, #tpu.memory_space<vmem>>, vector<8x22xf32>,
    %c0_29 = arith.constant 0 : index
    %c0_30 = arith.constant 0 : index
    %27 = vector.load %arg5[%c0_29, %c0_30] : memref<72x22xf32, #tpu.memory_space<vmem>>, vector<72x22xf32>
    %28 = arith.truncf %27 : vector<72x22xf32> to vector<72x22xbf16>
    %c0_31 = arith.constant 0 : index
    %c0_32 = arith.constant 0 : index
    %29 = vector.load %arg2[%c0_31, %c0_32] : memref<8x72xbf16, #tpu.memory_space<vmem>>, vector<8x72xbf16>
    %cst = arith.constant dense<0.000000e+00> : vector<8x22xf32>
    %30 = tpu.matmul %29, %28, %cst {dimension_numbers = #tpu.dot_dimension_numbers<[1], [0], [0], [1], [0, 0, 1, 1], [], []>} : vector<8x72xbf16>, vector<72x22xbf16>, vector<8x22xf32> -> vector<8x22xf32>
    %c0_33 = arith.constant 0 : index
    %c0_34 = arith.constant 0 : index
    %31 = vector.load %arg3[%c0_33, %c0_34] : memref<8x1xf32, #tpu.memory_space<vmem>>, vector<8x1xf32>
    %32 = vector.broadcast %31 : vector<8x1xf32> to vector<8x22xf32>
    %33 = arith.addf %30, %32 : vector<8x22xf32>
    %cst_35 = arith.constant 0.000000e+00 : f32
    %34 = vector.broadcast %cst_35 : f32 to vector<8x22xf32>
    %35 = arith.maximumf %33, %34 : vector<8x22xf32>
    %c0_36 = arith.constant 0 : index
    %c0_37 = arith.constant 0 : index
    %c0_38 = arith.constant 0 : index
    %36 = vector.load %arg4[%c0_36, %c0_37, %c0_38] : memref<1x8x22xf32, #tpu.memory_space<vmem>>, vector<1x8x22xf32>
    %37 = vector.shape_cast %36 : vector<1x8x22xf32> to vector<8x22xf32>
    %38 = vector.shape_cast %35 : vector<8x22xf32> to vector<1x8x22xf32>
    tpu.vector_store %arg4[%c0_36, %c0_37, %c0_38], %38 {strides = array<i32>} : memref<1x8x22xf32, #tpu.memory_space<vmem>>, vector<1x8x22xf32>,
    return
  }
  func.func @transform_0(%arg0: i32) -> (i32, i32, i32) {
    %c0_i32 = arith.constant 0 : i32
    %c0_i32_0 = arith.constant 0 : i32
    %c0_i32_1 = arith.constant 0 : i32
    return %arg0, %c0_i32, %c0_i32_0 : i32, i32, i32
  }
  func.func @transform_1(%arg0: i32) -> (i32, i32) {
    %c0_i32 = arith.constant 0 : i32
    %c0_i32_0 = arith.constant 0 : i32
    %c0_i32_1 = arith.constant 0 : i32
    return %c0_i32, %c0_i32_0 : i32, i32
  }
  func.func @transform_2(%arg0: i32) -> (i32, i32) {
    %c0_i32 = arith.constant 0 : i32
    %c0_i32_0 = arith.constant 0 : i32
    %c0_i32_1 = arith.constant 0 : i32
    return %c0_i32, %c0_i32_0 : i32, i32
  }
  func.func @transform_3(%arg0: i32) -> (i32, i32, i32) {
    %c0_i32 = arith.constant 0 : i32
    %c0_i32_0 = arith.constant 0 : i32
    %c0_i32_1 = arith.constant 0 : i32
    return %arg0, %c0_i32, %c0_i32_0 : i32, i32, i32
  }
}

module attributes {stable_mosaic.version = 11 : i64} {
  func.func @kernel(%arg0: i32, %arg1: memref<1x8x25xf32, #tpu.memory_space<vmem>>, %arg2: memref<32x32xbf16, #tpu.memory_space<vmem>>, %arg3: memref<32x1xf32, #tpu.memory_space<vmem>>, %arg4: memref<1x32x19xf32, #tpu.memory_space<vmem>>, %arg5: memref<32x19xf32, #tpu.memory_space<vmem>>) attributes {dimension_semantics = [#tpu.dimension_semantics<parallel>], iteration_bounds = array<i64: 2>, scalar_prefetch = 0 : i64, scratch_operands = 1 : i64, tpu.core_type = #tpu.core_type<tc>, window_params = [{transform_indices = @transform_0, window_bounds = array<i64: 1, 8, 25>}, {pipeline_mode = #tpu.pipeline_mode<synchronous>, transform_indices = @transform_1, window_bounds = array<i64: 32, 32>}, {pipeline_mode = #tpu.pipeline_mode<synchronous>, transform_indices = @transform_2, window_bounds = array<i64: 32, 1>}, {transform_indices = @transform_3, window_bounds = array<i64: 1, 32, 19>}]} {
    %c0 = arith.constant 0 : index
    %c0_0 = arith.constant 0 : index
    %c0_1 = arith.constant 0 : index
    %0 = vector.load %arg1[%c0, %c0_0, %c0_1] : memref<1x8x25xf32, #tpu.memory_space<vmem>>, vector<1x8x19xf32>
    %1 = vector.shape_cast %0 : vector<1x8x19xf32> to vector<8x19xf32>
    %c0_2 = arith.constant 0 : index
    %c0_3 = arith.constant 0 : index
    %2 = vector.load %arg5[%c0_2, %c0_3] : memref<32x19xf32, #tpu.memory_space<vmem>>, vector<8x19xf32>
    tpu.vector_store %arg5[%c0_2, %c0_3], %1 {strides = array<i32>} : memref<32x19xf32, #tpu.memory_space<vmem>>, vector<8x19xf32>,
    %c0_4 = arith.constant 0 : index
    %c0_5 = arith.constant 0 : index
    %c1 = arith.constant 1 : index
    %3 = vector.load %arg1[%c0_4, %c0_5, %c1] : memref<1x8x25xf32, #tpu.memory_space<vmem>>, vector<1x8x19xf32>
    %4 = vector.shape_cast %3 : vector<1x8x19xf32> to vector<8x19xf32>
    %c8 = arith.constant 8 : index
    %c0_6 = arith.constant 0 : index
    %5 = vector.load %arg5[%c8, %c0_6] : memref<32x19xf32, #tpu.memory_space<vmem>>, vector<8x19xf32>
    tpu.vector_store %arg5[%c8, %c0_6], %4 {strides = array<i32>} : memref<32x19xf32, #tpu.memory_space<vmem>>, vector<8x19xf32>,
    %c0_7 = arith.constant 0 : index
    %c0_8 = arith.constant 0 : index
    %c5 = arith.constant 5 : index
    %6 = vector.load %arg1[%c0_7, %c0_8, %c5] : memref<1x8x25xf32, #tpu.memory_space<vmem>>, vector<1x8x19xf32>
    %7 = vector.shape_cast %6 : vector<1x8x19xf32> to vector<8x19xf32>
    %c16 = arith.constant 16 : index
    %c0_9 = arith.constant 0 : index
    %8 = vector.load %arg5[%c16, %c0_9] : memref<32x19xf32, #tpu.memory_space<vmem>>, vector<8x19xf32>
    tpu.vector_store %arg5[%c16, %c0_9], %7 {strides = array<i32>} : memref<32x19xf32, #tpu.memory_space<vmem>>, vector<8x19xf32>,
    %c0_10 = arith.constant 0 : index
    %c0_11 = arith.constant 0 : index
    %c6 = arith.constant 6 : index
    %9 = vector.load %arg1[%c0_10, %c0_11, %c6] : memref<1x8x25xf32, #tpu.memory_space<vmem>>, vector<1x8x19xf32>
    %10 = vector.shape_cast %9 : vector<1x8x19xf32> to vector<8x19xf32>
    %c24 = arith.constant 24 : index
    %c0_12 = arith.constant 0 : index
    %11 = vector.load %arg5[%c24, %c0_12] : memref<32x19xf32, #tpu.memory_space<vmem>>, vector<8x19xf32>
    tpu.vector_store %arg5[%c24, %c0_12], %10 {strides = array<i32>} : memref<32x19xf32, #tpu.memory_space<vmem>>, vector<8x19xf32>,
    %c0_13 = arith.constant 0 : index
    %c0_14 = arith.constant 0 : index
    %12 = vector.load %arg5[%c0_13, %c0_14] : memref<32x19xf32, #tpu.memory_space<vmem>>, vector<32x19xf32>
    %13 = arith.truncf %12 : vector<32x19xf32> to vector<32x19xbf16>
    %c0_15 = arith.constant 0 : index
    %c0_16 = arith.constant 0 : index
    %14 = vector.load %arg2[%c0_15, %c0_16] : memref<32x32xbf16, #tpu.memory_space<vmem>>, vector<32x32xbf16>
    %cst = arith.constant dense<0.000000e+00> : vector<32x19xf32>
    %15 = tpu.matmul %14, %13, %cst {dimension_numbers = #tpu.dot_dimension_numbers<[1], [0], [0], [1], [0, 0, 1, 1], [], []>} : vector<32x32xbf16>, vector<32x19xbf16>, vector<32x19xf32> -> vector<32x19xf32>
    %c0_17 = arith.constant 0 : index
    %c0_18 = arith.constant 0 : index
    %16 = vector.load %arg3[%c0_17, %c0_18] : memref<32x1xf32, #tpu.memory_space<vmem>>, vector<32x1xf32>
    %17 = vector.broadcast %16 : vector<32x1xf32> to vector<32x19xf32>
    %18 = arith.addf %15, %17 : vector<32x19xf32>
    %c0_19 = arith.constant 0 : index
    %c0_20 = arith.constant 0 : index
    %c0_21 = arith.constant 0 : index
    %19 = vector.load %arg4[%c0_19, %c0_20, %c0_21] : memref<1x32x19xf32, #tpu.memory_space<vmem>>, vector<1x32x19xf32>
    %20 = vector.shape_cast %19 : vector<1x32x19xf32> to vector<32x19xf32>
    %21 = vector.shape_cast %18 : vector<32x19xf32> to vector<1x32x19xf32>
    tpu.vector_store %arg4[%c0_19, %c0_20, %c0_21], %21 {strides = array<i32>} : memref<1x32x19xf32, #tpu.memory_space<vmem>>, vector<1x32x19xf32>,
    return
  }
  func.func @transform_0(%arg0: i32) -> (i32, i32, i32) {
    %c0_i32 = arith.constant 0 : i32
    %c0_i32_0 = arith.constant 0 : i32
    %c0_i32_1 = arith.constant 0 : i32
    return %arg0, %c0_i32, %c0_i32_0 : i32, i32, i32
  }
  func.func @transform_1(%arg0: i32) -> (i32, i32) {
    %c0_i32 = arith.constant 0 : i32
    %c0_i32_0 = arith.constant 0 : i32
    %c0_i32_1 = arith.constant 0 : i32
    return %c0_i32, %c0_i32_0 : i32, i32
  }
  func.func @transform_2(%arg0: i32) -> (i32, i32) {
    %c0_i32 = arith.constant 0 : i32
    %c0_i32_0 = arith.constant 0 : i32
    %c0_i32_1 = arith.constant 0 : i32
    return %c0_i32, %c0_i32_0 : i32, i32
  }
  func.func @transform_3(%arg0: i32) -> (i32, i32, i32) {
    %c0_i32 = arith.constant 0 : i32
    %c0_i32_0 = arith.constant 0 : i32
    %c0_i32_1 = arith.constant 0 : i32
    return %arg0, %c0_i32, %c0_i32_0 : i32, i32, i32
  }
}

module attributes {stable_mosaic.version = 11 : i64} {
  func.func @kernel(%arg0: i32, %arg1: memref<1x8x100xf32, #tpu.memory_space<vmem>>, %arg2: memref<8x72xbf16, #tpu.memory_space<vmem>>, %arg3: memref<8x1xf32, #tpu.memory_space<vmem>>, %arg4: memref<1x8x78xf32, #tpu.memory_space<vmem>>, %arg5: memref<72x78xf32, #tpu.memory_space<vmem>>) attributes {dimension_semantics = [#tpu.dimension_semantics<parallel>], iteration_bounds = array<i64: 2>, scalar_prefetch = 0 : i64, scratch_operands = 1 : i64, tpu.core_type = #tpu.core_type<tc>, window_params = [{transform_indices = @transform_0, window_bounds = array<i64: 1, 8, 100>}, {pipeline_mode = #tpu.pipeline_mode<synchronous>, transform_indices = @transform_1, window_bounds = array<i64: 8, 72>}, {pipeline_mode = #tpu.pipeline_mode<synchronous>, transform_indices = @transform_2, window_bounds = array<i64: 8, 1>}, {transform_indices = @transform_3, window_bounds = array<i64: 1, 8, 78>}]} {
    %c0 = arith.constant 0 : index
    %c0_0 = arith.constant 0 : index
    %c0_1 = arith.constant 0 : index
    %0 = vector.load %arg1[%c0, %c0_0, %c0_1] : memref<1x8x100xf32, #tpu.memory_space<vmem>>, vector<1x8x78xf32>
    %1 = vector.shape_cast %0 : vector<1x8x78xf32> to vector<8x78xf32>
    %c0_2 = arith.constant 0 : index
    %c0_3 = arith.constant 0 : index
    %2 = vector.load %arg5[%c0_2, %c0_3] : memref<72x78xf32, #tpu.memory_space<vmem>>, vector<8x78xf32>
    tpu.vector_store %arg5[%c0_2, %c0_3], %1 {strides = array<i32>} : memref<72x78xf32, #tpu.memory_space<vmem>>, vector<8x78xf32>,
    %c0_4 = arith.constant 0 : index
    %c0_5 = arith.constant 0 : index
    %c1 = arith.constant 1 : index
    %3 = vector.load %arg1[%c0_4, %c0_5, %c1] : memref<1x8x100xf32, #tpu.memory_space<vmem>>, vector<1x8x78xf32>
    %4 = vector.shape_cast %3 : vector<1x8x78xf32> to vector<8x78xf32>
    %c8 = arith.constant 8 : index
    %c0_6 = arith.constant 0 : index
    %5 = vector.load %arg5[%c8, %c0_6] : memref<72x78xf32, #tpu.memory_space<vmem>>, vector<8x78xf32>
    tpu.vector_store %arg5[%c8, %c0_6], %4 {strides = array<i32>} : memref<72x78xf32, #tpu.memory_space<vmem>>, vector<8x78xf32>,
    %c0_7 = arith.constant 0 : index
    %c0_8 = arith.constant 0 : index
    %c2 = arith.constant 2 : index
    %6 = vector.load %arg1[%c0_7, %c0_8, %c2] : memref<1x8x100xf32, #tpu.memory_space<vmem>>, vector<1x8x78xf32>
    %7 = vector.shape_cast %6 : vector<1x8x78xf32> to vector<8x78xf32>
    %c16 = arith.constant 16 : index
    %c0_9 = arith.constant 0 : index
    %8 = vector.load %arg5[%c16, %c0_9] : memref<72x78xf32, #tpu.memory_space<vmem>>, vector<8x78xf32>
    tpu.vector_store %arg5[%c16, %c0_9], %7 {strides = array<i32>} : memref<72x78xf32, #tpu.memory_space<vmem>>, vector<8x78xf32>,
    %c0_10 = arith.constant 0 : index
    %c0_11 = arith.constant 0 : index
    %c10 = arith.constant 10 : index
    %9 = vector.load %arg1[%c0_10, %c0_11, %c10] : memref<1x8x100xf32, #tpu.memory_space<vmem>>, vector<1x8x78xf32>
    %10 = vector.shape_cast %9 : vector<1x8x78xf32> to vector<8x78xf32>
    %c24 = arith.constant 24 : index
    %c0_12 = arith.constant 0 : index
    %11 = vector.load %arg5[%c24, %c0_12] : memref<72x78xf32, #tpu.memory_space<vmem>>, vector<8x78xf32>
    tpu.vector_store %arg5[%c24, %c0_12], %10 {strides = array<i32>} : memref<72x78xf32, #tpu.memory_space<vmem>>, vector<8x78xf32>,
    %c0_13 = arith.constant 0 : index
    %c0_14 = arith.constant 0 : index
    %c11 = arith.constant 11 : index
    %12 = vector.load %arg1[%c0_13, %c0_14, %c11] : memref<1x8x100xf32, #tpu.memory_space<vmem>>, vector<1x8x78xf32>
    %13 = vector.shape_cast %12 : vector<1x8x78xf32> to vector<8x78xf32>
    %c32 = arith.constant 32 : index
    %c0_15 = arith.constant 0 : index
    %14 = vector.load %arg5[%c32, %c0_15] : memref<72x78xf32, #tpu.memory_space<vmem>>, vector<8x78xf32>
    tpu.vector_store %arg5[%c32, %c0_15], %13 {strides = array<i32>} : memref<72x78xf32, #tpu.memory_space<vmem>>, vector<8x78xf32>,
    %c0_16 = arith.constant 0 : index
    %c0_17 = arith.constant 0 : index
    %c12 = arith.constant 12 : index
    %15 = vector.load %arg1[%c0_16, %c0_17, %c12] : memref<1x8x100xf32, #tpu.memory_space<vmem>>, vector<1x8x78xf32>
    %16 = vector.shape_cast %15 : vector<1x8x78xf32> to vector<8x78xf32>
    %c40 = arith.constant 40 : index
    %c0_18 = arith.constant 0 : index
    %17 = vector.load %arg5[%c40, %c0_18] : memref<72x78xf32, #tpu.memory_space<vmem>>, vector<8x78xf32>
    tpu.vector_store %arg5[%c40, %c0_18], %16 {strides = array<i32>} : memref<72x78xf32, #tpu.memory_space<vmem>>, vector<8x78xf32>,
    %c0_19 = arith.constant 0 : index
    %c0_20 = arith.constant 0 : index
    %c20 = arith.constant 20 : index
    %18 = vector.load %arg1[%c0_19, %c0_20, %c20] : memref<1x8x100xf32, #tpu.memory_space<vmem>>, vector<1x8x78xf32>
    %19 = vector.shape_cast %18 : vector<1x8x78xf32> to vector<8x78xf32>
    %c48 = arith.constant 48 : index
    %c0_21 = arith.constant 0 : index
    %20 = vector.load %arg5[%c48, %c0_21] : memref<72x78xf32, #tpu.memory_space<vmem>>, vector<8x78xf32>
    tpu.vector_store %arg5[%c48, %c0_21], %19 {strides = array<i32>} : memref<72x78xf32, #tpu.memory_space<vmem>>, vector<8x78xf32>,
    %c0_22 = arith.constant 0 : index
    %c0_23 = arith.constant 0 : index
    %c21 = arith.constant 21 : index
    %21 = vector.load %arg1[%c0_22, %c0_23, %c21] : memref<1x8x100xf32, #tpu.memory_space<vmem>>, vector<1x8x78xf32>
    %22 = vector.shape_cast %21 : vector<1x8x78xf32> to vector<8x78xf32>
    %c56 = arith.constant 56 : index
    %c0_24 = arith.constant 0 : index
    %23 = vector.load %arg5[%c56, %c0_24] : memref<72x78xf32, #tpu.memory_space<vmem>>, vector<8x78xf32>
    tpu.vector_store %arg5[%c56, %c0_24], %22 {strides = array<i32>} : memref<72x78xf32, #tpu.memory_space<vmem>>, vector<8x78xf32>,
    %c0_25 = arith.constant 0 : index
    %c0_26 = arith.constant 0 : index
    %c22 = arith.constant 22 : index
    %24 = vector.load %arg1[%c0_25, %c0_26, %c22] : memref<1x8x100xf32, #tpu.memory_space<vmem>>, vector<1x8x78xf32>
    %25 = vector.shape_cast %24 : vector<1x8x78xf32> to vector<8x78xf32>
    %c64 = arith.constant 64 : index
    %c0_27 = arith.constant 0 : index
    %26 = vector.load %arg5[%c64, %c0_27] : memref<72x78xf32, #tpu.memory_space<vmem>>, vector<8x78xf32>
    tpu.vector_store %arg5[%c64, %c0_27], %25 {strides = array<i32>} : memref<72x78xf32, #tpu.memory_space<vmem>>, vector<8x78xf32>,
    %c0_28 = arith.constant 0 : index
    %c0_29 = arith.constant 0 : index
    %27 = vector.load %arg5[%c0_28, %c0_29] : memref<72x78xf32, #tpu.memory_space<vmem>>, vector<72x78xf32>
    %28 = arith.truncf %27 : vector<72x78xf32> to vector<72x78xbf16>
    %c0_30 = arith.constant 0 : index
    %c0_31 = arith.constant 0 : index
    %29 = vector.load %arg2[%c0_30, %c0_31] : memref<8x72xbf16, #tpu.memory_space<vmem>>, vector<8x72xbf16>
    %cst = arith.constant dense<0.000000e+00> : vector<8x78xf32>
    %30 = tpu.matmul %29, %28, %cst {dimension_numbers = #tpu.dot_dimension_numbers<[1], [0], [0], [1], [0, 0, 1, 1], [], []>} : vector<8x72xbf16>, vector<72x78xbf16>, vector<8x78xf32> -> vector<8x78xf32>
    %c0_32 = arith.constant 0 : index
    %c0_33 = arith.constant 0 : index
    %31 = vector.load %arg3[%c0_32, %c0_33] : memref<8x1xf32, #tpu.memory_space<vmem>>, vector<8x1xf32>
    %32 = vector.broadcast %31 : vector<8x1xf32> to vector<8x78xf32>
    %33 = arith.addf %30, %32 : vector<8x78xf32>
    %cst_34 = arith.constant 0.000000e+00 : f32
    %34 = vector.broadcast %cst_34 : f32 to vector<8x78xf32>
    %35 = arith.maximumf %33, %34 : vector<8x78xf32>
    %c0_35 = arith.constant 0 : index
    %c0_36 = arith.constant 0 : index
    %c0_37 = arith.constant 0 : index
    %36 = vector.load %arg4[%c0_35, %c0_36, %c0_37] : memref<1x8x78xf32, #tpu.memory_space<vmem>>, vector<1x8x78xf32>
    %37 = vector.shape_cast %36 : vector<1x8x78xf32> to vector<8x78xf32>
    %38 = vector.shape_cast %35 : vector<8x78xf32> to vector<1x8x78xf32>
    tpu.vector_store %arg4[%c0_35, %c0_36, %c0_37], %38 {strides = array<i32>} : memref<1x8x78xf32, #tpu.memory_space<vmem>>, vector<1x8x78xf32>,
    return
  }
  func.func @transform_0(%arg0: i32) -> (i32, i32, i32) {
    %c0_i32 = arith.constant 0 : i32
    %c0_i32_0 = arith.constant 0 : i32
    %c0_i32_1 = arith.constant 0 : i32
    return %arg0, %c0_i32, %c0_i32_0 : i32, i32, i32
  }
  func.func @transform_1(%arg0: i32) -> (i32, i32) {
    %c0_i32 = arith.constant 0 : i32
    %c0_i32_0 = arith.constant 0 : i32
    %c0_i32_1 = arith.constant 0 : i32
    return %c0_i32, %c0_i32_0 : i32, i32
  }
  func.func @transform_2(%arg0: i32) -> (i32, i32) {
    %c0_i32 = arith.constant 0 : i32
    %c0_i32_0 = arith.constant 0 : i32
    %c0_i32_1 = arith.constant 0 : i32
    return %c0_i32, %c0_i32_0 : i32, i32
  }
  func.func @transform_3(%arg0: i32) -> (i32, i32, i32) {
    %c0_i32 = arith.constant 0 : i32
    %c0_i32_0 = arith.constant 0 : i32
    %c0_i32_1 = arith.constant 0 : i32
    return %arg0, %c0_i32, %c0_i32_0 : i32, i32, i32
  }
}

module attributes {stable_mosaic.version = 11 : i64} {
  func.func @kernel(%arg0: i32, %arg1: memref<1x8x81xf32, #tpu.memory_space<vmem>>, %arg2: memref<32x32xbf16, #tpu.memory_space<vmem>>, %arg3: memref<32x1xf32, #tpu.memory_space<vmem>>, %arg4: memref<1x32x71xf32, #tpu.memory_space<vmem>>, %arg5: memref<32x71xf32, #tpu.memory_space<vmem>>) attributes {dimension_semantics = [#tpu.dimension_semantics<parallel>], iteration_bounds = array<i64: 2>, scalar_prefetch = 0 : i64, scratch_operands = 1 : i64, tpu.core_type = #tpu.core_type<tc>, window_params = [{transform_indices = @transform_0, window_bounds = array<i64: 1, 8, 81>}, {pipeline_mode = #tpu.pipeline_mode<synchronous>, transform_indices = @transform_1, window_bounds = array<i64: 32, 32>}, {pipeline_mode = #tpu.pipeline_mode<synchronous>, transform_indices = @transform_2, window_bounds = array<i64: 32, 1>}, {transform_indices = @transform_3, window_bounds = array<i64: 1, 32, 71>}]} {
    %c0 = arith.constant 0 : index
    %c0_0 = arith.constant 0 : index
    %c0_1 = arith.constant 0 : index
    %0 = vector.load %arg1[%c0, %c0_0, %c0_1] : memref<1x8x81xf32, #tpu.memory_space<vmem>>, vector<1x8x71xf32>
    %1 = vector.shape_cast %0 : vector<1x8x71xf32> to vector<8x71xf32>
    %c0_2 = arith.constant 0 : index
    %c0_3 = arith.constant 0 : index
    %2 = vector.load %arg5[%c0_2, %c0_3] : memref<32x71xf32, #tpu.memory_space<vmem>>, vector<8x71xf32>
    tpu.vector_store %arg5[%c0_2, %c0_3], %1 {strides = array<i32>} : memref<32x71xf32, #tpu.memory_space<vmem>>, vector<8x71xf32>,
    %c0_4 = arith.constant 0 : index
    %c0_5 = arith.constant 0 : index
    %c1 = arith.constant 1 : index
    %3 = vector.load %arg1[%c0_4, %c0_5, %c1] : memref<1x8x81xf32, #tpu.memory_space<vmem>>, vector<1x8x71xf32>
    %4 = vector.shape_cast %3 : vector<1x8x71xf32> to vector<8x71xf32>
    %c8 = arith.constant 8 : index
    %c0_6 = arith.constant 0 : index
    %5 = vector.load %arg5[%c8, %c0_6] : memref<32x71xf32, #tpu.memory_space<vmem>>, vector<8x71xf32>
    tpu.vector_store %arg5[%c8, %c0_6], %4 {strides = array<i32>} : memref<32x71xf32, #tpu.memory_space<vmem>>, vector<8x71xf32>,
    %c0_7 = arith.constant 0 : index
    %c0_8 = arith.constant 0 : index
    %c9 = arith.constant 9 : index
    %6 = vector.load %arg1[%c0_7, %c0_8, %c9] : memref<1x8x81xf32, #tpu.memory_space<vmem>>, vector<1x8x71xf32>
    %7 = vector.shape_cast %6 : vector<1x8x71xf32> to vector<8x71xf32>
    %c16 = arith.constant 16 : index
    %c0_9 = arith.constant 0 : index
    %8 = vector.load %arg5[%c16, %c0_9] : memref<32x71xf32, #tpu.memory_space<vmem>>, vector<8x71xf32>
    tpu.vector_store %arg5[%c16, %c0_9], %7 {strides = array<i32>} : memref<32x71xf32, #tpu.memory_space<vmem>>, vector<8x71xf32>,
    %c0_10 = arith.constant 0 : index
    %c0_11 = arith.constant 0 : index
    %c10 = arith.constant 10 : index
    %9 = vector.load %arg1[%c0_10, %c0_11, %c10] : memref<1x8x81xf32, #tpu.memory_space<vmem>>, vector<1x8x71xf32>
    %10 = vector.shape_cast %9 : vector<1x8x71xf32> to vector<8x71xf32>
    %c24 = arith.constant 24 : index
    %c0_12 = arith.constant 0 : index
    %11 = vector.load %arg5[%c24, %c0_12] : memref<32x71xf32, #tpu.memory_space<vmem>>, vector<8x71xf32>
    tpu.vector_store %arg5[%c24, %c0_12], %10 {strides = array<i32>} : memref<32x71xf32, #tpu.memory_space<vmem>>, vector<8x71xf32>,
    %c0_13 = arith.constant 0 : index
    %c0_14 = arith.constant 0 : index
    %12 = vector.load %arg5[%c0_13, %c0_14] : memref<32x71xf32, #tpu.memory_space<vmem>>, vector<32x71xf32>
    %13 = arith.truncf %12 : vector<32x71xf32> to vector<32x71xbf16>
    %c0_15 = arith.constant 0 : index
    %c0_16 = arith.constant 0 : index
    %14 = vector.load %arg2[%c0_15, %c0_16] : memref<32x32xbf16, #tpu.memory_space<vmem>>, vector<32x32xbf16>
    %cst = arith.constant dense<0.000000e+00> : vector<32x71xf32>
    %15 = tpu.matmul %14, %13, %cst {dimension_numbers = #tpu.dot_dimension_numbers<[1], [0], [0], [1], [0, 0, 1, 1], [], []>} : vector<32x32xbf16>, vector<32x71xbf16>, vector<32x71xf32> -> vector<32x71xf32>
    %c0_17 = arith.constant 0 : index
    %c0_18 = arith.constant 0 : index
    %16 = vector.load %arg3[%c0_17, %c0_18] : memref<32x1xf32, #tpu.memory_space<vmem>>, vector<32x1xf32>
    %17 = vector.broadcast %16 : vector<32x1xf32> to vector<32x71xf32>
    %18 = arith.addf %15, %17 : vector<32x71xf32>
    %c0_19 = arith.constant 0 : index
    %c0_20 = arith.constant 0 : index
    %c0_21 = arith.constant 0 : index
    %19 = vector.load %arg4[%c0_19, %c0_20, %c0_21] : memref<1x32x71xf32, #tpu.memory_space<vmem>>, vector<1x32x71xf32>
    %20 = vector.shape_cast %19 : vector<1x32x71xf32> to vector<32x71xf32>
    %21 = vector.shape_cast %18 : vector<32x71xf32> to vector<1x32x71xf32>
    tpu.vector_store %arg4[%c0_19, %c0_20, %c0_21], %21 {strides = array<i32>} : memref<1x32x71xf32, #tpu.memory_space<vmem>>, vector<1x32x71xf32>,
    return
  }
  func.func @transform_0(%arg0: i32) -> (i32, i32, i32) {
    %c0_i32 = arith.constant 0 : i32
    %c0_i32_0 = arith.constant 0 : i32
    %c0_i32_1 = arith.constant 0 : i32
    return %arg0, %c0_i32, %c0_i32_0 : i32, i32, i32
  }
  func.func @transform_1(%arg0: i32) -> (i32, i32) {
    %c0_i32 = arith.constant 0 : i32
    %c0_i32_0 = arith.constant 0 : i32
    %c0_i32_1 = arith.constant 0 : i32
    return %c0_i32, %c0_i32_0 : i32, i32
  }
  func.func @transform_2(%arg0: i32) -> (i32, i32) {
    %c0_i32 = arith.constant 0 : i32
    %c0_i32_0 = arith.constant 0 : i32
    %c0_i32_1 = arith.constant 0 : i32
    return %c0_i32, %c0_i32_0 : i32, i32
  }
  func.func @transform_3(%arg0: i32) -> (i32, i32, i32) {
    %c0_i32 = arith.constant 0 : i32
    %c0_i32_0 = arith.constant 0 : i32
    %c0_i32_1 = arith.constant 0 : i32
    return %arg0, %c0_i32, %c0_i32_0 : i32, i32, i32
  }
}

module attributes {stable_mosaic.version = 11 : i64} {
  func.func @kernel(%arg0: i32, %arg1: memref<1x8x256xf32, #tpu.memory_space<vmem>>, %arg2: memref<8x8xbf16, #tpu.memory_space<vmem>>, %arg3: memref<8x1xf32, #tpu.memory_space<vmem>>, %arg4: memref<1x8x256xf32, #tpu.memory_space<vmem>>, %arg5: memref<8x256xf32, #tpu.memory_space<vmem>>) attributes {dimension_semantics = [#tpu.dimension_semantics<parallel>], iteration_bounds = array<i64: 2>, scalar_prefetch = 0 : i64, scratch_operands = 1 : i64, tpu.core_type = #tpu.core_type<tc>, window_params = [{transform_indices = @transform_0, window_bounds = array<i64: 1, 8, 256>}, {pipeline_mode = #tpu.pipeline_mode<synchronous>, transform_indices = @transform_1, window_bounds = array<i64: 8, 8>}, {pipeline_mode = #tpu.pipeline_mode<synchronous>, transform_indices = @transform_2, window_bounds = array<i64: 8, 1>}, {transform_indices = @transform_3, window_bounds = array<i64: 1, 8, 256>}]} {
    %c0 = arith.constant 0 : index
    %c0_0 = arith.constant 0 : index
    %c0_1 = arith.constant 0 : index
    %0 = vector.load %arg1[%c0, %c0_0, %c0_1] : memref<1x8x256xf32, #tpu.memory_space<vmem>>, vector<1x8x256xf32>
    %1 = vector.shape_cast %0 : vector<1x8x256xf32> to vector<8x256xf32>
    %c0_2 = arith.constant 0 : index
    %c0_3 = arith.constant 0 : index
    %2 = vector.load %arg5[%c0_2, %c0_3] : memref<8x256xf32, #tpu.memory_space<vmem>>, vector<8x256xf32>
    tpu.vector_store %arg5[%c0_2, %c0_3], %1 {strides = array<i32>} : memref<8x256xf32, #tpu.memory_space<vmem>>, vector<8x256xf32>,
    %c0_4 = arith.constant 0 : index
    %c0_5 = arith.constant 0 : index
    %3 = vector.load %arg5[%c0_4, %c0_5] : memref<8x256xf32, #tpu.memory_space<vmem>>, vector<8x256xf32>
    %4 = arith.truncf %3 : vector<8x256xf32> to vector<8x256xbf16>
    %c0_6 = arith.constant 0 : index
    %c0_7 = arith.constant 0 : index
    %5 = vector.load %arg2[%c0_6, %c0_7] : memref<8x8xbf16, #tpu.memory_space<vmem>>, vector<8x8xbf16>
    %cst = arith.constant dense<0.000000e+00> : vector<8x256xf32>
    %6 = tpu.matmul %5, %4, %cst {dimension_numbers = #tpu.dot_dimension_numbers<[1], [0], [0], [1], [0, 0, 1, 1], [], []>} : vector<8x8xbf16>, vector<8x256xbf16>, vector<8x256xf32> -> vector<8x256xf32>
    %c0_8 = arith.constant 0 : index
    %c0_9 = arith.constant 0 : index
    %7 = vector.load %arg3[%c0_8, %c0_9] : memref<8x1xf32, #tpu.memory_space<vmem>>, vector<8x1xf32>
    %8 = vector.broadcast %7 : vector<8x1xf32> to vector<8x256xf32>
    %9 = arith.addf %6, %8 : vector<8x256xf32>
    %cst_10 = arith.constant 0.000000e+00 : f32
    %10 = vector.broadcast %cst_10 : f32 to vector<8x256xf32>
    %11 = arith.subf %10, %9 : vector<8x256xf32>
    %12 = math.exp %11 : vector<8x256xf32>
    %cst_11 = arith.constant 1.000000e+00 : f32
    %13 = vector.broadcast %cst_11 : f32 to vector<8x256xf32>
    %14 = arith.addf %13, %12 : vector<8x256xf32>
    %cst_12 = arith.constant 1.000000e+00 : f32
    %15 = vector.broadcast %cst_12 : f32 to vector<8x256xf32>
    %16 = arith.divf %15, %14 : vector<8x256xf32>
    %c0_13 = arith.constant 0 : index
    %c0_14 = arith.constant 0 : index
    %c0_15 = arith.constant 0 : index
    %17 = vector.load %arg4[%c0_13, %c0_14, %c0_15] : memref<1x8x256xf32, #tpu.memory_space<vmem>>, vector<1x8x256xf32>
    %18 = vector.shape_cast %17 : vector<1x8x256xf32> to vector<8x256xf32>
    %19 = vector.shape_cast %16 : vector<8x256xf32> to vector<1x8x256xf32>
    tpu.vector_store %arg4[%c0_13, %c0_14, %c0_15], %19 {strides = array<i32>} : memref<1x8x256xf32, #tpu.memory_space<vmem>>, vector<1x8x256xf32>,
    return
  }
  func.func @transform_0(%arg0: i32) -> (i32, i32, i32) {
    %c0_i32 = arith.constant 0 : i32
    %c0_i32_0 = arith.constant 0 : i32
    %c0_i32_1 = arith.constant 0 : i32
    return %arg0, %c0_i32, %c0_i32_0 : i32, i32, i32
  }
  func.func @transform_1(%arg0: i32) -> (i32, i32) {
    %c0_i32 = arith.constant 0 : i32
    %c0_i32_0 = arith.constant 0 : i32
    %c0_i32_1 = arith.constant 0 : i32
    return %c0_i32, %c0_i32_0 : i32, i32
  }
  func.func @transform_2(%arg0: i32) -> (i32, i32) {
    %c0_i32 = arith.constant 0 : i32
    %c0_i32_0 = arith.constant 0 : i32
    %c0_i32_1 = arith.constant 0 : i32
    return %c0_i32, %c0_i32_0 : i32, i32
  }
  func.func @transform_3(%arg0: i32) -> (i32, i32, i32) {
    %c0_i32 = arith.constant 0 : i32
    %c0_i32_0 = arith.constant 0 : i32
    %c0_i32_1 = arith.constant 0 : i32
    return %arg0, %c0_i32, %c0_i32_0 : i32, i32, i32
  }
}

</mosaic_0001>

<bundles_post_ra>
// kernel: tile.18
= control target key start
LH: loop header
LB: loop body
LE: loop exit
PB: predicated region body
PF: predicated region fallthrough
CT: control target
= control target key end

     0   :  { %s22_s0 = inlined_call_operand.vmem [shape: f32[8], index: 0, kind: input, shape index: {}]   ;;  %s23_s1 = inlined_call_operand.vmem [shape: f32[4,8], index: 1, kind: output, shape index: {}]  }
   0x1   :  { %v4_v0 = vld [vmem:[%s22_s0] ss:$0 sm:$0xff] }
   0x2   :  { %5 = vst [vmem:[%s23_s1] sm:$0xf] %v4_v0 }

// kernel: tile.1
= control target key start
LH: loop header
LB: loop body
LE: loop exit
PB: predicated region body
PF: predicated region fallthrough
CT: control target
= control target key end

     0   :  { %s66_s8 = smov 125   ;;  %vm7_vm0 = vcmask 7168   ;;  %s67_s11 = smov 126   ;;  %s117_s0 = inlined_call_operand.vmem [shape: f32[4,8], index: 0, kind: input, shape index: {}]   ;;  %s118_s1 = inlined_call_operand.vmem [shape: f32[32,1], index: 1, kind: output, shape index: {}]  }
   0x1   :  { %v4_v0 = vld [vmem:[%s117_s0] sm:$0xf]  ;;  %s65_s0 = smov 127   ;;  %s68_s12 = smov 124  }
   0x2   :  { %5 = vst [vmem:[#allocation0] sm:$0xf] %v4_v0  ;;  %s69_s13 = smov 123   ;;  %s70_s14 = smov 122  }
   0x3   :  { %s71_s15 = smov 121  }
   0x9   :  { %v9_v1 = vld [vmem:[#allocation0] sm:$0xf]  }
   0xa   :  { %v21_v2 = vld [vmem:[#allocation0] sm:$0xf]   ;;  %10 = vrot.lane.b32.xlu0 %v9_v1, %s65_s0 }
   0xb   :  { %22 = vrot.lane.b32.xlu1 %v21_v2, %s66_s8  ;;  %v15_v3 = vld [vmem:[#allocation0] sm:$0xf]  }
   0xc   :  { %v27_v4 = vld [vmem:[#allocation0] sm:$0xf]  }
   0xd   :  { %v6_v5 = vld [vmem:[#allocation0] sm:$0xf]  }
   0xe   :  { %8 = vst.msk [vmem:[%s118_s1] ss:$8 sm:$0xf] %vm7_vm0, %v6_v5   ;;  %16 = vrot.lane.b32.xlu0 %v15_v3, %s67_s11  ;;  %v33_v6 = vld [vmem:[#allocation0] sm:$0xf]  }
   0xf   :  { %28 = vrot.lane.b32.xlu1 %v27_v4, %s68_s12  ;;  %v39_v7 = vld [vmem:[#allocation0] sm:$0xf]  }
  0x10   :  { %v45_v8 = vld [vmem:[#allocation0] sm:$0xf]  }
  0x12   :  { %34 = vrot.lane.b32.xlu0 %v33_v6, %s69_s13 }
  0x13   :  { %40 = vrot.lane.b32.xlu1 %v39_v7, %s70_s14 }
  0x16   :  { %46 = vrot.lane.b32.xlu0 %v45_v8, %s71_s15 }
  0x7c   :  { %v11_v9 = vpop.permute.xlu0 %10  }
  0x7d   :  { %v23_v10 = vpop.permute.xlu1 %22   ;;  %51 = vst.msk [vmem:[%s118_s1 + $0x1] ss:$8 sm:$0xf] %vm7_vm0, %v11_v9  }
  0x7e   :  { %53 = vst.msk [vmem:[%s118_s1 + $0x3] ss:$8 sm:$0xf] %vm7_vm0, %v23_v10  }
  0x80   :  { %v17_v11 = vpop.permute.xlu0 %16  }
  0x81   :  { %v29_v12 = vpop.permute.xlu1 %28   ;;  %52 = vst.msk [vmem:[%s118_s1 + $0x2] ss:$8 sm:$0xf] %vm7_vm0, %v17_v11  }
  0x82   :  { %54 = vst.msk [vmem:[%s118_s1 + $0x4] ss:$8 sm:$0xf] %vm7_vm0, %v29_v12  }
  0x84   :  { %v35_v13 = vpop.permute.xlu0 %34  }
  0x85   :  { %v41_v14 = vpop.permute.xlu1 %40   ;;  %55 = vst.msk [vmem:[%s118_s1 + $0x5] ss:$8 sm:$0xf] %vm7_vm0, %v35_v13  }
  0x86   :  { %56 = vst.msk [vmem:[%s118_s1 + $0x6] ss:$8 sm:$0xf] %vm7_vm0, %v41_v14  }
  0x88   :  { %v47_v15 = vpop.permute.xlu0 %46  }
  0x89   :  { %57 = vst.msk [vmem:[%s118_s1 + $0x7] ss:$8 sm:$0xf] %vm7_vm0, %v47_v15  }

// kernel: audio_ae_forward.9
= control target key start
LH: loop header
LB: loop body
LE: loop exit
PB: predicated region body
PF: predicated region fallthrough
CT: control target
= control target key end

     0   :  { %s727_s18 = smov 0   ;;  %s807_s0 = inlined_call_operand.vmem [shape: f32[2,8,324], index: 0, kind: input, shape index: {}]   ;;  %s808_s1 = inlined_call_operand.vmem [shape: bf16[8,72], index: 1, kind: input, shape index: {}]   ;;  %s809_s2 = inlined_call_operand.vmem [shape: f32[8,1], index: 2, kind: input, shape index: {}]   ;;  %s810_s3 = inlined_call_operand.vmem [shape: f32[8,1], index: 3, kind: input, shape index: {}]   ;;  %s811_s4 = inlined_call_operand.vmem [shape: f32[8,1], index: 4, kind: input, shape index: {}]   ;;  %s812_s5 = inlined_call_operand.vmem [shape: f32[2,8,286], index: 5, kind: output, shape index: {}]  }
   0x1 LB: > { %s624_s19 = sadd.s32 4294967295, %s684_s18   ;;  %p628_p0 = scmp.ge.s32.totalorder %s684_s18, 1  ;;  %s684_s18 = sphi %s727_s18, %s15_s18  }
   0x2   : > { %p187_p1 = scmp.lt.s32.totalorder %s684_s18, 3 }
   0x4   : > { %p188_p2 = pnand %p628_p0, %p187_p1 }
   0x5   : > { %p215_p3 = scmp.lt.s32.totalorder (!%p188_p2), %s624_s19, 1  ;;  %vm231_vm0 = vcmask (!%p188_p2), 244736   ;;  %s686_s24 = smov (!%p188_p2), 127   ;;  %v687_v3 = vmov (!%p188_p2), 0.0   ;;  %v694_v4 = vmov (!%p188_p2), 0   ;;  %vm696_vm1 = vmmov (!%p188_p2), 0  }
   0x6   : > { %191 = sbr.rel (%p188_p2) target bundleno = 412 (0x19c), region = 40  ;;  %642 = vmatprep.subr.bf16.mxu1 (!%p188_p2), %v687_v3  ;;  %s688_s25 = smov (!%p188_p2), 126   ;;  %496 = vmatprep.mubr.bf16.mxu0 (!%p188_p2), %v694_v4  ;;  %v444_v5 = vld [vmem:[%s809_s2] sm:$0xff] (!%p188_p2)  ;;  %vm245_vm2 = vcmask (!%p188_p2), 1039360   ;;  %vm266_vm3 = vcmask (!%p188_p2), 1031168   ;;  %vm287_vm4 = vcmask (!%p188_p2), 900096  }
   0x7   : > { %s689_s26 = smov (!%p188_p2), 110   ;;  %s690_s27 = smov (!%p188_p2), 109   ;;  %677 = vset.pattern.permute.xlu1 (!%p188_p2), %v694_v4  ;;  %676 = vset.pattern.permute.xlu0 (!%p188_p2), %v694_v4  ;;  %v548_v6 = vld [vmem:[%s810_s3] sm:$0xff] (!%p188_p2)  ;;  %vm308_vm5 = vcmask (!%p188_p2), 891904   ;;  %vm329_vm6 = vcmask (!%p188_p2), 883712   ;;  %vm350_vm7 = vcmask (!%p188_p2), 752640  }
   0x8   : > { %s691_s28 = smov (!%p188_p2), 108   ;;  %s692_s29 = smov (!%p188_p2), 92   ;;  %652 = vmatprep.mubr.msk.bf16.mxu1 (!%p188_p2), %vm696_vm1, %v687_v3  ;;  %v557_v7 = vld [vmem:[%s811_s4] sm:$0xff] (!%p188_p2)  ;;  %vm371_vm8 = vcmask (!%p188_p2), 744448   ;;  %vm392_vm9 = vcmask (!%p188_p2), 736256   ;;  %vm454_vm10 = vcmask (!%p188_p2), 1043456  }
   0x9   : > { %s693_s30 = smov (!%p188_p2), 91   ;;  %s695_s6 = smov (!%p188_p2), 90   ;;  %vm450_vm11 = vcmask (!%p188_p2), 588800  }
   0xd   : > { %s814_s19 = smov (!%p215_p3, %s624_s19), 1 }
   0xe   : > { %s656_s20 = smul.u32 24, %s814_s19 }
  0x10   : > { %s219_s23 = scalar_lea.vmem %s807_s0, %s656_s20  ;;  %s224_s17 = scalar_lea.vmem %s812_s5, %s656_s20 }
  0x11   : > { %v743_v0 = vld [vmem:[%s219_s23 + $0x8] sm:$0xff]  ;;  %v745_v1 = vld [vmem:[%s219_s23] sm:$0xff]  ;;  %v235_v2 = vld [vmem:[%s219_s23 + $0x10] sm:$0xff] }
  0x12   : > { %241 = vrot.lane.b32.xlu0 %v743_v0, %s686_s24  ;;  %239 = vrot.lane.b32.xlu1 %v745_v1, %s686_s24  ;;  %232 = vst.msk [vmem:[#allocation2 + $0x10] sm:$0xff] %vm231_vm0, %v235_v2 }
  0x16   : > { %243 = vrot.lane.b32.xlu0 %v235_v2, %s686_s24  ;;  %262 = vrot.lane.b32.xlu1 %v743_v0, %s688_s25 }
  0x19   : > { %v403_v19 = vld [vmem:[#allocation2 + $0x10] sm:$0xff] }
  0x1a   : > { %264 = vrot.lane.b32.xlu0 %v235_v2, %s688_s25  ;;  %283 = vrot.lane.b32.xlu1 %v743_v0, %s689_s26 }
  0x1e   : > { %285 = vrot.lane.b32.xlu0 %v235_v2, %s689_s26  ;;  %260 = vrot.lane.b32.xlu1 %v745_v1, %s688_s25 }
  0x22   : > { %281 = vrot.lane.b32.xlu0 %v745_v1, %s689_s26  ;;  %304 = vrot.lane.b32.xlu1 %v743_v0, %s690_s27 }
  0x26   : > { %306 = vrot.lane.b32.xlu0 %v235_v2, %s690_s27  ;;  %325 = vrot.lane.b32.xlu1 %v743_v0, %s691_s28 }
  0x2a   : > { %327 = vrot.lane.b32.xlu0 %v235_v2, %s691_s28  ;;  %302 = vrot.lane.b32.xlu1 %v745_v1, %s690_s27 }
  0x2e   : > { %323 = vrot.lane.b32.xlu0 %v745_v1, %s691_s28  ;;  %346 = vrot.lane.b32.xlu1 %v743_v0, %s692_s29 }
  0x32   : > { %348 = vrot.lane.b32.xlu0 %v235_v2, %s692_s29  ;;  %367 = vrot.lane.b32.xlu1 %v743_v0, %s693_s30 }
  0x36   : > { %369 = vrot.lane.b32.xlu0 %v235_v2, %s693_s30  ;;  %344 = vrot.lane.b32.xlu1 %v745_v1, %s692_s29 }
  0x3a   : > { %365 = vrot.lane.b32.xlu0 %v745_v1, %s693_s30  ;;  %386 = vrot.lane.b32.xlu1 %v745_v1, %s695_s6 }
  0x3e   : > { %388 = vrot.lane.b32.xlu0 %v743_v0, %s695_s6  ;;  %390 = vrot.lane.b32.xlu1 %v235_v2, %s695_s6 }
  0x42   : > { %447 = vperm.xlu0 %676, %v444_v5   ;;  %551 = vperm.xlu1 %677, %v548_v6  }
  0x46   : > { %560 = vperm.xlu1 %677, %v557_v7  }
  0x84   : > { %v242_v8 = vpop.permute.xlu0 %241  ;;  %v240_v9 = vpop.permute.xlu1 %239 }
  0x85   : > { %v246_v10 = vsel %vm245_vm2, %v240_v9, %v242_v8 }
  0x86   : > { %v428_v15 = vpack.c.bf16 %v246_v10, %v745_v1 }
  0x88   : > { %v244_v11 = vpop.permute.xlu0 %243  ;;  %v263_v12 = vpop.permute.xlu1 %262 }
  0x89   : > { %v247_v13 = vsel %vm245_vm2, %v242_v8, %v244_v11  ;;  %253 = vst.msk [vmem:[#allocation2 + $0x28] sm:$0xff] %vm231_vm0, %v244_v11  ;;  %v443_v8 = vld [vmem:[%s808_s1] sm:$0xf] }
  0x8a   : > { %v429_v14 = vpack.c.bf16 %v247_v13, %v743_v0 }
  0x8c   : > { %v265_v16 = vpop.permute.xlu0 %264  ;;  %v284_v17 = vpop.permute.xlu1 %283  ;;  %464 = vmatprep.subr.bf16.mxu0 %v429_v14 }
  0x8d   : > { %v268_v18 = vsel %vm266_vm3, %v263_v12, %v265_v16  ;;  %274 = vst.msk [vmem:[#allocation2 + $0x40] sm:$0xff] %vm231_vm0, %v265_v16  ;;  %465 = vmatpush1.bf16.msra.mxu0 %v428_v15 }
  0x90   : > { %v286_v20 = vpop.permute.xlu0 %285  ;;  %v261_v21 = vpop.permute.xlu1 %260  ;;  %v406_v22 = vld [vmem:[#allocation2 + $0x28] sm:$0xff] }
  0x91   : > { %v289_v23 = vsel %vm287_vm4, %v284_v17, %v286_v20  ;;  %295 = vst.msk [vmem:[#allocation2 + $0x58] sm:$0xff] %vm231_vm0, %v286_v20  ;;  %v267_v24 = vsel %vm266_vm3, %v261_v21, %v263_v12  ;;  %v430_v25 = vpack.c.bf16 %v406_v22, %v403_v19 }
  0x92   : > { %v432_v26 = vpack.c.bf16 %v289_v23, %v268_v18 }
  0x93   : > { %643 = vmatpush3.bf16.msra.mxu1 %v430_v25 }
  0x94   : > { %v282_v27 = vpop.permute.xlu0 %281  ;;  %v305_v28 = vpop.permute.xlu1 %304  ;;  %644 = vmatprep.subr.bf16.mxu1 %v687_v3  ;;  %466 = vmatprep.subr.bf16.mxu0 %v432_v26  ;;  %v409_v30 = vld [vmem:[#allocation2 + $0x40] sm:$0xff] }
  0x95   : > { %v288_v29 = vsel %vm287_vm4, %v282_v27, %v284_v17 }
  0x96   : > { %v431_v31 = vpack.c.bf16 %v288_v29, %v267_v24 }
  0x98   : > { %v307_v32 = vpop.permute.xlu0 %306  ;;  %v326_v33 = vpop.permute.xlu1 %325  ;;  %v412_v34 = vld [vmem:[#allocation2 + $0x58] sm:$0xff]  ;;  %467 = vmatpush1.bf16.msra.mxu0 %v431_v31 }
  0x99   : > { %v310_v35 = vsel %vm308_vm5, %v305_v28, %v307_v32  ;;  %316 = vst.msk [vmem:[#allocation2 + $0x70] sm:$0xff] %vm231_vm0, %v307_v32  ;;  %v433_v36 = vpack.c.bf16 %v412_v34, %v409_v30 }
  0x9b   : > { %645 = vmatpush3.bf16.msra.mxu1 %v433_v36 }
  0x9c   : > { %v328_v37 = vpop.permute.xlu0 %327  ;;  %v303_v38 = vpop.permute.xlu1 %302  ;;  %646 = vmatprep.subr.bf16.mxu1 %v687_v3 }
  0x9d   : > { %v331_v39 = vsel %vm329_vm6, %v326_v33, %v328_v37  ;;  %337 = vst.msk [vmem:[#allocation2 + $0x88] sm:$0xff] %vm231_vm0, %v328_v37  ;;  %v309_v40 = vsel %vm308_vm5, %v303_v38, %v305_v28 }
  0x9e   : > { %v435_v41 = vpack.c.bf16 %v331_v39, %v310_v35 }
  0xa0   : > { %v324_v42 = vpop.permute.xlu0 %323  ;;  %v347_v43 = vpop.permute.xlu1 %346  ;;  %468 = vmatprep.subr.bf16.mxu0 %v435_v41  ;;  %v415_v45 = vld [vmem:[#allocation2 + $0x70] sm:$0xff] }
  0xa1   : > { %v330_v44 = vsel %vm329_vm6, %v324_v42, %v326_v33 }
  0xa2   : > { %v434_v46 = vpack.c.bf16 %v330_v44, %v309_v40 }
  0xa4   : > { %v349_v47 = vpop.permute.xlu0 %348  ;;  %v368_v48 = vpop.permute.xlu1 %367  ;;  %v418_v49 = vld [vmem:[#allocation2 + $0x88] sm:$0xff]  ;;  %469 = vmatpush1.bf16.msra.mxu0 %v434_v46 }
  0xa5   : > { %v352_v50 = vsel %vm350_vm7, %v347_v43, %v349_v47  ;;  %358 = vst.msk [vmem:[#allocation2 + $0xa0] sm:$0xff] %vm231_vm0, %v349_v47  ;;  %v436_v51 = vpack.c.bf16 %v418_v49, %v415_v45 }
  0xa7   : > { %647 = vmatpush3.bf16.msra.mxu1 %v436_v51 }
  0xa8   : > { %v370_v52 = vpop.permute.xlu0 %369  ;;  %v345_v53 = vpop.permute.xlu1 %344  ;;  %648 = vmatprep.subr.bf16.mxu1 %v687_v3 }
  0xa9   : > { %v373_v54 = vsel %vm371_vm8, %v368_v48, %v370_v52  ;;  %379 = vst.msk [vmem:[#allocation2 + $0xb8] sm:$0xff] %vm231_vm0, %v370_v52  ;;  %v351_v55 = vsel %vm350_vm7, %v345_v53, %v347_v43 }
  0xaa   : > { %v438_v56 = vpack.c.bf16 %v373_v54, %v352_v50 }
  0xac   : > { %v366_v57 = vpop.permute.xlu0 %365  ;;  %v387_v58 = vpop.permute.xlu1 %386  ;;  %470 = vmatprep.subr.bf16.mxu0 %v438_v56  ;;  %v421_v60 = vld [vmem:[#allocation2 + $0xa0] sm:$0xff] }
  0xad   : > { %v372_v59 = vsel %vm371_vm8, %v366_v57, %v368_v48 }
  0xae   : > { %v437_v61 = vpack.c.bf16 %v372_v59, %v351_v55 }
  0xb0   : > { %v389_v62 = vpop.permute.xlu0 %388  ;;  %v391_v63 = vpop.permute.xlu1 %390  ;;  %v424_v0 = vld [vmem:[#allocation2 + $0xb8] sm:$0xff]  ;;  %471 = vmatpush1.bf16.msra.mxu0 %v437_v61 }
  0xb1   : > { %v393_v1 = vsel %vm392_vm9, %v387_v58, %v389_v62  ;;  %v394_v2 = vsel %vm392_vm9, %v389_v62, %v391_v63  ;;  %400 = vst.msk [vmem:[#allocation2 + $0xd0] sm:$0xff] %vm231_vm0, %v391_v63  ;;  %v439_v4 = vpack.c.bf16 %v424_v0, %v421_v60 }
  0xb2   : > { %v441_v5 = vpack.c.bf16 %v394_v2, %v394_v2  ;;  %v440_v6 = vpack.c.bf16 %v393_v1, %v393_v1 }
  0xb3   : > { %649 = vmatpush3.bf16.msra.mxu1 %v439_v4 }
  0xb4   : > { %650 = vmatprep.subr.bf16.mxu1 %v687_v3  ;;  %631 = vmatprep.subr.msk.bf16.mxu0 %vm454_vm10, %v441_v5  ;;  %v456_v7 = vsel %vm454_vm10, %v440_v6, 0 }
  0xb5   : > { %473 = vmatpush1.bf16.msra.mxu0 %v456_v7 }
  0xb8   : > { %v427_v9 = vld [vmem:[#allocation2 + $0xd0] sm:$0xff]  ;;  %632 = vmatmul.mubr.msk.bf16.vlgmr.msra.gmra.mrb[0].mxu0 %vm450_vm11, %v443_v8 }
  0xb9   : > { %v442_v10 = vpack.c.bf16 %v427_v9, %v427_v9 }
  0xbb   : > { %v462_v11 = vsel %vm454_vm10, %v442_v10, 0 }
  0xbc   : > { %651 = vmatpush3.bf16.msra.mxu1 %v462_v11 }
  0xbf   : > { %653 = vmatmul.mubr.msk.bf16.vlgmr.msra.gmra.mrb[0].mxu1 %vm450_vm11, %v443_v8 }
  0xc1   : > { %v448_v12 = vpop.permute.xlu0 %447  ;;  %v552_v13 = vpop.permute.xlu1 %551 }
  0xc5   : > { %v561_v21 = vpop.permute.xlu1 %560 }
 0x18b   : > { %v498_v14 = vpop.f32.mrb[0].mxu0 }
 0x18c   : > { %v499_v15 = vadd.f32 %v498_v14, %v448_v12  ;;  %v500_v3 = vpop.f32.mrb[1].mxu0 }
 0x18d   : > { %v501_v16 = vadd.f32 %v500_v3, %v448_v12  ;;  %v502_v17 = vpop.f32.mrb[2].mxu0 }
 0x18e   : > { %v545_v18 = vmax.f32 %v499_v15, 0.0  ;;  %v503_v19 = vpop.f32.mrb[3].mxu0 }
 0x18f   : > { %v546_v20 = vmax.f32 %v501_v16, 0.0 }
 0x190   : > { %v554_v22 = vmul.f32 %v552_v13, %v545_v18 }
 0x191   : > { %v555_v23 = vmul.f32 %v552_v13, %v546_v20 }
 0x192   : > { %v539_v24 = vpop.f32.mrb[0].mxu1  ;;  %v563_v25 = vadd.f32 %v561_v21, %v554_v22 }
 0x193   : > { %v540_v26 = vadd.f32 %v539_v24, %v448_v12  ;;  %v654_v27 = vpop.f32.mrb[1].mxu1  ;;  %v564_v28 = vadd.f32 %v561_v21, %v555_v23 }
 0x194   : > { %v542_v29 = vpop.f32.mrb[2].mxu1  ;;  %566 = vst [vmem:[%s224_s17] sm:$0xff] %v563_v25 }
 0x195   : > { %v547_v30 = vmax.f32 %v540_v26, 0.0  ;;  %v655_v31 = vpop.f32.mrb[3].mxu1  ;;  %567 = vst [vmem:[%s224_s17 + $0x8] sm:$0xff] %v564_v28 }
 0x197   : > { %v556_v32 = vmul.f32 %v552_v13, %v547_v30 }
 0x199   : > { %v565_v33 = vadd.f32 %v561_v21, %v556_v32 }
 0x19b   : > { %568 = vst.msk [vmem:[%s224_s17 + $0x10] sm:$0xff] %vm231_vm0, %v565_v33 }
 0x19c PF: > { %s15_s18 = sadd.s32 1, %s684_s18  }
 0x19d   : > { %p12_p4 = scmp.ge.s32.totalorder %s15_s18, 4  }
 0x19f   :  { %14 = sbr.rel (!%p12_p4) target bundleno = 1 (0x1), region = 70 }

// kernel: audio_ae_forward.10
= control target key start
LH: loop header
LB: loop body
LE: loop exit
PB: predicated region body
PF: predicated region fallthrough
CT: control target
= control target key end

     0   :  { %s510_s18 = smov 0   ;;  %s562_s0 = inlined_call_operand.vmem [shape: f32[2,8,100], index: 0, kind: input, shape index: {}]   ;;  %s563_s1 = inlined_call_operand.vmem [shape: bf16[8,72], index: 1, kind: input, shape index: {}]   ;;  %s564_s2 = inlined_call_operand.vmem [shape: f32[8,1], index: 2, kind: input, shape index: {}]   ;;  %s565_s3 = inlined_call_operand.vmem [shape: f32[8,1], index: 3, kind: input, shape index: {}]   ;;  %s566_s4 = inlined_call_operand.vmem [shape: f32[8,1], index: 4, kind: input, shape index: {}]   ;;  %s567_s5 = inlined_call_operand.vmem [shape: f32[2,8,78], index: 5, kind: output, shape index: {}]  }
   0x1 LB: > { %s410_s19 = sadd.s32 4294967295, %s467_s18   ;;  %p414_p0 = scmp.ge.s32.totalorder %s467_s18, 1  ;;  %s467_s18 = sphi %s510_s18, %s15_s18  }
   0x2   : > { %p186_p1 = scmp.lt.s32.totalorder %s467_s18, 3 }
   0x4   : > { %p187_p2 = pnand %p414_p0, %p186_p1 }
   0x5   : > { %p212_p3 = scmp.lt.s32.totalorder (!%p187_p2), %s410_s19, 1  ;;  %v469_v0 = vmov (!%p187_p2), 0.0   ;;  %vm222_vm0 = vcmask (!%p187_p2), 637952   ;;  %s470_s24 = smov (!%p187_p2), 127   ;;  %vm478_vm1 = vmmov (!%p187_p2), 0   ;;  %v342_v2 = vld [vmem:[%s565_s3] sm:$0xff] (!%p187_p2) }
   0x6   : > { %190 = sbr.rel (%p187_p2) target bundleno = 382 (0x17e), region = 40  ;;  %426 = vmatprep.subr.bf16.mxu0 (!%p187_p2), %v469_v0  ;;  %s471_s25 = smov (!%p187_p2), 118   ;;  %436 = vmatprep.mubr.msk.bf16.mxu0 (!%p187_p2), %vm478_vm1, %v469_v0  ;;  %v287_v3 = vld [vmem:[%s564_s2] sm:$0xff] (!%p187_p2)  ;;  %v479_v4 = vmov (!%p187_p2), 0   ;;  %vm297_vm2 = vcmask (!%p187_p2), 1043456   ;;  %vm293_vm3 = vcmask (!%p187_p2), 588800  }
   0x7   : > { %s472_s26 = smov (!%p187_p2), 126   ;;  %s473_s27 = smov (!%p187_p2), 117   ;;  %460 = vset.pattern.permute.xlu1 (!%p187_p2), %v479_v4  ;;  %459 = vset.pattern.permute.xlu0 (!%p187_p2), %v479_v4  ;;  %v349_v5 = vld [vmem:[%s566_s4] sm:$0xff] (!%p187_p2) }
   0x8   : > { %s474_s28 = smov (!%p187_p2), 116   ;;  %s475_s29 = smov (!%p187_p2), 108   ;;  %v286_v29 = vld [vmem:[%s563_s1] sm:$0xf] (!%p187_p2) }
   0x9   : > { %s476_s30 = smov (!%p187_p2), 107   ;;  %s477_s6 = smov (!%p187_p2), 106  }
   0xd   : > { %s569_s19 = smov (!%p212_p3, %s410_s19), 1 }
   0xe   : > { %s415_s20 = sshll.u32 %s569_s19, 3 }
   0xf   : > { %s215_s23 = scalar_lea.vmem %s562_s0, %s415_s20  ;;  %s219_s17 = scalar_lea.vmem %s567_s5, %s415_s20 }
  0x10   : > { %v224_v1 = vld [vmem:[%s215_s23] sm:$0xff] }
  0x11   : > { %226 = vrot.lane.b32.xlu0 %v224_v1, %s470_s24  ;;  %238 = vrot.lane.b32.xlu1 %v224_v1, %s471_s25  ;;  %223 = vst.msk [vmem:[#allocation2] sm:$0xff] %vm222_vm0, %v224_v1 }
  0x15   : > { %232 = vrot.lane.b32.xlu0 %v224_v1, %s472_s26  ;;  %244 = vrot.lane.b32.xlu1 %v224_v1, %s473_s27 }
  0x18   : > { %v272_v10 = vld [vmem:[#allocation2] sm:$0xff] }
  0x19   : > { %250 = vrot.lane.b32.xlu0 %v224_v1, %s474_s28  ;;  %256 = vrot.lane.b32.xlu1 %v224_v1, %s475_s29 }
  0x1d   : > { %262 = vrot.lane.b32.xlu0 %v224_v1, %s476_s30  ;;  %268 = vrot.lane.b32.xlu1 %v224_v1, %s477_s6 }
  0x21   : > { %345 = vperm.xlu1 %460, %v342_v2   ;;  %290 = vperm.xlu0 %459, %v287_v3  }
  0x25   : > { %352 = vperm.xlu1 %460, %v349_v5  }
  0x83   : > { %v227_v6 = vpop.permute.xlu0 %226  ;;  %v239_v7 = vpop.permute.xlu1 %238 }
  0x84   : > { %229 = vst.msk [vmem:[#allocation2 + $0x8] sm:$0xff] %vm222_vm0, %v227_v6  ;;  %241 = vst.msk [vmem:[#allocation2 + $0x18] sm:$0xff] %vm222_vm0, %v239_v7 }
  0x87   : > { %v233_v8 = vpop.permute.xlu0 %232  ;;  %v245_v9 = vpop.permute.xlu1 %244 }
  0x88   : > { %235 = vst.msk [vmem:[#allocation2 + $0x10] sm:$0xff] %vm222_vm0, %v233_v8  ;;  %247 = vst.msk [vmem:[#allocation2 + $0x20] sm:$0xff] %vm222_vm0, %v245_v9 }
  0x8b   : > { %v251_v11 = vpop.permute.xlu0 %250  ;;  %v257_v12 = vpop.permute.xlu1 %256  ;;  %v273_v13 = vld [vmem:[#allocation2 + $0x8] sm:$0xff]  ;;  %v275_v15 = vld [vmem:[#allocation2 + $0x18] sm:$0xff] }
  0x8c   : > { %253 = vst.msk [vmem:[#allocation2 + $0x28] sm:$0xff] %vm222_vm0, %v251_v11  ;;  %259 = vst.msk [vmem:[#allocation2 + $0x30] sm:$0xff] %vm222_vm0, %v257_v12  ;;  %v281_v14 = vpack.c.bf16 %v273_v13, %v272_v10 }
  0x8e   : > { %427 = vmatpush3.bf16.msra.mxu0 %v281_v14 }
  0x8f   : > { %v263_v16 = vpop.permute.xlu0 %262  ;;  %428 = vmatprep.subr.bf16.mxu0 %v469_v0  ;;  %v269_v17 = vpop.permute.xlu1 %268  ;;  %v274_v18 = vld [vmem:[#allocation2 + $0x10] sm:$0xff]  ;;  %v276_v20 = vld [vmem:[#allocation2 + $0x20] sm:$0xff] }
  0x90   : > { %265 = vst.msk [vmem:[#allocation2 + $0x38] sm:$0xff] %vm222_vm0, %v263_v16  ;;  %271 = vst.msk [vmem:[#allocation2 + $0x40] sm:$0xff] %vm222_vm0, %v269_v17  ;;  %v282_v19 = vpack.c.bf16 %v275_v15, %v274_v18 }
  0x92   : > { %429 = vmatpush3.bf16.msra.mxu0 %v282_v19 }
  0x93   : > { %430 = vmatprep.subr.bf16.mxu0 %v469_v0  ;;  %v277_v21 = vld [vmem:[#allocation2 + $0x28] sm:$0xff]  ;;  %v278_v23 = vld [vmem:[#allocation2 + $0x30] sm:$0xff] }
  0x94   : > { %v283_v22 = vpack.c.bf16 %v277_v21, %v276_v20 }
  0x96   : > { %431 = vmatpush3.bf16.msra.mxu0 %v283_v22 }
  0x97   : > { %432 = vmatprep.subr.bf16.mxu0 %v469_v0  ;;  %v279_v24 = vld [vmem:[#allocation2 + $0x38] sm:$0xff]  ;;  %v280_v25 = vld [vmem:[#allocation2 + $0x40] sm:$0xff] }
  0x98   : > { %v284_v26 = vpack.c.bf16 %v279_v24, %v278_v23  ;;  %v285_v27 = vpack.c.bf16 %v280_v25, %v280_v25 }
  0x9a   : > { %433 = vmatpush3.bf16.msra.mxu0 %v284_v26  ;;  %v299_v28 = vsel %vm297_vm2, %v285_v27, 0 }
  0x9b   : > { %434 = vmatprep.subr.bf16.mxu0 %v469_v0 }
  0x9e   : > { %435 = vmatpush3.bf16.msra.mxu0 %v299_v28 }
  0xa0   : > { %v291_v30 = vpop.permute.xlu0 %290  ;;  %v346_v31 = vpop.permute.xlu1 %345 }
  0xa1   : > { %437 = vmatmul.mubr.msk.bf16.vlgmr.msra.gmra.mrb[0].mxu0 %vm293_vm3, %v286_v29 }
  0xa4   : > { %v353_v39 = vpop.permute.xlu1 %352 }
 0x174   : > { %v335_v32 = vpop.f32.mrb[0].mxu0 }
 0x175   : > { %v336_v33 = vadd.f32 %v335_v32, %v291_v30  ;;  %v438_v34 = vpop.f32.mrb[1].mxu0 }
 0x176   : > { %v338_v35 = vpop.f32.mrb[2].mxu0 }
 0x177   : > { %v341_v36 = vmax.f32 %v336_v33, 0.0  ;;  %v439_v37 = vpop.f32.mrb[3].mxu0 }
 0x179   : > { %v348_v38 = vmul.f32 %v346_v31, %v341_v36 }
 0x17b   : > { %v355_v40 = vadd.f32 %v353_v39, %v348_v38 }
 0x17d   : > { %356 = vst.msk [vmem:[%s219_s17] sm:$0xff] %vm222_vm0, %v355_v40 }
 0x17e PF: > { %s15_s18 = sadd.s32 1, %s467_s18  }
 0x17f   : > { %p12_p4 = scmp.ge.s32.totalorder %s15_s18, 4  }
 0x181   :  { %14 = sbr.rel (!%p12_p4) target bundleno = 1 (0x1), region = 70 }

// kernel: audio_ae_forward.8
= control target key start
LH: loop header
LB: loop body
LE: loop exit
PB: predicated region body
PF: predicated region fallthrough
CT: control target
= control target key end

     0   :  { %s2067_s18 = smov 0   ;;  %s2553_s0 = inlined_call_operand.vmem [shape: f32[2,8,484], index: 0, kind: input, shape index: {}]   ;;  %s2554_s1 = inlined_call_operand.vmem [shape: bf16[8,392], index: 1, kind: input, shape index: {}]   ;;  %s2555_s2 = inlined_call_operand.vmem [shape: f32[8,1], index: 2, kind: input, shape index: {}]   ;;  %s2556_s3 = inlined_call_operand.vmem [shape: f32[8,1], index: 3, kind: input, shape index: {}]   ;;  %s2557_s4 = inlined_call_operand.vmem [shape: f32[8,1], index: 4, kind: input, shape index: {}]   ;;  %s2558_s5 = inlined_call_operand.vmem [shape: f32[2,8,346], index: 5, kind: output, shape index: {}]  }
   0x1 LB: > { %s1876_s19 = sadd.s32 4294967295, %s1989_s18   ;;  %p1880_p0 = scmp.ge.s32.totalorder %s1989_s18, 1  ;;  %s1989_s18 = sphi %s2067_s18, %s15_s18  }
   0x2   : > { %p187_p1 = scmp.lt.s32.totalorder %s1989_s18, 3 }
   0x4   : > { %p188_p2 = pnand %p1880_p0, %p187_p1 }
   0x5   : > { %p215_p3 = scmp.lt.s32.totalorder (!%p188_p2), %s1876_s19, 1  ;;  %vm231_vm0 = vcmask (!%p188_p2), 736256   ;;  %s1991_s24 = smov (!%p188_p2), 127   ;;  %vm245_vm1 = vcmask (!%p188_p2), 1039360   ;;  %vm266_vm2 = vcmask (!%p188_p2), 1031168   ;;  %vm287_vm3 = vcmask (!%p188_p2), 1022976  }
   0x6   : > { %191 = sbr.rel (%p188_p2) target bundleno = 707 (0x2c3), region = 40  ;;  %s1992_s25 = smov (!%p188_p2), 126   ;;  %vm308_vm4 = vcmask (!%p188_p2), 1014784   ;;  %vm329_vm5 = vcmask (!%p188_p2), 1006592   ;;  %vm350_vm6 = vcmask (!%p188_p2), 998400   ;;  %vm371_vm7 = vcmask (!%p188_p2), 867328  }
   0x7   : > { %s1993_s26 = smov (!%p188_p2), 125   ;;  %s1994_s27 = smov (!%p188_p2), 124   ;;  %vm392_vm8 = vcmask (!%p188_p2), 859136   ;;  %vm413_vm9 = vcmask (!%p188_p2), 850944   ;;  %vm434_vm10 = vcmask (!%p188_p2), 842752   ;;  %vm455_vm11 = vcmask (!%p188_p2), 834560  }
   0x8   : > { %s1995_s28 = smov (!%p188_p2), 123   ;;  %s1996_s29 = smov (!%p188_p2), 122   ;;  %vm476_vm12 = vcmask (!%p188_p2), 826368   ;;  %vm497_vm13 = vcmask (!%p188_p2), 818176   ;;  %vm522_vm14 = vcmask (!%p188_p2), 687104   ;;  %vm548_vm15 = vcmask (!%p188_p2), 678912  }
   0x9   : > { %s1997_s30 = smov (!%p188_p2), 106   ;;  %s1998_s6 = smov (!%p188_p2), 105  }
   0xa   : > { %s1999_s7 = smov (!%p188_p2), 104   ;;  %s2000_s8 = smov (!%p188_p2), 103  }
   0xb   : > { %s2001_s9 = smov (!%p188_p2), 102   ;;  %s2002_s10 = smov (!%p188_p2), 101  }
   0xc   : > { %s2003_s11 = smov (!%p188_p2), 100   ;;  %s2004_s12 = smov (!%p188_p2), 84  }
   0xd   : > { %s2560_s19 = smov (!%p215_p3, %s1876_s19), 1  ;;  %s2005_s13 = smov 83  }
   0xe   : > { %s1893_s20 = sshll.u32 %s2560_s19, 5  ;;  %s2006_s14 = smov 82  }
   0xf   : > { %s2081_s23 = scalar_lea.vmem %s2553_s0, %s1893_s20  ;;  %s2007_s15 = smov 81  }
  0x10   : > { %v2084_v0 = vld [vmem:[%s2081_s23 + $0x8] sm:$0xff]  ;;  %v2087_v1 = vld [vmem:[%s2081_s23] sm:$0xff]  ;;  %v2092_v2 = vld [vmem:[%s2081_s23 + $0x10] sm:$0xff]  ;;  %s2008_s16 = smov 80   ;;  %s2009_s17 = smov 79  }
  0x11   : > { %241 = vrot.lane.b32.xlu0 %v2084_v0, %s1991_s24  ;;  %239 = vrot.lane.b32.xlu1 %v2087_v1, %s1991_s24  ;;  %v2095_v3 = vld [vmem:[%s2081_s23 + $0x10] sm:$0xff]  ;;  %232 = vst.msk [vmem:[#allocation2 + $0x10] sm:$0xff] %vm231_vm0, %v2092_v2  ;;  %v2163_v4 = vld [vmem:[%s2081_s23 + $0x18] sm:$0xff]  ;;  %s2010_s20 = smov 78   ;;  %s2011_s21 = smov 62  }
  0x12   : > { %s2012_s22 = smov 61  }
  0x15   : > { %243 = vrot.lane.b32.xlu0 %v2095_v3, %s1991_s24  ;;  %262 = vrot.lane.b32.xlu1 %v2084_v0, %s1992_s25  ;;  %s2013_s24 = smov 60  }
  0x19   : > { %264 = vrot.lane.b32.xlu0 %v2095_v3, %s1992_s25  ;;  %283 = vrot.lane.b32.xlu1 %v2084_v0, %s1993_s26 }
  0x1d   : > { %285 = vrot.lane.b32.xlu0 %v2095_v3, %s1993_s26  ;;  %260 = vrot.lane.b32.xlu1 %v2087_v1, %s1992_s25  ;;  %s2014_s25 = smov 59  }
  0x21   : > { %281 = vrot.lane.b32.xlu0 %v2087_v1, %s1993_s26  ;;  %304 = vrot.lane.b32.xlu1 %v2084_v0, %s1994_s27  ;;  %s2015_s26 = smov 58  }
  0x25   : > { %306 = vrot.lane.b32.xlu0 %v2095_v3, %s1994_s27  ;;  %325 = vrot.lane.b32.xlu1 %v2084_v0, %s1995_s28 }
  0x29   : > { %327 = vrot.lane.b32.xlu0 %v2095_v3, %s1995_s28  ;;  %302 = vrot.lane.b32.xlu1 %v2087_v1, %s1994_s27 }
  0x2d   : > { %323 = vrot.lane.b32.xlu0 %v2087_v1, %s1995_s28  ;;  %346 = vrot.lane.b32.xlu1 %v2084_v0, %s1996_s29 }
  0x31   : > { %348 = vrot.lane.b32.xlu0 %v2095_v3, %s1996_s29  ;;  %367 = vrot.lane.b32.xlu1 %v2084_v0, %s1997_s30 }
  0x35   : > { %369 = vrot.lane.b32.xlu0 %v2095_v3, %s1997_s30  ;;  %344 = vrot.lane.b32.xlu1 %v2087_v1, %s1996_s29 }
  0x39   : > { %365 = vrot.lane.b32.xlu0 %v2087_v1, %s1997_s30  ;;  %388 = vrot.lane.b32.xlu1 %v2084_v0, %s1998_s6  ;;  %s2016_s30 = smov 57  }
  0x3d   : > { %390 = vrot.lane.b32.xlu0 %v2095_v3, %s1998_s6  ;;  %409 = vrot.lane.b32.xlu1 %v2084_v0, %s1999_s7 }
  0x41   : > { %411 = vrot.lane.b32.xlu0 %v2095_v3, %s1999_s7  ;;  %386 = vrot.lane.b32.xlu1 %v2087_v1, %s1998_s6  ;;  %s2017_s6 = smov 56  }
  0x45   : > { %407 = vrot.lane.b32.xlu0 %v2087_v1, %s1999_s7  ;;  %430 = vrot.lane.b32.xlu1 %v2084_v0, %s2000_s8  ;;  %s2018_s7 = smov 40  }
  0x49   : > { %432 = vrot.lane.b32.xlu0 %v2095_v3, %s2000_s8  ;;  %451 = vrot.lane.b32.xlu1 %v2084_v0, %s2001_s9 }
  0x4d   : > { %453 = vrot.lane.b32.xlu0 %v2095_v3, %s2001_s9  ;;  %428 = vrot.lane.b32.xlu1 %v2087_v1, %s2000_s8  ;;  %s2019_s8 = smov 39  }
  0x51   : > { %449 = vrot.lane.b32.xlu0 %v2087_v1, %s2001_s9  ;;  %472 = vrot.lane.b32.xlu1 %v2084_v0, %s2002_s10  ;;  %s2020_s9 = smov 38  }
  0x55   : > { %474 = vrot.lane.b32.xlu0 %v2095_v3, %s2002_s10  ;;  %493 = vrot.lane.b32.xlu1 %v2084_v0, %s2003_s11 }
  0x59   : > { %495 = vrot.lane.b32.xlu0 %v2095_v3, %s2003_s11  ;;  %470 = vrot.lane.b32.xlu1 %v2087_v1, %s2002_s10  ;;  %s2021_s10 = smov 37  }
  0x5d   : > { %491 = vrot.lane.b32.xlu0 %v2087_v1, %s2003_s11  ;;  %516 = vrot.lane.b32.xlu1 %v2084_v0, %s2004_s12 }
  0x61   : > { %518 = vrot.lane.b32.xlu0 %v2095_v3, %s2004_s12  ;;  %542 = vrot.lane.b32.xlu1 %v2084_v0, %s2005_s13 }
  0x65   : > { %544 = vrot.lane.b32.xlu0 %v2095_v3, %s2005_s13  ;;  %514 = vrot.lane.b32.xlu1 %v2087_v1, %s2004_s12 }
  0x69   : > { %540 = vrot.lane.b32.xlu0 %v2087_v1, %s2005_s13  ;;  %568 = vrot.lane.b32.xlu1 %v2084_v0, %s2006_s14 }
  0x6d   : > { %570 = vrot.lane.b32.xlu0 %v2095_v3, %s2006_s14  ;;  %594 = vrot.lane.b32.xlu1 %v2084_v0, %s2007_s15 }
  0x71   : > { %596 = vrot.lane.b32.xlu0 %v2095_v3, %s2007_s15  ;;  %566 = vrot.lane.b32.xlu1 %v2087_v1, %s2006_s14 }
  0x75   : > { %572 = vrot.lane.b32.xlu0 %v2163_v4, %s2006_s14  ;;  %592 = vrot.lane.b32.xlu1 %v2087_v1, %s2007_s15  ;;  %s1922_s14 = smul.u32 24, %s2560_s19 }
  0x79   : > { %598 = vrot.lane.b32.xlu0 %v2163_v4, %s2007_s15  ;;  %620 = vrot.lane.b32.xlu1 %v2084_v0, %s2008_s16  ;;  %s2023_s15 = smov 35  }
  0x7d   : > { %622 = vrot.lane.b32.xlu0 %v2095_v3, %s2008_s16  ;;  %646 = vrot.lane.b32.xlu1 %v2084_v0, %s2009_s17 }
  0x81   : > { %648 = vrot.lane.b32.xlu0 %v2095_v3, %s2009_s17  ;;  %618 = vrot.lane.b32.xlu1 %v2087_v1, %s2008_s16 }
  0x83   : > { %v242_v5 = vpop.permute.xlu0 %241  ;;  %v240_v6 = vpop.permute.xlu1 %239 }
  0x84   : > { %v246_v7 = vsel %vm245_vm1, %v240_v6, %v242_v5 }
  0x85   : > { %624 = vrot.lane.b32.xlu0 %v2163_v4, %s2008_s16  ;;  %644 = vrot.lane.b32.xlu1 %v2087_v1, %s2009_s17  ;;  %v1525_v12 = vpack.c.bf16 %v246_v7, %v2087_v1  ;;  %s2026_s16 = smov 18  }
  0x87   : > { %v244_v8 = vpop.permute.xlu0 %243  ;;  %v263_v9 = vpop.permute.xlu1 %262 }
  0x88   : > { %v247_v10 = vsel %vm245_vm1, %v242_v5, %v244_v8  ;;  %253 = vst.msk [vmem:[#allocation2 + $0x28] sm:$0xff] %vm231_vm0, %v244_v8  ;;  %vm574_vm1 = vcmask 670720  }
  0x89   : > { %650 = vrot.lane.b32.xlu0 %v2163_v4, %s2009_s17  ;;  %672 = vrot.lane.b32.xlu1 %v2084_v0, %s2010_s20  ;;  %v1526_v11 = vpack.c.bf16 %v247_v10, %v2084_v0  ;;  %s2027_s17 = smov 17  }
  0x8b   : > { %v265_v13 = vpop.permute.xlu0 %264  ;;  %v284_v14 = vpop.permute.xlu1 %283  ;;  %1635 = vmatprep.subr.bf16.mxu0 %v1526_v11 }
  0x8c   : > { %v268_v15 = vsel %vm266_vm2, %v263_v9, %v265_v13  ;;  %274 = vst.msk [vmem:[#allocation2 + $0x40] sm:$0xff] %vm231_vm0, %v265_v13  ;;  %1636 = vmatpush1.bf16.msra.mxu0 %v1525_v12 }
  0x8d   : > { %674 = vrot.lane.b32.xlu0 %v2095_v3, %s2010_s20  ;;  %698 = vrot.lane.b32.xlu1 %v2084_v0, %s2011_s21 }
  0x8f   : > { %v286_v16 = vpop.permute.xlu0 %285  ;;  %v261_v17 = vpop.permute.xlu1 %260 }
  0x90   : > { %v289_v18 = vsel %vm287_vm3, %v284_v14, %v286_v16  ;;  %295 = vst.msk [vmem:[#allocation2 + $0x58] sm:$0xff] %vm231_vm0, %v286_v16  ;;  %v267_v19 = vsel %vm266_vm2, %v261_v17, %v263_v9  ;;  %vm600_vm2 = vcmask 662528  }
  0x91   : > { %700 = vrot.lane.b32.xlu0 %v2095_v3, %s2011_s21  ;;  %670 = vrot.lane.b32.xlu1 %v2087_v1, %s2010_s20  ;;  %v1529_v20 = vpack.c.bf16 %v289_v18, %v268_v15 }
  0x93   : > { %v282_v21 = vpop.permute.xlu0 %281  ;;  %v305_v22 = vpop.permute.xlu1 %304  ;;  %1637 = vmatprep.subr.bf16.mxu0 %v1529_v20 }
  0x94   : > { %v288_v23 = vsel %vm287_vm3, %v282_v21, %v284_v14  ;;  %vm626_vm3 = vcmask 654336  }
  0x95   : > { %676 = vrot.lane.b32.xlu0 %v2163_v4, %s2010_s20  ;;  %696 = vrot.lane.b32.xlu1 %v2087_v1, %s2011_s21  ;;  %v1528_v24 = vpack.c.bf16 %v288_v23, %v267_v19  ;;  %s2028_s20 = smov 16  }
  0x97   : > { %v307_v25 = vpop.permute.xlu0 %306  ;;  %v326_v26 = vpop.permute.xlu1 %325  ;;  %1638 = vmatpush1.bf16.msra.mxu0 %v1528_v24 }
  0x98   : > { %v310_v27 = vsel %vm308_vm4, %v305_v22, %v307_v25  ;;  %316 = vst.msk [vmem:[#allocation2 + $0x70] sm:$0xff] %vm231_vm0, %v307_v25 }
  0x99   : > { %702 = vrot.lane.b32.xlu0 %v2163_v4, %s2011_s21  ;;  %724 = vrot.lane.b32.xlu1 %v2084_v0, %s2012_s22  ;;  %s2030_s21 = smov 14  }
  0x9b   : > { %v328_v28 = vpop.permute.xlu0 %327  ;;  %v303_v29 = vpop.permute.xlu1 %302 }
  0x9c   : > { %v331_v30 = vsel %vm329_vm5, %v326_v26, %v328_v28  ;;  %337 = vst.msk [vmem:[#allocation2 + $0x88] sm:$0xff] %vm231_vm0, %v328_v28  ;;  %v309_v31 = vsel %vm308_vm4, %v303_v29, %v305_v22 }
  0x9d   : > { %726 = vrot.lane.b32.xlu0 %v2095_v3, %s2012_s22  ;;  %750 = vrot.lane.b32.xlu1 %v2084_v0, %s2013_s24  ;;  %v1532_v32 = vpack.c.bf16 %v331_v30, %v310_v27 }
  0x9f   : > { %v324_v33 = vpop.permute.xlu0 %323  ;;  %v347_v34 = vpop.permute.xlu1 %346  ;;  %1639 = vmatprep.subr.bf16.mxu0 %v1532_v32 }
  0xa0   : > { %v330_v35 = vsel %vm329_vm5, %v324_v33, %v326_v26 }
  0xa1   : > { %752 = vrot.lane.b32.xlu0 %v2095_v3, %s2013_s24  ;;  %722 = vrot.lane.b32.xlu1 %v2087_v1, %s2012_s22  ;;  %v1531_v36 = vpack.c.bf16 %v330_v35, %v309_v31 }
  0xa3   : > { %v349_v37 = vpop.permute.xlu0 %348  ;;  %v368_v38 = vpop.permute.xlu1 %367  ;;  %1640 = vmatpush1.bf16.msra.mxu0 %v1531_v36 }
  0xa4   : > { %v352_v39 = vsel %vm350_vm6, %v347_v34, %v349_v37  ;;  %358 = vst.msk [vmem:[#allocation2 + $0xa0] sm:$0xff] %vm231_vm0, %v349_v37 }
  0xa5   : > { %728 = vrot.lane.b32.xlu0 %v2163_v4, %s2012_s22  ;;  %748 = vrot.lane.b32.xlu1 %v2087_v1, %s2013_s24  ;;  %s2031_s22 = smov 13  }
  0xa7   : > { %v370_v40 = vpop.permute.xlu0 %369  ;;  %v345_v41 = vpop.permute.xlu1 %344 }
  0xa8   : > { %v373_v42 = vsel %vm371_vm7, %v368_v38, %v370_v40  ;;  %379 = vst.msk [vmem:[#allocation2 + $0xb8] sm:$0xff] %vm231_vm0, %v370_v40  ;;  %v351_v43 = vsel %vm350_vm6, %v345_v41, %v347_v34 }
  0xa9   : > { %754 = vrot.lane.b32.xlu0 %v2163_v4, %s2013_s24  ;;  %776 = vrot.lane.b32.xlu1 %v2084_v0, %s2014_s25  ;;  %v1535_v44 = vpack.c.bf16 %v373_v42, %v352_v39  ;;  %s2032_s24 = smov 12  }
  0xab   : > { %v366_v45 = vpop.permute.xlu0 %365  ;;  %v389_v46 = vpop.permute.xlu1 %388  ;;  %1641 = vmatprep.subr.bf16.mxu0 %v1535_v44 }
  0xac   : > { %v372_v47 = vsel %vm371_vm7, %v366_v45, %v368_v38  ;;  %vm652_vm7 = vcmask 646144  }
  0xad   : > { %778 = vrot.lane.b32.xlu0 %v2095_v3, %s2014_s25  ;;  %802 = vrot.lane.b32.xlu1 %v2084_v0, %s2015_s26  ;;  %v1534_v48 = vpack.c.bf16 %v372_v47, %v351_v43 }
  0xaf   : > { %v391_v49 = vpop.permute.xlu0 %390  ;;  %v410_v50 = vpop.permute.xlu1 %409  ;;  %1642 = vmatpush1.bf16.msra.mxu0 %v1534_v48 }
  0xb0   : > { %v394_v51 = vsel %vm392_vm8, %v389_v46, %v391_v49  ;;  %400 = vst.msk [vmem:[#allocation2 + $0xd0] sm:$0xff] %vm231_vm0, %v391_v49 }
  0xb1   : > { %804 = vrot.lane.b32.xlu0 %v2095_v3, %s2015_s26  ;;  %774 = vrot.lane.b32.xlu1 %v2087_v1, %s2014_s25 }
  0xb3   : > { %v412_v52 = vpop.permute.xlu0 %411  ;;  %v387_v53 = vpop.permute.xlu1 %386 }
  0xb4   : > { %v415_v54 = vsel %vm413_vm9, %v410_v50, %v412_v52  ;;  %421 = vst.msk [vmem:[#allocation2 + $0xe8] sm:$0xff] %vm231_vm0, %v412_v52  ;;  %v393_v55 = vsel %vm392_vm8, %v387_v53, %v389_v46  ;;  %v2268_v53 = vld [vmem:[%s2554_s1] sm:$0xff]  ;;  %vm678_vm8 = vcmask 637952  }
  0xb5   : > { %780 = vrot.lane.b32.xlu0 %v2163_v4, %s2014_s25  ;;  %800 = vrot.lane.b32.xlu1 %v2087_v1, %s2015_s26  ;;  %v1538_v56 = vpack.c.bf16 %v415_v54, %v394_v51 }
  0xb7   : > { %v408_v57 = vpop.permute.xlu0 %407  ;;  %v431_v58 = vpop.permute.xlu1 %430  ;;  %1643 = vmatprep.subr.bf16.mxu0 %v1538_v56 }
  0xb8   : > { %v414_v59 = vsel %vm413_vm9, %v408_v57, %v410_v50  ;;  %vm704_vm9 = vcmask 506880  }
  0xb9   : > { %806 = vrot.lane.b32.xlu0 %v2163_v4, %s2015_s26  ;;  %828 = vrot.lane.b32.xlu1 %v2084_v0, %s2016_s30  ;;  %v1537_v60 = vpack.c.bf16 %v414_v59, %v393_v55  ;;  %v1885_v55 = vcombine.high %v2268_v53, %v2268_v53 }
  0xbb   : > { %v433_v61 = vpop.permute.xlu0 %432  ;;  %v452_v62 = vpop.permute.xlu1 %451  ;;  %1644 = vmatpush1.bf16.msra.mxu0 %v1537_v60  ;;  %1667 = vmatprep.mubr.bf16.mxu0 %v1885_v55 }
  0xbc   : > { %v436_v63 = vsel %vm434_vm10, %v431_v58, %v433_v61  ;;  %442 = vst.msk [vmem:[#allocation2 + $0x100] sm:$0xff] %vm231_vm0, %v433_v61  ;;  %1749 = vmatprep.mubr.bf16.mxu1 %v1885_v55  ;;  %v1380_v61 = vld [vmem:[#allocation2 + $0x10] sm:$0xff] }
  0xbd   : > { %830 = vrot.lane.b32.xlu0 %v2095_v3, %s2016_s30  ;;  %854 = vrot.lane.b32.xlu1 %v2084_v0, %s2017_s6 }
  0xbf   : > { %v454_v5 = vpop.permute.xlu0 %453  ;;  %v429_v6 = vpop.permute.xlu1 %428 }
  0xc0   : > { %v457_v7 = vsel %vm455_vm11, %v452_v62, %v454_v5  ;;  %463 = vst.msk [vmem:[#allocation2 + $0x118] sm:$0xff] %vm231_vm0, %v454_v5  ;;  %v435_v8 = vsel %vm434_vm10, %v429_v6, %v431_v58  ;;  %vm730_vm10 = vcmask 498688  }
  0xc1   : > { %856 = vrot.lane.b32.xlu0 %v2095_v3, %s2017_s6  ;;  %826 = vrot.lane.b32.xlu1 %v2087_v1, %s2016_s30  ;;  %v1541_v9 = vpack.c.bf16 %v457_v7, %v436_v63 }
  0xc3   : > { %v450_v10 = vpop.permute.xlu0 %449  ;;  %v473_v11 = vpop.permute.xlu1 %472  ;;  %1645 = vmatprep.subr.bf16.mxu0 %v1541_v9 }
  0xc4   : > { %v456_v12 = vsel %vm455_vm11, %v450_v10, %v452_v62  ;;  %v1383_v62 = vld [vmem:[#allocation2 + $0x28] sm:$0xff]  ;;  %v2290_v10 = vld [vmem:[%s2081_s23] sm:$0xff]  ;;  %vm756_vm11 = vcmask 490496  }
  0xc5   : > { %832 = vrot.lane.b32.xlu0 %v2163_v4, %s2016_s30  ;;  %852 = vrot.lane.b32.xlu1 %v2087_v1, %s2017_s6  ;;  %v1540_v13 = vpack.c.bf16 %v456_v12, %v435_v8  ;;  %v1527_v9 = vpack.c.bf16 %v1383_v62, %v1380_v61  ;;  %s2036_s30 = smov 118  }
  0xc7   : > { %v475_v14 = vpop.permute.xlu0 %474  ;;  %v494_v15 = vpop.permute.xlu1 %493  ;;  %1646 = vmatpush1.bf16.msra.mxu0 %v1540_v13 }
  0xc8   : > { %v478_v16 = vsel %vm476_vm12, %v473_v11, %v475_v14  ;;  %484 = vst.msk [vmem:[#allocation2 + $0x130] sm:$0xff] %vm231_vm0, %v475_v14 }
  0xc9   : > { %858 = vrot.lane.b32.xlu0 %v2163_v4, %s2017_s6  ;;  %880 = vrot.lane.b32.xlu1 %v2084_v0, %s2018_s7 }
  0xcb   : > { %v496_v17 = vpop.permute.xlu0 %495  ;;  %v471_v18 = vpop.permute.xlu1 %470 }
  0xcc   : > { %v499_v19 = vsel %vm497_vm13, %v494_v15, %v496_v17  ;;  %505 = vst.msk [vmem:[#allocation2 + $0x148] sm:$0xff] %vm231_vm0, %v496_v17  ;;  %v477_v20 = vsel %vm476_vm12, %v471_v18, %v473_v11  ;;  %vm782_vm12 = vcmask 482304  }
  0xcd   : > { %882 = vrot.lane.b32.xlu0 %v2095_v3, %s2018_s7  ;;  %906 = vrot.lane.b32.xlu1 %v2084_v0, %s2019_s8  ;;  %v1544_v21 = vpack.c.bf16 %v499_v19, %v478_v16 }
  0xcf   : > { %v492_v22 = vpop.permute.xlu0 %491  ;;  %v517_v23 = vpop.permute.xlu1 %516  ;;  %1647 = vmatprep.subr.bf16.mxu0 %v1544_v21 }
  0xd0   : > { %v498_v24 = vsel %vm497_vm13, %v492_v22, %v494_v15  ;;  %v2024_v15 = vmov 0   ;;  %vm808_vm13 = vcmask 474112  }
  0xd1   : > { %908 = vrot.lane.b32.xlu0 %v2095_v3, %s2019_s8  ;;  %878 = vrot.lane.b32.xlu1 %v2087_v1, %s2018_s7  ;;  %v1543_v25 = vpack.c.bf16 %v498_v24, %v477_v20  ;;  %v1386_v24 = vld [vmem:[#allocation2 + $0x40] sm:$0xff] }
  0xd2   : > { %1977 = vset.pattern.permute.xlu0 %v2024_v15  ;;  %1978 = vset.pattern.permute.xlu1 %v2024_v15 }
  0xd3   : > { %v2236_v26 = vpop.permute.xlu0 %518  ;;  %v543_v27 = vpop.permute.xlu1 %542  ;;  %1648 = vmatpush1.bf16.msra.mxu0 %v1543_v25  ;;  %v1389_v25 = vld [vmem:[#allocation2 + $0x58] sm:$0xff] }
  0xd4   : > { %v524_v28 = vsel %vm522_vm14, %v517_v23, %v2236_v26 }
  0xd5   : > { %884 = vrot.lane.b32.xlu0 %v2163_v4, %s2018_s7  ;;  %904 = vrot.lane.b32.xlu1 %v2087_v1, %s2019_s8 }
  0xd7   : > { %v2242_v29 = vpop.permute.xlu0 %544  ;;  %v515_v30 = vpop.permute.xlu1 %514 }
  0xd8   : > { %v550_v31 = vsel %vm548_vm15, %v543_v27, %v2242_v29  ;;  %v523_v32 = vsel %vm522_vm14, %v515_v30, %v517_v23 }
  0xd9   : > { %910 = vrot.lane.b32.xlu0 %v2163_v4, %s2019_s8  ;;  %932 = vrot.lane.b32.xlu1 %v2084_v0, %s2020_s9  ;;  %v1547_v33 = vpack.c.bf16 %v550_v31, %v524_v28 }
  0xdb   : > { %v541_v34 = vpop.permute.xlu0 %540  ;;  %v569_v35 = vpop.permute.xlu1 %568  ;;  %1649 = vmatprep.subr.bf16.mxu0 %v1547_v33 }
  0xdc   : > { %v549_v36 = vsel %vm548_vm15, %v541_v34, %v543_v27  ;;  %v1530_v34 = vpack.c.bf16 %v1389_v25, %v1386_v24 }
  0xdd   : > { %934 = vrot.lane.b32.xlu0 %v2095_v3, %s2020_s9  ;;  %958 = vrot.lane.b32.xlu1 %v2084_v0, %s2021_s10  ;;  %v1546_v37 = vpack.c.bf16 %v549_v36, %v523_v32 }
  0xdf   : > { %v571_v38 = vpop.permute.xlu0 %570  ;;  %v595_v39 = vpop.permute.xlu1 %594  ;;  %1650 = vmatpush1.bf16.msra.mxu0 %v1546_v37 }
  0xe0   : > { %v576_v40 = vsel %vm574_vm1, %v569_v35, %v571_v38 }
  0xe1   : > { %960 = vrot.lane.b32.xlu0 %v2095_v3, %s2021_s10  ;;  %930 = vrot.lane.b32.xlu1 %v2087_v1, %s2020_s9 }
  0xe3   : > { %v597_v41 = vpop.permute.xlu0 %596  ;;  %v567_v42 = vpop.permute.xlu1 %566 }
  0xe4   : > { %v602_v43 = vsel %vm600_vm2, %v595_v39, %v597_v41  ;;  %v575_v44 = vsel %vm574_vm1, %v567_v42, %v569_v35 }
  0xe5   : > { %936 = vrot.lane.b32.xlu0 %v2163_v4, %s2020_s9  ;;  %956 = vrot.lane.b32.xlu1 %v2087_v1, %s2021_s10  ;;  %v1550_v45 = vpack.c.bf16 %v602_v43, %v576_v40 }
  0xe7   : > { %v573_v46 = vpop.permute.xlu0 %572  ;;  %v593_v47 = vpop.permute.xlu1 %592  ;;  %1651 = vmatprep.subr.bf16.mxu0 %v1550_v45 }
  0xe8   : > { %v577_v48 = vsel %vm574_vm1, %v571_v38, %v573_v46  ;;  %v601_v49 = vsel %vm600_vm2, %v593_v47, %v595_v39  ;;  %v1392_v47 = vld [vmem:[#allocation2 + $0x70] sm:$0xff]  ;;  %vm834_vm1 = vcmask 465920  }
  0xe9   : > { %583 = vst.msk [vmem:[#allocation2 + $0x190] sm:$0xff] %vm231_vm0, %v577_v48  ;;  %962 = vrot.lane.b32.xlu0 %v2163_v4, %s2021_s10  ;;  %520 = vrot.lane.b32.xlu1 %v2163_v4, %s2004_s12  ;;  %v1549_v50 = vpack.c.bf16 %v601_v49, %v575_v44  ;;  %s2022_s12 = smov 36   ;;  %v1395_v48 = vld [vmem:[#allocation2 + $0x88] sm:$0xff] }
  0xeb   : > { %v599_v51 = vpop.permute.xlu0 %598  ;;  %v621_v52 = vpop.permute.xlu1 %620  ;;  %1652 = vmatpush1.bf16.msra.mxu0 %v1549_v50 }
  0xec   : > { %v603_v54 = vsel %vm600_vm2, %v597_v41, %v599_v51  ;;  %vm860_vm2 = vcmask 457728  }
  0xed   : > { %609 = vst.msk [vmem:[#allocation2 + $0x1a8] sm:$0xff] %vm231_vm0, %v603_v54  ;;  %546 = vrot.lane.b32.xlu0 %v2163_v4, %s2005_s13  ;;  %984 = vrot.lane.b32.xlu1 %v2084_v0, %s2022_s12  ;;  %s2025_s13 = smov 34  }
  0xef   : > { %v623_v56 = vpop.permute.xlu0 %622  ;;  %v647_v57 = vpop.permute.xlu1 %646 }
  0xf0   : > { %v628_v58 = vsel %vm626_vm3, %v621_v52, %v623_v56  ;;  %v1428_v6 = vld [vmem:[#allocation2 + $0x190] sm:$0xff] }
  0xf1   : > { %986 = vrot.lane.b32.xlu0 %v2095_v3, %s2022_s12  ;;  %1010 = vrot.lane.b32.xlu1 %v2084_v0, %s2023_s15 }
  0xf3   : > { %v649_v59 = vpop.permute.xlu0 %648  ;;  %v619_v60 = vpop.permute.xlu1 %618 }
  0xf4   : > { %v654_v63 = vsel %vm652_vm7, %v647_v57, %v649_v59  ;;  %v627_v5 = vsel %vm626_vm3, %v619_v60, %v621_v52  ;;  %v1431_v7 = vld [vmem:[#allocation2 + $0x1a8] sm:$0xff] }
  0xf5   : > { %1012 = vrot.lane.b32.xlu0 %v2095_v3, %s2023_s15  ;;  %982 = vrot.lane.b32.xlu1 %v2087_v1, %s2022_s12  ;;  %v1551_v8 = vpack.c.bf16 %v1431_v7, %v1428_v6  ;;  %v1553_v0 = vpack.c.bf16 %v654_v63, %v628_v58  ;;  %v2300_v3 = vld [vmem:[%s2081_s23 + $0x8] sm:$0xff] }
  0xf7   : > { %1894 = vmatprep.subr.bf16.mxu1 %v1551_v8  ;;  %v625_v11 = vpop.permute.xlu0 %624  ;;  %v645_v12 = vpop.permute.xlu1 %644  ;;  %1653 = vmatprep.subr.bf16.mxu0 %v1553_v0 }
  0xf8   : > { %v629_v13 = vsel %vm626_vm3, %v623_v56, %v625_v11  ;;  %v653_v14 = vsel %vm652_vm7, %v645_v12, %v647_v57  ;;  %1895 = vmatpush3.bf16.msra.mxu1 %v1527_v9  ;;  %v1533_v56 = vpack.c.bf16 %v1395_v48, %v1392_v47  ;;  %v2346_v57 = vld [vmem:[%s2081_s23 + $0x18] sm:$0xff]  ;;  %s2029_s23 = smov 15   ;;  %v1398_v12 = vld [vmem:[#allocation2 + $0xa0] sm:$0xff]  ;;  %vm886_vm3 = vcmask 326656  }
  0xf9   : > { %635 = vst.msk [vmem:[#allocation2 + $0x1c0] sm:$0xff] %vm231_vm0, %v629_v13  ;;  %1008 = vrot.lane.b32.xlu0 %v2290_v10, %s2023_s15  ;;  %988 = vrot.lane.b32.xlu1 %v2163_v4, %s2022_s12  ;;  %v1552_v1 = vpack.c.bf16 %v653_v14, %v627_v5  ;;  %v1401_v13 = vld [vmem:[#allocation2 + $0xb8] sm:$0xff] }
  0xfb   : > { %v651_v16 = vpop.permute.xlu0 %650  ;;  %v673_v17 = vpop.permute.xlu1 %672  ;;  %1654 = vmatpush1.bf16.msra.mxu0 %v1552_v1 }
  0xfc   : > { %v655_v18 = vsel %vm652_vm7, %v649_v59, %v651_v16  ;;  %vm912_vm7 = vcmask 318464  }
  0xfd   : > { %661 = vst.msk [vmem:[#allocation2 + $0x1d8] sm:$0xff] %vm231_vm0, %v655_v18  ;;  %1014 = vrot.lane.b32.xlu0 %v2163_v4, %s2023_s15  ;;  %1036 = vrot.lane.b32.xlu1 %v2300_v3, %s2025_s13 }
  0xff   : > { %v675_v19 = vpop.permute.xlu0 %674  ;;  %v699_v20 = vpop.permute.xlu1 %698 }
 0x100   : > { %v680_v21 = vsel %vm678_vm8, %v673_v17, %v675_v19  ;;  %v1434_v30 = vld [vmem:[#allocation2 + $0x1c0] sm:$0xff] }
 0x101   : > { %1038 = vrot.lane.b32.xlu0 %v2092_v2, %s2025_s13  ;;  %1062 = vrot.lane.b32.xlu1 %v2300_v3, %s2026_s16 }
 0x103   : > { %v701_v22 = vpop.permute.xlu0 %700  ;;  %v671_v23 = vpop.permute.xlu1 %670 }
 0x104   : > { %v706_v27 = vsel %vm704_vm9, %v699_v20, %v701_v22  ;;  %v679_v28 = vsel %vm678_vm8, %v671_v23, %v673_v17  ;;  %v1437_v31 = vld [vmem:[#allocation2 + $0x1d8] sm:$0xff] }
 0x105   : > { %1064 = vrot.lane.b32.xlu0 %v2092_v2, %s2026_s16  ;;  %1034 = vrot.lane.b32.xlu1 %v2290_v10, %s2025_s13  ;;  %v1554_v32 = vpack.c.bf16 %v1437_v31, %v1434_v30  ;;  %v1556_v33 = vpack.c.bf16 %v706_v27, %v680_v21 }
 0x107   : > { %v677_v35 = vpop.permute.xlu0 %676  ;;  %v697_v36 = vpop.permute.xlu1 %696  ;;  %1896 = vmatprep.subr.bf16.mxu1 %v1554_v32  ;;  %1655 = vmatprep.subr.bf16.mxu0 %v1556_v33 }
 0x108   : > { %v681_v37 = vsel %vm678_vm8, %v675_v19, %v677_v35  ;;  %v705_v38 = vsel %vm704_vm9, %v697_v36, %v699_v20  ;;  %1897 = vmatpush3.bf16.msra.mxu1 %v1530_v34  ;;  %v1536_v20 = vpack.c.bf16 %v1401_v13, %v1398_v12  ;;  %v1404_v36 = vld [vmem:[#allocation2 + $0xd0] sm:$0xff]  ;;  %vm938_vm8 = vcmask 310272  }
 0x109   : > { %687 = vst.msk [vmem:[#allocation2 + $0x1f0] sm:$0xff] %vm231_vm0, %v681_v37  ;;  %1060 = vrot.lane.b32.xlu0 %v2290_v10, %s2026_s16  ;;  %1040 = vrot.lane.b32.xlu1 %v2163_v4, %s2025_s13  ;;  %v1555_v39 = vpack.c.bf16 %v705_v38, %v679_v28  ;;  %v1407_v37 = vld [vmem:[#allocation2 + $0xe8] sm:$0xff]  ;;  %s224_s13 = scalar_lea.vmem %s2558_s5, %s1922_s14 }
 0x10b   : > { %v703_v40 = vpop.permute.xlu0 %702  ;;  %v725_v41 = vpop.permute.xlu1 %724  ;;  %1656 = vmatpush1.bf16.msra.mxu0 %v1555_v39 }
 0x10c   : > { %v707_v42 = vsel %vm704_vm9, %v701_v22, %v703_v40  ;;  %vm964_vm9 = vcmask 302080  }
 0x10d   : > { %713 = vst.msk [vmem:[#allocation2 + $0x208] sm:$0xff] %vm231_vm0, %v707_v42  ;;  %1066 = vrot.lane.b32.xlu0 %v2163_v4, %s2026_s16  ;;  %1088 = vrot.lane.b32.xlu1 %v2300_v3, %s2027_s17 }
 0x10f   : > { %v727_v43 = vpop.permute.xlu0 %726  ;;  %v751_v44 = vpop.permute.xlu1 %750 }
 0x110   : > { %v732_v45 = vsel %vm730_vm10, %v725_v41, %v727_v43  ;;  %v1440_v51 = vld [vmem:[#allocation2 + $0x1f0] sm:$0xff] }
 0x111   : > { %1090 = vrot.lane.b32.xlu0 %v2092_v2, %s2027_s17  ;;  %1114 = vrot.lane.b32.xlu1 %v2300_v3, %s2028_s20 }
 0x113   : > { %v753_v46 = vpop.permute.xlu0 %752  ;;  %v723_v4 = vpop.permute.xlu1 %722 }
 0x114   : > { %v758_v49 = vsel %vm756_vm11, %v751_v44, %v753_v46  ;;  %v731_v50 = vsel %vm730_vm10, %v723_v4, %v725_v41  ;;  %v1443_v52 = vld [vmem:[#allocation2 + $0x208] sm:$0xff] }
 0x115   : > { %1116 = vrot.lane.b32.xlu0 %v2092_v2, %s2028_s20  ;;  %1086 = vrot.lane.b32.xlu1 %v2290_v10, %s2027_s17  ;;  %v1557_v54 = vpack.c.bf16 %v1443_v52, %v1440_v51  ;;  %v1559_v55 = vpack.c.bf16 %v758_v49, %v732_v45 }
 0x117   : > { %v729_v58 = vpop.permute.xlu0 %728  ;;  %v749_v59 = vpop.permute.xlu1 %748  ;;  %1898 = vmatprep.subr.bf16.mxu1 %v1557_v54  ;;  %1657 = vmatprep.subr.bf16.mxu0 %v1559_v55 }
 0x118   : > { %v733_v60 = vsel %vm730_vm10, %v727_v43, %v729_v58  ;;  %v757_v61 = vsel %vm756_vm11, %v749_v59, %v751_v44  ;;  %1899 = vmatpush3.bf16.msra.mxu1 %v1533_v56  ;;  %v1539_v44 = vpack.c.bf16 %v1407_v37, %v1404_v36  ;;  %v1410_v58 = vld [vmem:[#allocation2 + $0x100] sm:$0xff]  ;;  %v1413_v59 = vld [vmem:[#allocation2 + $0x118] sm:$0xff]  ;;  %v1884_v37 = vcombine.low %v2268_v53, %v2268_v53 }
 0x119   : > { %739 = vst.msk [vmem:[#allocation2 + $0x220] sm:$0xff] %vm231_vm0, %v733_v60  ;;  %1112 = vrot.lane.b32.xlu0 %v2290_v10, %s2028_s20  ;;  %1092 = vrot.lane.b32.xlu1 %v2346_v57, %s2027_s17  ;;  %v1558_v62 = vpack.c.bf16 %v757_v61, %v731_v50  ;;  %vm1621_vm10 = vcmask 64512  }
 0x11b   : > { %v755_v63 = vpop.permute.xlu0 %754  ;;  %v777_v5 = vpop.permute.xlu1 %776  ;;  %1658 = vmatpush1.bf16.msra.mxu0 %v1558_v62 }
 0x11c   : > { %v759_v6 = vsel %vm756_vm11, %v753_v46, %v755_v63  ;;  %vm1016_vm11 = vcmask 285696  }
 0x11d   : > { %765 = vst.msk [vmem:[#allocation2 + $0x238] sm:$0xff] %vm231_vm0, %v759_v6  ;;  %1118 = vrot.lane.b32.xlu0 %v2346_v57, %s2028_s20  ;;  %1140 = vrot.lane.b32.xlu1 %v2300_v3, %s2029_s23 }
 0x11f   : > { %v779_v7 = vpop.permute.xlu0 %778  ;;  %v803_v8 = vpop.permute.xlu1 %802 }
 0x120   : > { %v784_v0 = vsel %vm782_vm12, %v777_v5, %v779_v7  ;;  %v1446_v16 = vld [vmem:[#allocation2 + $0x220] sm:$0xff] }
 0x121   : > { %1142 = vrot.lane.b32.xlu0 %v2092_v2, %s2029_s23  ;;  %1166 = vrot.lane.b32.xlu1 %v2300_v3, %s2030_s21 }
 0x123   : > { %v805_v9 = vpop.permute.xlu0 %804  ;;  %v775_v11 = vpop.permute.xlu1 %774 }
 0x124   : > { %v810_v14 = vsel %vm808_vm13, %v803_v8, %v805_v9  ;;  %v783_v1 = vsel %vm782_vm12, %v775_v11, %v777_v5  ;;  %v1449_v17 = vld [vmem:[#allocation2 + $0x238] sm:$0xff] }
 0x125   : > { %1168 = vrot.lane.b32.xlu0 %v2092_v2, %s2030_s21  ;;  %1138 = vrot.lane.b32.xlu1 %v2290_v10, %s2029_s23  ;;  %v1560_v18 = vpack.c.bf16 %v1449_v17, %v1446_v16  ;;  %v1562_v19 = vpack.c.bf16 %v810_v14, %v784_v0 }
 0x127   : > { %v781_v21 = vpop.permute.xlu0 %780  ;;  %v801_v22 = vpop.permute.xlu1 %800  ;;  %1900 = vmatprep.subr.bf16.mxu1 %v1560_v18  ;;  %1659 = vmatprep.subr.bf16.mxu0 %v1562_v19 }
 0x128   : > { %v785_v23 = vsel %vm782_vm12, %v779_v7, %v781_v21  ;;  %v809_v24 = vsel %vm808_vm13, %v801_v22, %v803_v8  ;;  %1901 = vmatpush3.bf16.msra.mxu1 %v1536_v20  ;;  %v1542_v7 = vpack.c.bf16 %v1413_v59, %v1410_v58  ;;  %v1416_v21 = vld [vmem:[#allocation2 + $0x130] sm:$0xff]  ;;  %v1419_v22 = vld [vmem:[#allocation2 + $0x148] sm:$0xff]  ;;  %vm1068_vm12 = vcmask 146432  }
 0x129   : > { %791 = vst.msk [vmem:[#allocation2 + $0x250] sm:$0xff] %vm231_vm0, %v785_v23  ;;  %1164 = vrot.lane.b32.xlu0 %v2290_v10, %s2030_s21  ;;  %1144 = vrot.lane.b32.xlu1 %v2346_v57, %s2029_s23  ;;  %v1561_v25 = vpack.c.bf16 %v809_v24, %v783_v1 }
 0x12b   : > { %v807_v27 = vpop.permute.xlu0 %806  ;;  %v829_v28 = vpop.permute.xlu1 %828  ;;  %1660 = vmatpush1.bf16.msra.mxu0 %v1561_v25 }
 0x12c   : > { %v811_v30 = vsel %vm808_vm13, %v805_v9, %v807_v27  ;;  %vm1094_vm13 = vcmask 138240  }
 0x12d   : > { %817 = vst.msk [vmem:[#allocation2 + $0x268] sm:$0xff] %vm231_vm0, %v811_v30  ;;  %1170 = vrot.lane.b32.xlu0 %v2346_v57, %s2030_s21  ;;  %1192 = vrot.lane.b32.xlu1 %v2300_v3, %s2031_s22 }
 0x12f   : > { %v831_v31 = vpop.permute.xlu0 %830  ;;  %v855_v32 = vpop.permute.xlu1 %854 }
 0x130   : > { %v836_v33 = vsel %vm834_vm1, %v829_v28, %v831_v31  ;;  %v1452_v40 = vld [vmem:[#allocation2 + $0x250] sm:$0xff] }
 0x131   : > { %1194 = vrot.lane.b32.xlu0 %v2092_v2, %s2031_s22  ;;  %1218 = vrot.lane.b32.xlu1 %v2300_v3, %s2032_s24 }
 0x133   : > { %v857_v34 = vpop.permute.xlu0 %856  ;;  %v827_v35 = vpop.permute.xlu1 %826 }
 0x134   : > { %v862_v38 = vsel %vm860_vm2, %v855_v32, %v857_v34  ;;  %v835_v39 = vsel %vm834_vm1, %v827_v35, %v829_v28  ;;  %v1455_v41 = vld [vmem:[#allocation2 + $0x268] sm:$0xff] }
 0x135   : > { %1220 = vrot.lane.b32.xlu0 %v2092_v2, %s2032_s24  ;;  %1190 = vrot.lane.b32.xlu1 %v2290_v10, %s2031_s22  ;;  %v1563_v42 = vpack.c.bf16 %v1455_v41, %v1452_v40  ;;  %v1565_v43 = vpack.c.bf16 %v862_v38, %v836_v33  ;;  %v2450_v40 = vld [vmem:[%s2554_s1 + $0x8] sm:$0xff] }
 0x137   : > { %v833_v45 = vpop.permute.xlu0 %832  ;;  %v853_v46 = vpop.permute.xlu1 %852  ;;  %1902 = vmatprep.subr.bf16.mxu1 %v1563_v42  ;;  %1661 = vmatprep.subr.bf16.mxu0 %v1565_v43  ;;  %v1887_v43 = vcombine.high %v2450_v40, %v2450_v40 }
 0x138   : > { %v837_v4 = vsel %vm834_vm1, %v831_v31, %v833_v45  ;;  %v861_v47 = vsel %vm860_vm2, %v853_v46, %v855_v32  ;;  %1903 = vmatpush3.bf16.msra.mxu1 %v1539_v44  ;;  %v1545_v31 = vpack.c.bf16 %v1419_v22, %v1416_v21  ;;  %vm1120_vm1 = vcmask 130048  }
 0x139   : > { %843 = vst.msk [vmem:[#allocation2 + $0x280] sm:$0xff] %vm231_vm0, %v837_v4  ;;  %1216 = vrot.lane.b32.xlu0 %v2290_v10, %s2032_s24  ;;  %1196 = vrot.lane.b32.xlu1 %v2346_v57, %s2031_s22  ;;  %v1564_v48 = vpack.c.bf16 %v861_v47, %v835_v39 }
 0x13b   : > { %v859_v49 = vpop.permute.xlu0 %858  ;;  %v881_v50 = vpop.permute.xlu1 %880  ;;  %1662 = vmatpush1.bf16.msra.mxu0 %v1564_v48 }
 0x13c   : > { %v863_v51 = vsel %vm860_vm2, %v857_v34, %v859_v49  ;;  %v1602_v49 = vld [vmem:[%s2555_s2] sm:$0xff]  ;;  %vm1146_vm2 = vcmask 121856  }
 0x13d   : > { %869 = vst.msk [vmem:[#allocation2 + $0x298] sm:$0xff] %vm231_vm0, %v863_v51  ;;  %1222 = vrot.lane.b32.xlu0 %v2346_v57, %s2032_s24  ;;  %1242 = vrot.lane.b32.xlu1 %v2092_v2, %s1994_s27 }
 0x13f   : > { %v883_v52 = vpop.permute.xlu0 %882  ;;  %v907_v10 = vpop.permute.xlu1 %906 }
 0x140   : > { %v888_v54 = vsel %vm886_vm3, %v881_v50, %v883_v52  ;;  %v1458_v62 = vld [vmem:[#allocation2 + $0x280] sm:$0xff] }
 0x141   : > { %1244 = vrot.lane.b32.xlu0 %v2346_v57, %s1994_s27  ;;  %1262 = vrot.lane.b32.xlu1 %v2092_v2, %s1995_s28 }
 0x143   : > { %v909_v55 = vpop.permute.xlu0 %908  ;;  %v879_v56 = vpop.permute.xlu1 %878 }
 0x144   : > { %v914_v60 = vsel %vm912_vm7, %v907_v10, %v909_v55  ;;  %v887_v61 = vsel %vm886_vm3, %v879_v56, %v881_v50  ;;  %v1461_v63 = vld [vmem:[#allocation2 + $0x298] sm:$0xff]  ;;  %v1809_v56 = vld [vmem:[%s2557_s4] sm:$0xff] }
 0x145   : > { %1264 = vrot.lane.b32.xlu0 %v2346_v57, %s1995_s28  ;;  %1240 = vrot.lane.b32.xlu1 %v2300_v3, %s1994_s27  ;;  %v1566_v5 = vpack.c.bf16 %v1461_v63, %v1458_v62  ;;  %v1568_v6 = vpack.c.bf16 %v914_v60, %v888_v54  ;;  %s2033_s27 = smov 121  }
 0x147   : > { %v885_v8 = vpop.permute.xlu0 %884  ;;  %v905_v0 = vpop.permute.xlu1 %904  ;;  %1904 = vmatprep.subr.bf16.mxu1 %v1566_v5  ;;  %1663 = vmatprep.subr.bf16.mxu0 %v1568_v6 }
 0x148   : > { %v889_v9 = vsel %vm886_vm3, %v883_v52, %v885_v8  ;;  %v913_v11 = vsel %vm912_vm7, %v905_v0, %v907_v10  ;;  %1905 = vmatpush3.bf16.msra.mxu1 %v1542_v7  ;;  %vm1172_vm3 = vcmask 113664  }
 0x149   : > { %895 = vst.msk [vmem:[#allocation2 + $0x2b0] sm:$0xff] %vm231_vm0, %v889_v9  ;;  %1260 = vrot.lane.b32.xlu0 %v2300_v3, %s1995_s28  ;;  %1282 = vrot.lane.b32.xlu1 %v2092_v2, %s1996_s29  ;;  %v1567_v12 = vpack.c.bf16 %v913_v11, %v887_v61  ;;  %s2034_s28 = smov 120  }
 0x14b   : > { %v911_v13 = vpop.permute.xlu0 %910  ;;  %v933_v14 = vpop.permute.xlu1 %932  ;;  %1664 = vmatpush1.bf16.msra.mxu0 %v1567_v12 }
 0x14c   : > { %v915_v1 = vsel %vm912_vm7, %v909_v55, %v911_v13  ;;  %vm1198_vm7 = vcmask 105472  }
 0x14d   : > { %921 = vst.msk [vmem:[#allocation2 + $0x2c8] sm:$0xff] %vm231_vm0, %v915_v1  ;;  %1284 = vrot.lane.b32.xlu0 %v2346_v57, %s1996_s29  ;;  %1302 = vrot.lane.b32.xlu1 %v2092_v2, %s2033_s27 }
 0x14f   : > { %v935_v16 = vpop.permute.xlu0 %934  ;;  %v959_v17 = vpop.permute.xlu1 %958 }
 0x150   : > { %v940_v18 = vsel %vm938_vm8, %v933_v14, %v935_v16  ;;  %v1464_v25 = vld [vmem:[#allocation2 + $0x2b0] sm:$0xff] }
 0x151   : > { %1304 = vrot.lane.b32.xlu0 %v2346_v57, %s2033_s27  ;;  %1280 = vrot.lane.b32.xlu1 %v2300_v3, %s1996_s29  ;;  %s2035_s29 = smov 119  }
 0x153   : > { %v961_v19 = vpop.permute.xlu0 %960  ;;  %v931_v20 = vpop.permute.xlu1 %930 }
 0x154   : > { %v966_v23 = vsel %vm964_vm9, %v959_v17, %v961_v19  ;;  %v939_v24 = vsel %vm938_vm8, %v931_v20, %v933_v14  ;;  %v1467_v27 = vld [vmem:[#allocation2 + $0x2c8] sm:$0xff] }
 0x155   : > { %1300 = vrot.lane.b32.xlu0 %v2300_v3, %s2033_s27  ;;  %1323 = vrot.lane.b32.xlu1 %v2092_v2, %s2034_s28  ;;  %v1569_v28 = vpack.c.bf16 %v1467_v27, %v1464_v25  ;;  %v1571_v30 = vpack.c.bf16 %v966_v23, %v940_v18 }
 0x157   : > { %v937_v32 = vpop.permute.xlu0 %936  ;;  %v957_v33 = vpop.permute.xlu1 %956  ;;  %1906 = vmatprep.subr.bf16.mxu1 %v1569_v28  ;;  %1665 = vmatprep.subr.bf16.mxu0 %v1571_v30 }
 0x158   : > { %v941_v34 = vsel %vm938_vm8, %v935_v16, %v937_v32  ;;  %v965_v35 = vsel %vm964_vm9, %v957_v33, %v959_v17  ;;  %1907 = vmatpush3.bf16.msra.mxu1 %v1545_v31  ;;  %vm1224_vm8 = vcmask 97280  }
 0x159   : > { %947 = vst.msk [vmem:[#allocation2 + $0x2e0] sm:$0xff] %vm231_vm0, %v941_v34  ;;  %1325 = vrot.lane.b32.xlu0 %v2346_v57, %s2034_s28  ;;  %1344 = vrot.lane.b32.xlu1 %v2092_v2, %s2035_s29  ;;  %v1570_v36 = vpack.c.bf16 %v965_v35, %v939_v24 }
 0x15b   : > { %v963_v38 = vpop.permute.xlu0 %962  ;;  %v521_v39 = vpop.permute.xlu1 %520  ;;  %1666 = vmatpush1.bf16.msra.mxu0 %v1570_v36 }
 0x15c   : > { %v967_v41 = vsel %vm964_vm9, %v961_v19, %v963_v38  ;;  %v525_v42 = vsel %vm522_vm14, %v2236_v26, %v521_v39  ;;  %vm990_vm14 = vcmask 293888   ;;  %vm1348_vm9 = vcmask 973824  }
 0x15d   : > { %973 = vst.msk [vmem:[#allocation2 + $0x2f8] sm:$0xff] %vm231_vm0, %v967_v41  ;;  %531 = vst.msk [vmem:[#allocation2 + $0x160] sm:$0xff] %vm231_vm0, %v525_v42  ;;  %1346 = vrot.lane.b32.xlu0 %v2346_v57, %s2035_s29  ;;  %1321 = vrot.lane.b32.xlu1 %v2300_v3, %s2034_s28 }
 0x15e   : > { %1668 = vmatmul.mubr.bf16.vlgmr.msra.gmra.mrb[0].mxu0 %v1884_v37 }
 0x15f   : > { %v547_v53 = vpop.permute.xlu0 %546  ;;  %v985_v44 = vpop.permute.xlu1 %984  ;;  %1889 = vmatprep.mubr.msk.bf16.mxu0 %vm1621_vm10, %v1887_v43 }
 0x160   : > { %v551_v26 = vsel %vm548_vm15, %v2242_v29, %v547_v53  ;;  %v1470_v47 = vld [vmem:[#allocation2 + $0x2e0] sm:$0xff]  ;;  %vm1042_vm15 = vcmask 277504  }
 0x161   : > { %557 = vst.msk [vmem:[#allocation2 + $0x178] sm:$0xff] %vm231_vm0, %v551_v26  ;;  %1342 = vrot.lane.b32.xlu0 %v2300_v3, %s2035_s29  ;;  %1363 = vrot.lane.b32.xlu1 %v2300_v3, %s2036_s30  ;;  %v1800_v3 = vld [vmem:[%s2556_s3] sm:$0xff] }
 0x163   : > { %v987_v45 = vpop.permute.xlu0 %986  ;;  %v1011_v46 = vpop.permute.xlu1 %1010 }
 0x164   : > { %v992_v4 = vsel %vm990_vm14, %v985_v44, %v987_v45  ;;  %v1473_v48 = vld [vmem:[#allocation2 + $0x2f8] sm:$0xff] }
 0x165   : > { %1365 = vrot.lane.b32.xlu0 %v2092_v2, %s2036_s30  ;;  %1367 = vrot.lane.b32.xlu1 %v2346_v57, %s2036_s30  ;;  %v1572_v29 = vpack.c.bf16 %v1473_v48, %v1470_v47  ;;  %v1422_v2 = vld [vmem:[#allocation2 + $0x160] sm:$0xff] }
 0x167   : > { %v1013_v50 = vpop.permute.xlu0 %1012  ;;  %v983_v51 = vpop.permute.xlu1 %982  ;;  %1908 = vmatprep.subr.bf16.mxu1 %v1572_v29 }
 0x168   : > { %v1018_v52 = vsel %vm1016_vm11, %v1011_v46, %v1013_v50  ;;  %v991_v10 = vsel %vm990_vm14, %v983_v51, %v985_v44  ;;  %v1425_v54 = vld [vmem:[#allocation2 + $0x178] sm:$0xff] }
 0x169   : > { %v1548_v57 = vpack.c.bf16 %v1425_v54, %v1422_v2  ;;  %v1574_v55 = vpack.c.bf16 %v1018_v52, %v992_v4  ;;  %1605 = vperm.xlu0 %1977, %v1602_v49   ;;  %1803 = vperm.xlu1 %1978, %v1800_v3  }
 0x16b   : > { %v1009_v58 = vpop.permute.xlu0 %1008  ;;  %v989_v59 = vpop.permute.xlu1 %988  ;;  %1909 = vmatpush3.bf16.msra.mxu1 %v1548_v57  ;;  %1676 = vmatprep.subr.bf16.mxu0 %v1574_v55 }
 0x16c   : > { %v1017_v60 = vsel %vm1016_vm11, %v1009_v58, %v1011_v46  ;;  %v993_v61 = vsel %vm990_vm14, %v987_v45, %v989_v59  ;;  %1757 = vmatprep.subr.bf16.mxu1 %v2024_v15 }
 0x16d   : > { %999 = vst.msk [vmem:[#allocation2 + $0x310] sm:$0xff] %vm231_vm0, %v993_v61  ;;  %v1573_v62 = vpack.c.bf16 %v1017_v60, %v991_v10  ;;  %1812 = vperm.xlu1 %1978, %v1809_v56  }
 0x16e   : > { %1750 = vmatmul.mubr.bf16.vlgmr.msra.gmra.mrb[0].mxu1 %v1884_v37 }
 0x16f   : > { %v1015_v63 = vpop.permute.xlu0 %1014  ;;  %v1037_v5 = vpop.permute.xlu1 %1036  ;;  %1677 = vmatpush1.bf16.msra.mxu0 %v1573_v62  ;;  %1890 = vmatprep.mubr.msk.bf16.mxu1 %vm1621_vm10, %v1887_v43  ;;  %vm1625_vm10 = vcmask 1043456  }
 0x170   : > { %v1019_v6 = vsel %vm1016_vm11, %v1013_v50, %v1015_v63 }
 0x171   : > { %1025 = vst.msk [vmem:[#allocation2 + $0x328] sm:$0xff] %vm231_vm0, %v1019_v6 }
 0x173   : > { %v1039_v7 = vpop.permute.xlu0 %1038  ;;  %v1063_v8 = vpop.permute.xlu1 %1062 }
 0x174   : > { %v1044_v0 = vsel %vm1042_vm15, %v1037_v5, %v1039_v7  ;;  %v1476_v14 = vld [vmem:[#allocation2 + $0x310] sm:$0xff] }
 0x177   : > { %v1065_v9 = vpop.permute.xlu0 %1064  ;;  %v1035_v11 = vpop.permute.xlu1 %1034 }
 0x178   : > { %v1070_v12 = vsel %vm1068_vm12, %v1063_v8, %v1065_v9  ;;  %v1043_v13 = vsel %vm1042_vm15, %v1035_v11, %v1037_v5  ;;  %v1479_v1 = vld [vmem:[#allocation2 + $0x328] sm:$0xff] }
 0x179   : > { %v1575_v16 = vpack.c.bf16 %v1479_v1, %v1476_v14  ;;  %v1577_v17 = vpack.c.bf16 %v1070_v12, %v1044_v0 }
 0x17b   : > { %v1061_v18 = vpop.permute.xlu0 %1060  ;;  %v1041_v19 = vpop.permute.xlu1 %1040  ;;  %1758 = vmatpush1.bf16.msra.mxu1 %v1575_v16  ;;  %1678 = vmatprep.subr.bf16.mxu0 %v1577_v17 }
 0x17c   : > { %v1069_v20 = vsel %vm1068_vm12, %v1061_v18, %v1063_v8  ;;  %v1045_v21 = vsel %vm1042_vm15, %v1039_v7, %v1041_v19  ;;  %1759 = vmatprep.subr.bf16.mxu1 %v2024_v15 }
 0x17d   : > { %1051 = vst.msk [vmem:[#allocation2 + $0x340] sm:$0xff] %vm231_vm0, %v1045_v21  ;;  %v1576_v22 = vpack.c.bf16 %v1069_v20, %v1043_v13 }
 0x17f   : > { %v1067_v23 = vpop.permute.xlu0 %1066  ;;  %v1089_v24 = vpop.permute.xlu1 %1088  ;;  %1679 = vmatpush1.bf16.msra.mxu0 %v1576_v22 }
 0x180   : > { %v1071_v25 = vsel %vm1068_vm12, %v1065_v9, %v1067_v23 }
 0x181   : > { %1077 = vst.msk [vmem:[#allocation2 + $0x358] sm:$0xff] %vm231_vm0, %v1071_v25 }
 0x183   : > { %v1091_v27 = vpop.permute.xlu0 %1090  ;;  %v1115_v28 = vpop.permute.xlu1 %1114 }
 0x184   : > { %v1096_v30 = vsel %vm1094_vm13, %v1089_v24, %v1091_v27  ;;  %v1482_v35 = vld [vmem:[#allocation2 + $0x340] sm:$0xff] }
 0x187   : > { %v1117_v31 = vpop.permute.xlu0 %1116  ;;  %v1087_v32 = vpop.permute.xlu1 %1086 }
 0x188   : > { %v1122_v33 = vsel %vm1120_vm1, %v1115_v28, %v1117_v31  ;;  %v1095_v34 = vsel %vm1094_vm13, %v1087_v32, %v1089_v24  ;;  %v1485_v36 = vld [vmem:[#allocation2 + $0x358] sm:$0xff] }
 0x189   : > { %v1578_v37 = vpack.c.bf16 %v1485_v36, %v1482_v35  ;;  %v1580_v38 = vpack.c.bf16 %v1122_v33, %v1096_v30 }
 0x18b   : > { %v1113_v39 = vpop.permute.xlu0 %1112  ;;  %v1093_v41 = vpop.permute.xlu1 %1092  ;;  %1760 = vmatpush1.bf16.msra.mxu1 %v1578_v37  ;;  %1680 = vmatprep.subr.bf16.mxu0 %v1580_v38 }
 0x18c   : > { %v1121_v42 = vsel %vm1120_vm1, %v1113_v39, %v1115_v28  ;;  %v1097_v43 = vsel %vm1094_vm13, %v1091_v27, %v1093_v41  ;;  %1761 = vmatprep.subr.bf16.mxu1 %v2024_v15 }
 0x18d   : > { %1103 = vst.msk [vmem:[#allocation2 + $0x370] sm:$0xff] %vm231_vm0, %v1097_v43  ;;  %v1579_v53 = vpack.c.bf16 %v1121_v42, %v1095_v34 }
 0x18f   : > { %v1119_v44 = vpop.permute.xlu0 %1118  ;;  %v1141_v26 = vpop.permute.xlu1 %1140  ;;  %1681 = vmatpush1.bf16.msra.mxu0 %v1579_v53 }
 0x190   : > { %v1123_v45 = vsel %vm1120_vm1, %v1117_v31, %v1119_v44 }
 0x191   : > { %1129 = vst.msk [vmem:[#allocation2 + $0x388] sm:$0xff] %vm231_vm0, %v1123_v45 }
 0x193   : > { %v1143_v46 = vpop.permute.xlu0 %1142  ;;  %v1167_v4 = vpop.permute.xlu1 %1166 }
 0x194   : > { %v1148_v47 = vsel %vm1146_vm2, %v1141_v26, %v1143_v46  ;;  %v1488_v50 = vld [vmem:[#allocation2 + $0x370] sm:$0xff] }
 0x197   : > { %v1169_v48 = vpop.permute.xlu0 %1168  ;;  %v1139_v29 = vpop.permute.xlu1 %1138 }
 0x198   : > { %v1174_v49 = vsel %vm1172_vm3, %v1167_v4, %v1169_v48  ;;  %v1147_v3 = vsel %vm1146_vm2, %v1139_v29, %v1141_v26  ;;  %v1491_v51 = vld [vmem:[#allocation2 + $0x388] sm:$0xff] }
 0x199   : > { %v1581_v52 = vpack.c.bf16 %v1491_v51, %v1488_v50  ;;  %v1583_v10 = vpack.c.bf16 %v1174_v49, %v1148_v47 }
 0x19b   : > { %v1165_v2 = vpop.permute.xlu0 %1164  ;;  %v1145_v54 = vpop.permute.xlu1 %1144  ;;  %1762 = vmatpush1.bf16.msra.mxu1 %v1581_v52  ;;  %1682 = vmatprep.subr.bf16.mxu0 %v1583_v10 }
 0x19c   : > { %v1173_v57 = vsel %vm1172_vm3, %v1165_v2, %v1167_v4  ;;  %v1149_v55 = vsel %vm1146_vm2, %v1143_v46, %v1145_v54  ;;  %1763 = vmatprep.subr.bf16.mxu1 %v2024_v15 }
 0x19d   : > { %1155 = vst.msk [vmem:[#allocation2 + $0x3a0] sm:$0xff] %vm231_vm0, %v1149_v55  ;;  %v1582_v56 = vpack.c.bf16 %v1173_v57, %v1147_v3 }
 0x19f   : > { %v1171_v58 = vpop.permute.xlu0 %1170  ;;  %v1193_v59 = vpop.permute.xlu1 %1192  ;;  %1683 = vmatpush1.bf16.msra.mxu0 %v1582_v56 }
 0x1a0   : > { %v1175_v60 = vsel %vm1172_vm3, %v1169_v48, %v1171_v58 }
 0x1a1   : > { %1181 = vst.msk [vmem:[#allocation2 + $0x3b8] sm:$0xff] %vm231_vm0, %v1175_v60 }
 0x1a3   : > { %v1195_v61 = vpop.permute.xlu0 %1194  ;;  %v1219_v62 = vpop.permute.xlu1 %1218 }
 0x1a4   : > { %v1200_v63 = vsel %vm1198_vm7, %v1193_v59, %v1195_v61  ;;  %v1494_v0 = vld [vmem:[#allocation2 + $0x3a0] sm:$0xff] }
 0x1a7   : > { %v1221_v5 = vpop.permute.xlu0 %1220  ;;  %v1191_v6 = vpop.permute.xlu1 %1190 }
 0x1a8   : > { %v1226_v7 = vsel %vm1224_vm8, %v1219_v62, %v1221_v5  ;;  %v1199_v8 = vsel %vm1198_vm7, %v1191_v6, %v1193_v59  ;;  %v1497_v9 = vld [vmem:[#allocation2 + $0x3b8] sm:$0xff] }
 0x1a9   : > { %v1584_v11 = vpack.c.bf16 %v1497_v9, %v1494_v0  ;;  %v1586_v12 = vpack.c.bf16 %v1226_v7, %v1200_v63 }
 0x1ab   : > { %v1217_v13 = vpop.permute.xlu0 %1216  ;;  %v1197_v14 = vpop.permute.xlu1 %1196  ;;  %1764 = vmatpush1.bf16.msra.mxu1 %v1584_v11  ;;  %1684 = vmatprep.subr.bf16.mxu0 %v1586_v12 }
 0x1ac   : > { %v1225_v1 = vsel %vm1224_vm8, %v1217_v13, %v1219_v62  ;;  %v1201_v16 = vsel %vm1198_vm7, %v1195_v61, %v1197_v14  ;;  %1765 = vmatprep.subr.bf16.mxu1 %v2024_v15  ;;  %v1886_v14 = vcombine.low %v2450_v40, %v2450_v40 }
 0x1ad   : > { %1207 = vst.msk [vmem:[#allocation2 + $0x3d0] sm:$0xff] %vm231_vm0, %v1201_v16  ;;  %v1585_v17 = vpack.c.bf16 %v1225_v1, %v1199_v8 }
 0x1af   : > { %v1223_v18 = vpop.permute.xlu0 %1222  ;;  %v1243_v19 = vpop.permute.xlu1 %1242  ;;  %1685 = vmatpush1.bf16.msra.mxu0 %v1585_v17 }
 0x1b0   : > { %v1227_v20 = vsel %vm1224_vm8, %v1221_v5, %v1223_v18 }
 0x1b1   : > { %1233 = vst.msk [vmem:[#allocation2 + $0x3e8] sm:$0xff] %vm231_vm0, %v1227_v20 }
 0x1b3   : > { %v1245_v21 = vpop.permute.xlu0 %1244  ;;  %v1263_v22 = vpop.permute.xlu1 %1262 }
 0x1b4   : > { %v1247_v23 = vsel %vm308_vm4, %v1243_v19, %v1245_v21  ;;  %1253 = vst.msk [vmem:[#allocation2 + $0x400] sm:$0xff] %vm231_vm0, %v1245_v21  ;;  %v1500_v30 = vld [vmem:[#allocation2 + $0x3d0] sm:$0xff] }
 0x1b7   : > { %v1265_v24 = vpop.permute.xlu0 %1264  ;;  %v1241_v25 = vpop.permute.xlu1 %1240 }
 0x1b8   : > { %v1267_v27 = vsel %vm329_vm5, %v1263_v22, %v1265_v24  ;;  %1273 = vst.msk [vmem:[#allocation2 + $0x418] sm:$0xff] %vm231_vm0, %v1265_v24  ;;  %v1246_v28 = vsel %vm308_vm4, %v1241_v25, %v1243_v19  ;;  %v1503_v31 = vld [vmem:[#allocation2 + $0x3e8] sm:$0xff]  ;;  %vm1306_vm4 = vcmask 990208  }
 0x1b9   : > { %v1587_v32 = vpack.c.bf16 %v1503_v31, %v1500_v30  ;;  %v1589_v33 = vpack.c.bf16 %v1267_v27, %v1247_v23 }
 0x1bb   : > { %v1261_v34 = vpop.permute.xlu0 %1260  ;;  %v1283_v35 = vpop.permute.xlu1 %1282  ;;  %1766 = vmatpush1.bf16.msra.mxu1 %v1587_v32  ;;  %1686 = vmatprep.subr.bf16.mxu0 %v1589_v33  ;;  %v1506_v37 = vld [vmem:[#allocation2 + $0x400] sm:$0xff] }
 0x1bc   : > { %v1266_v36 = vsel %vm329_vm5, %v1261_v34, %v1263_v22  ;;  %1767 = vmatprep.subr.bf16.mxu1 %v2024_v15  ;;  %vm1327_vm5 = vcmask 982016  }
 0x1bd   : > { %v1588_v38 = vpack.c.bf16 %v1266_v36, %v1246_v28 }
 0x1bf   : > { %v1285_v39 = vpop.permute.xlu0 %1284  ;;  %v1303_v41 = vpop.permute.xlu1 %1302  ;;  %v1509_v42 = vld [vmem:[#allocation2 + $0x418] sm:$0xff]  ;;  %1687 = vmatpush1.bf16.msra.mxu0 %v1588_v38 }
 0x1c0   : > { %v1287_v43 = vsel %vm350_vm6, %v1283_v35, %v1285_v39  ;;  %1293 = vst.msk [vmem:[#allocation2 + $0x430] sm:$0xff] %vm231_vm0, %v1285_v39  ;;  %v1590_v53 = vpack.c.bf16 %v1509_v42, %v1506_v37 }
 0x1c2   : > { %1768 = vmatpush1.bf16.msra.mxu1 %v1590_v53 }
 0x1c3   : > { %v1305_v44 = vpop.permute.xlu0 %1304  ;;  %v1281_v26 = vpop.permute.xlu1 %1280  ;;  %1769 = vmatprep.subr.bf16.mxu1 %v2024_v15 }
 0x1c4   : > { %v1308_v45 = vsel %vm1306_vm4, %v1303_v41, %v1305_v44  ;;  %1314 = vst.msk [vmem:[#allocation2 + $0x448] sm:$0xff] %vm231_vm0, %v1305_v44  ;;  %v1286_v46 = vsel %vm350_vm6, %v1281_v26, %v1283_v35  ;;  %vm1369_vm6 = vcmask 965632  }
 0x1c5   : > { %v1592_v4 = vpack.c.bf16 %v1308_v45, %v1287_v43 }
 0x1c7   : > { %v1301_v47 = vpop.permute.xlu0 %1300  ;;  %v1324_v48 = vpop.permute.xlu1 %1323  ;;  %1688 = vmatprep.subr.bf16.mxu0 %v1592_v4  ;;  %v1512_v49 = vld [vmem:[#allocation2 + $0x430] sm:$0xff] }
 0x1c8   : > { %v1307_v29 = vsel %vm1306_vm4, %v1301_v47, %v1303_v41 }
 0x1c9   : > { %v1591_v3 = vpack.c.bf16 %v1307_v29, %v1286_v46 }
 0x1cb   : > { %v1326_v50 = vpop.permute.xlu0 %1325  ;;  %v1345_v51 = vpop.permute.xlu1 %1344  ;;  %v1515_v52 = vld [vmem:[#allocation2 + $0x448] sm:$0xff]  ;;  %1689 = vmatpush1.bf16.msra.mxu0 %v1591_v3 }
 0x1cc   : > { %v1329_v10 = vsel %vm1327_vm5, %v1324_v48, %v1326_v50  ;;  %1335 = vst.msk [vmem:[#allocation2 + $0x460] sm:$0xff] %vm231_vm0, %v1326_v50  ;;  %v1593_v2 = vpack.c.bf16 %v1515_v52, %v1512_v49 }
 0x1ce   : > { %1770 = vmatpush1.bf16.msra.mxu1 %v1593_v2 }
 0x1cf   : > { %v1347_v54 = vpop.permute.xlu0 %1346  ;;  %v1322_v57 = vpop.permute.xlu1 %1321  ;;  %1771 = vmatprep.subr.bf16.mxu1 %v2024_v15 }
 0x1d0   : > { %v1350_v55 = vsel %vm1348_vm9, %v1345_v51, %v1347_v54  ;;  %1356 = vst.msk [vmem:[#allocation2 + $0x478] sm:$0xff] %vm231_vm0, %v1347_v54  ;;  %v1328_v56 = vsel %vm1327_vm5, %v1322_v57, %v1324_v48 }
 0x1d1   : > { %v1595_v58 = vpack.c.bf16 %v1350_v55, %v1329_v10 }
 0x1d3   : > { %v1343_v59 = vpop.permute.xlu0 %1342  ;;  %v1364_v60 = vpop.permute.xlu1 %1363  ;;  %1690 = vmatprep.subr.bf16.mxu0 %v1595_v58  ;;  %v1518_v62 = vld [vmem:[#allocation2 + $0x460] sm:$0xff] }
 0x1d4   : > { %v1349_v61 = vsel %vm1348_vm9, %v1343_v59, %v1345_v51 }
 0x1d5   : > { %v1594_v63 = vpack.c.bf16 %v1349_v61, %v1328_v56 }
 0x1d7   : > { %v1366_v5 = vpop.permute.xlu0 %1365  ;;  %v1368_v6 = vpop.permute.xlu1 %1367  ;;  %v1521_v7 = vld [vmem:[#allocation2 + $0x478] sm:$0xff]  ;;  %1691 = vmatpush1.bf16.msra.mxu0 %v1594_v63 }
 0x1d8   : > { %v1370_v8 = vsel %vm1369_vm6, %v1364_v60, %v1366_v5  ;;  %v1371_v0 = vsel %vm1369_vm6, %v1366_v5, %v1368_v6  ;;  %1377 = vst.msk [vmem:[#allocation2 + $0x490] sm:$0xff] %vm231_vm0, %v1368_v6  ;;  %v1596_v9 = vpack.c.bf16 %v1521_v7, %v1518_v62 }
 0x1d9   : > { %v1598_v11 = vpack.c.bf16 %v1371_v0, %v1371_v0  ;;  %v1597_v12 = vpack.c.bf16 %v1370_v8, %v1370_v8 }
 0x1da   : > { %1772 = vmatpush1.bf16.msra.mxu1 %v1596_v9 }
 0x1db   : > { %1773 = vmatprep.subr.bf16.mxu1 %v2024_v15  ;;  %1888 = vmatprep.subr.msk.bf16.mxu0 %vm1625_vm10, %v1598_v11  ;;  %v1627_v13 = vsel %vm1625_vm10, %v1597_v12, 0 }
 0x1dc   : > { %1693 = vmatpush1.bf16.msra.mxu0 %v1627_v13 }
 0x1df   : > { %v1524_v1 = vld [vmem:[#allocation2 + $0x490] sm:$0xff]  ;;  %1709 = vmatmul.mubr.bf16.vlgmr.msra.gmra.mrb[0].mxu0 %v1886_v14 }
 0x1e0   : > { %v1599_v16 = vpack.c.bf16 %v1524_v1, %v1524_v1 }
 0x1e2   : > { %v1633_v17 = vsel %vm1625_vm10, %v1599_v16, 0 }
 0x1e3   : > { %1774 = vmatpush1.bf16.msra.mxu1 %v1633_v17 }
 0x1e6   : > { %1790 = vmatmul.mubr.bf16.vlgmr.msra.gmra.mrb[4].mxu1 %v1886_v14 }
 0x1e8   : > { %v1804_v23 = vpop.permute.xlu1 %1803  ;;  %v1606_v15 = vpop.permute.xlu0 %1605 }
 0x1ec   : > { %v1813_v33 = vpop.permute.xlu1 %1812 }
 0x241   : > { %v1910_v18 = vpop.f32.mrb[0].mxu1 }
 0x242   : > { %v1911_v19 = vpop.f32.mrb[1].mxu1 }
 0x243   : > { %v1912_v20 = vadd.f32 %v1911_v19, %v1910_v18  ;;  %v1913_v21 = vpop.f32.mrb[2].mxu1 }
 0x244   : > { %v1914_v22 = vpop.f32.mrb[3].mxu1 }
 0x245   : > { %v1752_v35 = vadd.f32 %v1912_v20, %v1606_v15 }
 0x2b2   : > { %v1710_v24 = vpop.f32.mrb[0].mxu0 }
 0x2b3   : > { %v1916_v25 = vadd.f32 %v1710_v24, %v1606_v15  ;;  %v1712_v27 = vpop.f32.mrb[1].mxu0 }
 0x2b4   : > { %v1917_v28 = vadd.f32 %v1712_v27, %v1606_v15  ;;  %v1714_v40 = vpop.f32.mrb[2].mxu0 }
 0x2b5   : > { %v1797_v30 = vmax.f32 %v1916_v25, 0.0  ;;  %v1715_v31 = vpop.f32.mrb[3].mxu0 }
 0x2b6   : > { %v1798_v32 = vmax.f32 %v1917_v28, 0.0 }
 0x2b7   : > { %v1806_v34 = vmul.f32 %v1804_v23, %v1797_v30 }
 0x2b8   : > { %v1807_v36 = vmul.f32 %v1804_v23, %v1798_v32 }
 0x2b9   : > { %v1791_v37 = vpop.f32.mrb[4].mxu1  ;;  %v1815_v38 = vadd.f32 %v1813_v33, %v1806_v34 }
 0x2ba   : > { %v1792_v39 = vadd.f32 %v1791_v37, %v1752_v35  ;;  %v1793_v41 = vpop.f32.mrb[5].mxu1  ;;  %v1816_v42 = vadd.f32 %v1813_v33, %v1807_v36 }
 0x2bb   : > { %v1794_v43 = vpop.f32.mrb[6].mxu1  ;;  %1818 = vst [vmem:[%s224_s13] sm:$0xff] %v1815_v38 }
 0x2bc   : > { %v1799_v53 = vmax.f32 %v1792_v39, 0.0  ;;  %v1795_v44 = vpop.f32.mrb[7].mxu1  ;;  %1819 = vst [vmem:[%s224_s13 + $0x8] sm:$0xff] %v1816_v42 }
 0x2be   : > { %v1808_v26 = vmul.f32 %v1804_v23, %v1799_v53 }
 0x2c0   : > { %v1817_v45 = vadd.f32 %v1813_v33, %v1808_v26 }
 0x2c2   : > { %1820 = vst.msk [vmem:[%s224_s13 + $0x10] sm:$0xff] %vm231_vm0, %v1817_v45 }
 0x2c3 PF: > { %s15_s18 = sadd.s32 1, %s1989_s18  }
 0x2c4   : > { %p12_p4 = scmp.ge.s32.totalorder %s15_s18, 4  }
 0x2c6   :  { %14 = sbr.rel (!%p12_p4) target bundleno = 1 (0x1), region = 70 }

// kernel: audio_ae_forward.11
= control target key start
LH: loop header
LB: loop body
LE: loop exit
PB: predicated region body
PF: predicated region fallthrough
CT: control target
= control target key end

     0   :  { %s431_s12 = smov 0   ;;  %s477_s0 = inlined_call_operand.vmem [shape: f32[2,8,36], index: 0, kind: input, shape index: {}]   ;;  %s478_s1 = inlined_call_operand.vmem [shape: bf16[8,72], index: 1, kind: input, shape index: {}]   ;;  %s479_s2 = inlined_call_operand.vmem [shape: f32[8,1], index: 2, kind: input, shape index: {}]   ;;  %s480_s3 = inlined_call_operand.vmem [shape: f32[2,8,22], index: 3, kind: output, shape index: {}]  }
   0x1 LB: > { %s342_s13 = sadd.s32 4294967295, %s398_s12   ;;  %p346_p0 = scmp.ge.s32.totalorder %s398_s12, 1  ;;  %s398_s12 = sphi %s431_s12, %s13_s12  }
   0x2   : > { %p136_p1 = scmp.lt.s32.totalorder %s398_s12, 3 }
   0x4   : > { %p137_p2 = pnand %p346_p0, %p136_p1 }
   0x5   : > { %p158_p3 = scmp.lt.s32.totalorder (!%p137_p2), %s342_s13, 1  ;;  %v400_v0 = vmov (!%p137_p2), 0.0   ;;  %vm168_vm0 = vcmask (!%p137_p2), 179200   ;;  %s401_s18 = smov (!%p137_p2), 127   ;;  %vm409_vm1 = vmmov (!%p137_p2), 0   ;;  %v233_v2 = vld [vmem:[%s479_s2] sm:$0xff] (!%p137_p2) }
   0x6   : > { %140 = sbr.rel (%p137_p2) target bundleno = 378 (0x17a), region = 32  ;;  %358 = vmatprep.subr.bf16.mxu0 (!%p137_p2), %v400_v0  ;;  %s402_s19 = smov (!%p137_p2), 122   ;;  %368 = vmatprep.mubr.msk.bf16.mxu0 (!%p137_p2), %vm409_vm1, %v400_v0  ;;  %v410_v3 = vmov (!%p137_p2), 0   ;;  %vm243_vm2 = vcmask (!%p137_p2), 1043456   ;;  %v232_v27 = vld [vmem:[%s478_s1] sm:$0xf] (!%p137_p2) }
   0x7   : > { %s403_s20 = smov (!%p137_p2), 126   ;;  %s404_s21 = smov (!%p137_p2), 121   ;;  %391 = vset.pattern.permute.xlu0 (!%p137_p2), %v410_v3  ;;  %vm239_vm3 = vcmask (!%p137_p2), 588800  }
   0x8   : > { %s405_s22 = smov (!%p137_p2), 120   ;;  %s406_s23 = smov (!%p137_p2), 116  }
   0x9   : > { %s407_s24 = smov (!%p137_p2), 115   ;;  %s408_s25 = smov (!%p137_p2), 114  }
   0xd   : > { %s482_s13 = smov (!%p158_p3, %s342_s13), 1 }
   0xe   : > { %s347_s14 = sshll.u32 %s482_s13, 3 }
   0xf   : > { %s161_s17 = scalar_lea.vmem %s477_s0, %s347_s14  ;;  %s165_s5 = scalar_lea.vmem %s480_s3, %s347_s14 }
  0x10   : > { %v170_v1 = vld [vmem:[%s161_s17] sm:$0xff] }
  0x11   : > { %172 = vrot.lane.b32.xlu0 %v170_v1, %s401_s18  ;;  %184 = vrot.lane.b32.xlu1 %v170_v1, %s402_s19  ;;  %169 = vst.msk [vmem:[#allocation2] sm:$0xff] %vm168_vm0, %v170_v1 }
  0x15   : > { %178 = vrot.lane.b32.xlu0 %v170_v1, %s403_s20  ;;  %190 = vrot.lane.b32.xlu1 %v170_v1, %s404_s21 }
  0x18   : > { %v218_v8 = vld [vmem:[#allocation2] sm:$0xff] }
  0x19   : > { %196 = vrot.lane.b32.xlu0 %v170_v1, %s405_s22  ;;  %202 = vrot.lane.b32.xlu1 %v170_v1, %s406_s23 }
  0x1d   : > { %208 = vrot.lane.b32.xlu0 %v170_v1, %s407_s24  ;;  %214 = vrot.lane.b32.xlu1 %v170_v1, %s408_s25 }
  0x21   : > { %236 = vperm.xlu0 %391, %v233_v2  }
  0x83   : > { %v173_v4 = vpop.permute.xlu0 %172  ;;  %v185_v5 = vpop.permute.xlu1 %184 }
  0x84   : > { %175 = vst.msk [vmem:[#allocation2 + $0x8] sm:$0xff] %vm168_vm0, %v173_v4  ;;  %187 = vst.msk [vmem:[#allocation2 + $0x18] sm:$0xff] %vm168_vm0, %v185_v5 }
  0x87   : > { %v179_v6 = vpop.permute.xlu0 %178  ;;  %v191_v7 = vpop.permute.xlu1 %190 }
  0x88   : > { %181 = vst.msk [vmem:[#allocation2 + $0x10] sm:$0xff] %vm168_vm0, %v179_v6  ;;  %193 = vst.msk [vmem:[#allocation2 + $0x20] sm:$0xff] %vm168_vm0, %v191_v7 }
  0x8b   : > { %v197_v9 = vpop.permute.xlu0 %196  ;;  %v203_v10 = vpop.permute.xlu1 %202  ;;  %v219_v11 = vld [vmem:[#allocation2 + $0x8] sm:$0xff]  ;;  %v221_v13 = vld [vmem:[#allocation2 + $0x18] sm:$0xff] }
  0x8c   : > { %199 = vst.msk [vmem:[#allocation2 + $0x28] sm:$0xff] %vm168_vm0, %v197_v9  ;;  %205 = vst.msk [vmem:[#allocation2 + $0x30] sm:$0xff] %vm168_vm0, %v203_v10  ;;  %v227_v12 = vpack.c.bf16 %v219_v11, %v218_v8 }
  0x8e   : > { %359 = vmatpush3.bf16.msra.mxu0 %v227_v12 }
  0x8f   : > { %v209_v14 = vpop.permute.xlu0 %208  ;;  %360 = vmatprep.subr.bf16.mxu0 %v400_v0  ;;  %v215_v15 = vpop.permute.xlu1 %214  ;;  %v220_v16 = vld [vmem:[#allocation2 + $0x10] sm:$0xff]  ;;  %v222_v18 = vld [vmem:[#allocation2 + $0x20] sm:$0xff] }
  0x90   : > { %211 = vst.msk [vmem:[#allocation2 + $0x38] sm:$0xff] %vm168_vm0, %v209_v14  ;;  %217 = vst.msk [vmem:[#allocation2 + $0x40] sm:$0xff] %vm168_vm0, %v215_v15  ;;  %v228_v17 = vpack.c.bf16 %v221_v13, %v220_v16 }
  0x92   : > { %361 = vmatpush3.bf16.msra.mxu0 %v228_v17 }
  0x93   : > { %362 = vmatprep.subr.bf16.mxu0 %v400_v0  ;;  %v223_v19 = vld [vmem:[#allocation2 + $0x28] sm:$0xff]  ;;  %v224_v21 = vld [vmem:[#allocation2 + $0x30] sm:$0xff] }
  0x94   : > { %v229_v20 = vpack.c.bf16 %v223_v19, %v222_v18 }
  0x96   : > { %363 = vmatpush3.bf16.msra.mxu0 %v229_v20 }
  0x97   : > { %364 = vmatprep.subr.bf16.mxu0 %v400_v0  ;;  %v225_v22 = vld [vmem:[#allocation2 + $0x38] sm:$0xff]  ;;  %v226_v23 = vld [vmem:[#allocation2 + $0x40] sm:$0xff] }
  0x98   : > { %v230_v24 = vpack.c.bf16 %v225_v22, %v224_v21  ;;  %v231_v25 = vpack.c.bf16 %v226_v23, %v226_v23 }
  0x9a   : > { %365 = vmatpush3.bf16.msra.mxu0 %v230_v24  ;;  %v245_v26 = vsel %vm243_vm2, %v231_v25, 0 }
  0x9b   : > { %366 = vmatprep.subr.bf16.mxu0 %v400_v0 }
  0x9e   : > { %367 = vmatpush3.bf16.msra.mxu0 %v245_v26 }
  0xa0   : > { %v237_v28 = vpop.permute.xlu0 %236 }
  0xa1   : > { %369 = vmatmul.mubr.msk.bf16.vlgmr.msra.gmra.mrb[0].mxu0 %vm239_vm3, %v232_v27 }
 0x174   : > { %v281_v29 = vpop.f32.mrb[0].mxu0 }
 0x175   : > { %v282_v30 = vadd.f32 %v281_v29, %v237_v28  ;;  %v370_v31 = vpop.f32.mrb[1].mxu0 }
 0x176   : > { %v284_v32 = vpop.f32.mrb[2].mxu0 }
 0x177   : > { %v287_v33 = vmax.f32 %v282_v30, 0.0  ;;  %v371_v34 = vpop.f32.mrb[3].mxu0 }
 0x179   : > { %288 = vst.msk [vmem:[%s165_s5] sm:$0xff] %vm168_vm0, %v287_v33 }
 0x17a PF: > { %s13_s12 = sadd.s32 1, %s398_s12  }
 0x17b   : > { %p10_p4 = scmp.ge.s32.totalorder %s13_s12, 4  }
 0x17d   :  { %12 = sbr.rel (!%p10_p4) target bundleno = 1 (0x1), region = 62 }

// kernel: audio_ae_forward.12
= control target key start
LH: loop header
LB: loop body
LE: loop exit
PB: predicated region body
PF: predicated region fallthrough
CT: control target
= control target key end

     0   :  { %s424_s12 = smov 0   ;;  %s473_s0 = inlined_call_operand.vmem [shape: f32[2,8,25], index: 0, kind: input, shape index: {}]   ;;  %s474_s1 = inlined_call_operand.vmem [shape: bf16[32,32], index: 1, kind: input, shape index: {}]   ;;  %s475_s2 = inlined_call_operand.vmem [shape: f32[32,1], index: 2, kind: input, shape index: {}]   ;;  %s476_s3 = inlined_call_operand.vmem [shape: f32[2,32,19], index: 3, kind: output, shape index: {}]  }
   0x1 LB: > { %s349_s13 = sadd.s32 4294967295, %s398_s12   ;;  %p353_p0 = scmp.ge.s32.totalorder %s398_s12, 1  ;;  %s398_s12 = sphi %s424_s12, %s13_s12  }
   0x2   : > { %p136_p1 = scmp.lt.s32.totalorder %s398_s12, 3 }
   0x4   : > { %p137_p2 = pnand %p353_p0, %p136_p1 }
   0x5   : > { %p159_p3 = scmp.lt.s32.totalorder (!%p137_p2), %s349_s13, 1  ;;  %vm170_vm0 = vcmask (!%p137_p2), 154624   ;;  %s400_s18 = smov (!%p137_p2), 127   ;;  %v390_v1 = vld [vmem:[%s474_s1] sm:$0xff] (!%p137_p2)   ;;  %vm234_vm1 = vcmask (!%p137_p2), 261120   ;;  %v403_v3 = vmov (!%p137_p2), 0  }
   0x6   : > { %140 = sbr.rel (%p137_p2) target bundleno = 368 (0x170), region = 32  ;;  %s401_s19 = smov (!%p137_p2), 122   ;;  %372 = vmatprep.mubr.msk.bf16.mxu0 (!%p137_p2), %vm234_vm1, %v390_v1  ;;  %v200_v2 = vld [vmem:[%s475_s2] sm:$0xff] (!%p137_p2)  ;;  %388 = vset.pattern.permute.xlu1 (!%p137_p2), %v403_v3  ;;  %v201_v4 = vld [vmem:[%s475_s2 + $0x8] sm:$0xff] (!%p137_p2)  ;;  %v202_v5 = vld [vmem:[%s475_s2 + $0x10] sm:$0xff] (!%p137_p2) }
   0x7   : > { %s402_s22 = smov (!%p137_p2), 123   ;;  %389 = vset.pattern.permute.xlu0 (!%p137_p2), %v403_v3  ;;  %v203_v6 = vld [vmem:[%s475_s2 + $0x18] sm:$0xff] (!%p137_p2)  ;;  %v391_v16 = vld [vmem:[%s474_s1 + $0x8] sm:$0xff] (!%p137_p2)  }
   0xd   : > { %s478_s13 = smov (!%p159_p3, %s349_s13), 1 }
   0xe   : > { %s354_s14 = sshll.u32 %s478_s13, 3  ;;  %s363_s6 = sshll.u32 %s478_s13, 5 }
   0xf   : > { %s162_s17 = scalar_lea.vmem %s473_s0, %s354_s14  ;;  %s167_s9 = scalar_lea.vmem %s476_s3, %s363_s6 }
  0x10   : > { %v172_v0 = vld [vmem:[%s162_s17] sm:$0xff] }
  0x11   : > { %174 = vrot.lane.b32.xlu0 %v172_v0, %s400_s18  ;;  %171 = vst.msk [vmem:[#allocation2] sm:$0xff] %vm170_vm0, %v172_v0  ;;  %186 = vrot.lane.b32.xlu1 %v172_v0, %s401_s19 }
  0x15   : > { %180 = vrot.lane.b32.xlu0 %v172_v0, %s402_s22  ;;  %206 = vperm.xlu1 %388, %v200_v2  }
  0x18   : > { %v190_v10 = vld [vmem:[#allocation2] sm:$0xff] }
  0x19   : > { %211 = vperm.xlu0 %389, %v201_v4   ;;  %216 = vperm.xlu1 %388, %v202_v5  }
  0x1d   : > { %221 = vperm.xlu1 %388, %v203_v6  }
  0x83   : > { %v175_v7 = vpop.permute.xlu0 %174  ;;  %v187_v8 = vpop.permute.xlu1 %186 }
  0x84   : > { %177 = vst.msk [vmem:[#allocation2 + $0x8] sm:$0xff] %vm170_vm0, %v175_v7  ;;  %189 = vst.msk [vmem:[#allocation2 + $0x18] sm:$0xff] %vm170_vm0, %v187_v8 }
  0x87   : > { %v181_v9 = vpop.permute.xlu0 %180 }
  0x88   : > { %183 = vst.msk [vmem:[#allocation2 + $0x10] sm:$0xff] %vm170_vm0, %v181_v9 }
  0x8b   : > { %v191_v11 = vld [vmem:[#allocation2 + $0x8] sm:$0xff]  ;;  %v193_v13 = vld [vmem:[#allocation2 + $0x18] sm:$0xff] }
  0x8c   : > { %v194_v12 = vpack.c.bf16 %v191_v11, %v190_v10 }
  0x8e   : > { %368 = vmatprep.subr.bf16.mxu0 %v194_v12 }
  0x8f   : > { %369 = vmatpush3.bf16.msra.mxu0 %v194_v12  ;;  %v192_v14 = vld [vmem:[#allocation2 + $0x10] sm:$0xff] }
  0x90   : > { %v195_v15 = vpack.c.bf16 %v193_v13, %v192_v14 }
  0x92   : > { %370 = vmatprep.subr.bf16.mxu0 %v195_v15 }
  0x93   : > { %371 = vmatpush3.bf16.msra.mxu0 %v195_v15 }
  0x94   : > { %v207_v17 = vpop.permute.xlu1 %206 }
  0x96   : > { %373 = vmatmul.mubr.msk.bf16.vlgmr.msra.gmra.mrb[0].mxu0 %vm234_vm1, %v391_v16 }
  0x98   : > { %v217_v18 = vpop.permute.xlu1 %216  ;;  %v212_v22 = vpop.permute.xlu0 %211 }
  0x9c   : > { %v222_v23 = vpop.permute.xlu1 %221 }
 0x169   : > { %v374_v19 = vpop.f32.mrb[0].mxu0 }
 0x16a   : > { %v284_v20 = vadd.f32 %v374_v19, %v217_v18  ;;  %v275_v21 = vpop.f32.mrb[1].mxu0 }
 0x16b   : > { %v276_v24 = vadd.f32 %v275_v21, %v207_v17  ;;  %v375_v25 = vpop.f32.mrb[2].mxu0 }
 0x16c   : > { %292 = vst.msk [vmem:[%s167_s9 + $0x10] sm:$0xff] %vm170_vm0, %v284_v20  ;;  %v287_v26 = vadd.f32 %v375_v25, %v222_v23  ;;  %v278_v27 = vpop.f32.mrb[3].mxu0 }
 0x16d   : > { %290 = vst.msk [vmem:[%s167_s9] sm:$0xff] %vm170_vm0, %v276_v24  ;;  %v279_v28 = vadd.f32 %v278_v27, %v212_v22 }
 0x16e   : > { %293 = vst.msk [vmem:[%s167_s9 + $0x18] sm:$0xff] %vm170_vm0, %v287_v26 }
 0x16f   : > { %291 = vst.msk [vmem:[%s167_s9 + $0x8] sm:$0xff] %vm170_vm0, %v279_v28 }
 0x170 PF: > { %s13_s12 = sadd.s32 1, %s398_s12  }
 0x171   : > { %p10_p4 = scmp.ge.s32.totalorder %s13_s12, 4  }
 0x173   :  { %12 = sbr.rel (!%p10_p4) target bundleno = 1 (0x1), region = 62 }

// kernel: audio_ae_forward.13
= control target key start
LH: loop header
LB: loop body
LE: loop exit
PB: predicated region body
PF: predicated region fallthrough
CT: control target
= control target key end

     0   :  { %s431_s12 = smov 0   ;;  %s477_s0 = inlined_call_operand.vmem [shape: f32[2,8,100], index: 0, kind: input, shape index: {}]   ;;  %s478_s1 = inlined_call_operand.vmem [shape: bf16[8,72], index: 1, kind: input, shape index: {}]   ;;  %s479_s2 = inlined_call_operand.vmem [shape: f32[8,1], index: 2, kind: input, shape index: {}]   ;;  %s480_s3 = inlined_call_operand.vmem [shape: f32[2,8,78], index: 3, kind: output, shape index: {}]  }
   0x1 LB: > { %s342_s13 = sadd.s32 4294967295, %s398_s12   ;;  %p346_p0 = scmp.ge.s32.totalorder %s398_s12, 1  ;;  %s398_s12 = sphi %s431_s12, %s13_s12  }
   0x2   : > { %p136_p1 = scmp.lt.s32.totalorder %s398_s12, 3 }
   0x4   : > { %p137_p2 = pnand %p346_p0, %p136_p1 }
   0x5   : > { %p158_p3 = scmp.lt.s32.totalorder (!%p137_p2), %s342_s13, 1  ;;  %v400_v0 = vmov (!%p137_p2), 0.0   ;;  %vm168_vm0 = vcmask (!%p137_p2), 637952   ;;  %s401_s18 = smov (!%p137_p2), 127   ;;  %vm409_vm1 = vmmov (!%p137_p2), 0   ;;  %v233_v2 = vld [vmem:[%s479_s2] sm:$0xff] (!%p137_p2) }
   0x6   : > { %140 = sbr.rel (%p137_p2) target bundleno = 378 (0x17a), region = 32  ;;  %358 = vmatprep.subr.bf16.mxu0 (!%p137_p2), %v400_v0  ;;  %s402_s19 = smov (!%p137_p2), 118   ;;  %368 = vmatprep.mubr.msk.bf16.mxu0 (!%p137_p2), %vm409_vm1, %v400_v0  ;;  %v410_v3 = vmov (!%p137_p2), 0   ;;  %vm243_vm2 = vcmask (!%p137_p2), 1043456   ;;  %v232_v27 = vld [vmem:[%s478_s1] sm:$0xf] (!%p137_p2) }
   0x7   : > { %s403_s20 = smov (!%p137_p2), 126   ;;  %s404_s21 = smov (!%p137_p2), 117   ;;  %391 = vset.pattern.permute.xlu0 (!%p137_p2), %v410_v3  ;;  %vm239_vm3 = vcmask (!%p137_p2), 588800  }
   0x8   : > { %s405_s22 = smov (!%p137_p2), 116   ;;  %s406_s23 = smov (!%p137_p2), 108  }
   0x9   : > { %s407_s24 = smov (!%p137_p2), 107   ;;  %s408_s25 = smov (!%p137_p2), 106  }
   0xd   : > { %s482_s13 = smov (!%p158_p3, %s342_s13), 1 }
   0xe   : > { %s347_s14 = sshll.u32 %s482_s13, 3 }
   0xf   : > { %s161_s17 = scalar_lea.vmem %s477_s0, %s347_s14  ;;  %s165_s5 = scalar_lea.vmem %s480_s3, %s347_s14 }
  0x10   : > { %v170_v1 = vld [vmem:[%s161_s17] sm:$0xff] }
  0x11   : > { %172 = vrot.lane.b32.xlu0 %v170_v1, %s401_s18  ;;  %184 = vrot.lane.b32.xlu1 %v170_v1, %s402_s19  ;;  %169 = vst.msk [vmem:[#allocation2] sm:$0xff] %vm168_vm0, %v170_v1 }
  0x15   : > { %178 = vrot.lane.b32.xlu0 %v170_v1, %s403_s20  ;;  %190 = vrot.lane.b32.xlu1 %v170_v1, %s404_s21 }
  0x18   : > { %v218_v8 = vld [vmem:[#allocation2] sm:$0xff] }
  0x19   : > { %196 = vrot.lane.b32.xlu0 %v170_v1, %s405_s22  ;;  %202 = vrot.lane.b32.xlu1 %v170_v1, %s406_s23 }
  0x1d   : > { %208 = vrot.lane.b32.xlu0 %v170_v1, %s407_s24  ;;  %214 = vrot.lane.b32.xlu1 %v170_v1, %s408_s25 }
  0x21   : > { %236 = vperm.xlu0 %391, %v233_v2  }
  0x83   : > { %v173_v4 = vpop.permute.xlu0 %172  ;;  %v185_v5 = vpop.permute.xlu1 %184 }
  0x84   : > { %175 = vst.msk [vmem:[#allocation2 + $0x8] sm:$0xff] %vm168_vm0, %v173_v4  ;;  %187 = vst.msk [vmem:[#allocation2 + $0x18] sm:$0xff] %vm168_vm0, %v185_v5 }
  0x87   : > { %v179_v6 = vpop.permute.xlu0 %178  ;;  %v191_v7 = vpop.permute.xlu1 %190 }
  0x88   : > { %181 = vst.msk [vmem:[#allocation2 + $0x10] sm:$0xff] %vm168_vm0, %v179_v6  ;;  %193 = vst.msk [vmem:[#allocation2 + $0x20] sm:$0xff] %vm168_vm0, %v191_v7 }
  0x8b   : > { %v197_v9 = vpop.permute.xlu0 %196  ;;  %v203_v10 = vpop.permute.xlu1 %202  ;;  %v219_v11 = vld [vmem:[#allocation2 + $0x8] sm:$0xff]  ;;  %v221_v13 = vld [vmem:[#allocation2 + $0x18] sm:$0xff] }
  0x8c   : > { %199 = vst.msk [vmem:[#allocation2 + $0x28] sm:$0xff] %vm168_vm0, %v197_v9  ;;  %205 = vst.msk [vmem:[#allocation2 + $0x30] sm:$0xff] %vm168_vm0, %v203_v10  ;;  %v227_v12 = vpack.c.bf16 %v219_v11, %v218_v8 }
  0x8e   : > { %359 = vmatpush3.bf16.msra.mxu0 %v227_v12 }
  0x8f   : > { %v209_v14 = vpop.permute.xlu0 %208  ;;  %360 = vmatprep.subr.bf16.mxu0 %v400_v0  ;;  %v215_v15 = vpop.permute.xlu1 %214  ;;  %v220_v16 = vld [vmem:[#allocation2 + $0x10] sm:$0xff]  ;;  %v222_v18 = vld [vmem:[#allocation2 + $0x20] sm:$0xff] }
  0x90   : > { %211 = vst.msk [vmem:[#allocation2 + $0x38] sm:$0xff] %vm168_vm0, %v209_v14  ;;  %217 = vst.msk [vmem:[#allocation2 + $0x40] sm:$0xff] %vm168_vm0, %v215_v15  ;;  %v228_v17 = vpack.c.bf16 %v221_v13, %v220_v16 }
  0x92   : > { %361 = vmatpush3.bf16.msra.mxu0 %v228_v17 }
  0x93   : > { %362 = vmatprep.subr.bf16.mxu0 %v400_v0  ;;  %v223_v19 = vld [vmem:[#allocation2 + $0x28] sm:$0xff]  ;;  %v224_v21 = vld [vmem:[#allocation2 + $0x30] sm:$0xff] }
  0x94   : > { %v229_v20 = vpack.c.bf16 %v223_v19, %v222_v18 }
  0x96   : > { %363 = vmatpush3.bf16.msra.mxu0 %v229_v20 }
  0x97   : > { %364 = vmatprep.subr.bf16.mxu0 %v400_v0  ;;  %v225_v22 = vld [vmem:[#allocation2 + $0x38] sm:$0xff]  ;;  %v226_v23 = vld [vmem:[#allocation2 + $0x40] sm:$0xff] }
  0x98   : > { %v230_v24 = vpack.c.bf16 %v225_v22, %v224_v21  ;;  %v231_v25 = vpack.c.bf16 %v226_v23, %v226_v23 }
  0x9a   : > { %365 = vmatpush3.bf16.msra.mxu0 %v230_v24  ;;  %v245_v26 = vsel %vm243_vm2, %v231_v25, 0 }
  0x9b   : > { %366 = vmatprep.subr.bf16.mxu0 %v400_v0 }
  0x9e   : > { %367 = vmatpush3.bf16.msra.mxu0 %v245_v26 }
  0xa0   : > { %v237_v28 = vpop.permute.xlu0 %236 }
  0xa1   : > { %369 = vmatmul.mubr.msk.bf16.vlgmr.msra.gmra.mrb[0].mxu0 %vm239_vm3, %v232_v27 }
 0x174   : > { %v281_v29 = vpop.f32.mrb[0].mxu0 }
 0x175   : > { %v282_v30 = vadd.f32 %v281_v29, %v237_v28  ;;  %v370_v31 = vpop.f32.mrb[1].mxu0 }
 0x176   : > { %v284_v32 = vpop.f32.mrb[2].mxu0 }
 0x177   : > { %v287_v33 = vmax.f32 %v282_v30, 0.0  ;;  %v371_v34 = vpop.f32.mrb[3].mxu0 }
 0x179   : > { %288 = vst.msk [vmem:[%s165_s5] sm:$0xff] %vm168_vm0, %v287_v33 }
 0x17a PF: > { %s13_s12 = sadd.s32 1, %s398_s12  }
 0x17b   : > { %p10_p4 = scmp.ge.s32.totalorder %s13_s12, 4  }
 0x17d   :  { %12 = sbr.rel (!%p10_p4) target bundleno = 1 (0x1), region = 62 }

// kernel: audio_ae_forward.14
= control target key start
LH: loop header
LB: loop body
LE: loop exit
PB: predicated region body
PF: predicated region fallthrough
CT: control target
= control target key end

     0   :  { %s424_s12 = smov 0   ;;  %s473_s0 = inlined_call_operand.vmem [shape: f32[2,8,81], index: 0, kind: input, shape index: {}]   ;;  %s474_s1 = inlined_call_operand.vmem [shape: bf16[32,32], index: 1, kind: input, shape index: {}]   ;;  %s475_s2 = inlined_call_operand.vmem [shape: f32[32,1], index: 2, kind: input, shape index: {}]   ;;  %s476_s3 = inlined_call_operand.vmem [shape: f32[2,32,71], index: 3, kind: output, shape index: {}]  }
   0x1 LB: > { %s349_s13 = sadd.s32 4294967295, %s398_s12   ;;  %p353_p0 = scmp.ge.s32.totalorder %s398_s12, 1  ;;  %s398_s12 = sphi %s424_s12, %s13_s12  }
   0x2   : > { %p136_p1 = scmp.lt.s32.totalorder %s398_s12, 3 }
   0x4   : > { %p137_p2 = pnand %p353_p0, %p136_p1 }
   0x5   : > { %p159_p3 = scmp.lt.s32.totalorder (!%p137_p2), %s349_s13, 1  ;;  %vm170_vm0 = vcmask (!%p137_p2), 580608   ;;  %s400_s18 = smov (!%p137_p2), 127   ;;  %v390_v1 = vld [vmem:[%s474_s1] sm:$0xff] (!%p137_p2)   ;;  %vm234_vm1 = vcmask (!%p137_p2), 261120   ;;  %v403_v3 = vmov (!%p137_p2), 0  }
   0x6   : > { %140 = sbr.rel (%p137_p2) target bundleno = 368 (0x170), region = 32  ;;  %s401_s19 = smov (!%p137_p2), 118   ;;  %372 = vmatprep.mubr.msk.bf16.mxu0 (!%p137_p2), %vm234_vm1, %v390_v1  ;;  %v200_v2 = vld [vmem:[%s475_s2] sm:$0xff] (!%p137_p2)  ;;  %388 = vset.pattern.permute.xlu1 (!%p137_p2), %v403_v3  ;;  %v201_v4 = vld [vmem:[%s475_s2 + $0x8] sm:$0xff] (!%p137_p2)  ;;  %v202_v5 = vld [vmem:[%s475_s2 + $0x10] sm:$0xff] (!%p137_p2) }
   0x7   : > { %s402_s22 = smov (!%p137_p2), 119   ;;  %389 = vset.pattern.permute.xlu0 (!%p137_p2), %v403_v3  ;;  %v203_v6 = vld [vmem:[%s475_s2 + $0x18] sm:$0xff] (!%p137_p2)  ;;  %v391_v16 = vld [vmem:[%s474_s1 + $0x8] sm:$0xff] (!%p137_p2)  }
   0xd   : > { %s478_s13 = smov (!%p159_p3, %s349_s13), 1 }
   0xe   : > { %s354_s14 = sshll.u32 %s478_s13, 3  ;;  %s363_s6 = sshll.u32 %s478_s13, 5 }
   0xf   : > { %s162_s17 = scalar_lea.vmem %s473_s0, %s354_s14  ;;  %s167_s9 = scalar_lea.vmem %s476_s3, %s363_s6 }
  0x10   : > { %v172_v0 = vld [vmem:[%s162_s17] sm:$0xff] }
  0x11   : > { %174 = vrot.lane.b32.xlu0 %v172_v0, %s400_s18  ;;  %171 = vst.msk [vmem:[#allocation2] sm:$0xff] %vm170_vm0, %v172_v0  ;;  %186 = vrot.lane.b32.xlu1 %v172_v0, %s401_s19 }
  0x15   : > { %180 = vrot.lane.b32.xlu0 %v172_v0, %s402_s22  ;;  %206 = vperm.xlu1 %388, %v200_v2  }
  0x18   : > { %v190_v10 = vld [vmem:[#allocation2] sm:$0xff] }
  0x19   : > { %211 = vperm.xlu0 %389, %v201_v4   ;;  %216 = vperm.xlu1 %388, %v202_v5  }
  0x1d   : > { %221 = vperm.xlu1 %388, %v203_v6  }
  0x83   : > { %v175_v7 = vpop.permute.xlu0 %174  ;;  %v187_v8 = vpop.permute.xlu1 %186 }
  0x84   : > { %177 = vst.msk [vmem:[#allocation2 + $0x8] sm:$0xff] %vm170_vm0, %v175_v7  ;;  %189 = vst.msk [vmem:[#allocation2 + $0x18] sm:$0xff] %vm170_vm0, %v187_v8 }
  0x87   : > { %v181_v9 = vpop.permute.xlu0 %180 }
  0x88   : > { %183 = vst.msk [vmem:[#allocation2 + $0x10] sm:$0xff] %vm170_vm0, %v181_v9 }
  0x8b   : > { %v191_v11 = vld [vmem:[#allocation2 + $0x8] sm:$0xff]  ;;  %v193_v13 = vld [vmem:[#allocation2 + $0x18] sm:$0xff] }
  0x8c   : > { %v194_v12 = vpack.c.bf16 %v191_v11, %v190_v10 }
  0x8e   : > { %368 = vmatprep.subr.bf16.mxu0 %v194_v12 }
  0x8f   : > { %369 = vmatpush3.bf16.msra.mxu0 %v194_v12  ;;  %v192_v14 = vld [vmem:[#allocation2 + $0x10] sm:$0xff] }
  0x90   : > { %v195_v15 = vpack.c.bf16 %v193_v13, %v192_v14 }
  0x92   : > { %370 = vmatprep.subr.bf16.mxu0 %v195_v15 }
  0x93   : > { %371 = vmatpush3.bf16.msra.mxu0 %v195_v15 }
  0x94   : > { %v207_v17 = vpop.permute.xlu1 %206 }
  0x96   : > { %373 = vmatmul.mubr.msk.bf16.vlgmr.msra.gmra.mrb[0].mxu0 %vm234_vm1, %v391_v16 }
  0x98   : > { %v217_v18 = vpop.permute.xlu1 %216  ;;  %v212_v22 = vpop.permute.xlu0 %211 }
  0x9c   : > { %v222_v23 = vpop.permute.xlu1 %221 }
 0x169   : > { %v374_v19 = vpop.f32.mrb[0].mxu0 }
 0x16a   : > { %v284_v20 = vadd.f32 %v374_v19, %v217_v18  ;;  %v275_v21 = vpop.f32.mrb[1].mxu0 }
 0x16b   : > { %v276_v24 = vadd.f32 %v275_v21, %v207_v17  ;;  %v375_v25 = vpop.f32.mrb[2].mxu0 }
 0x16c   : > { %292 = vst.msk [vmem:[%s167_s9 + $0x10] sm:$0xff] %vm170_vm0, %v284_v20  ;;  %v287_v26 = vadd.f32 %v375_v25, %v222_v23  ;;  %v278_v27 = vpop.f32.mrb[3].mxu0 }
 0x16d   : > { %290 = vst.msk [vmem:[%s167_s9] sm:$0xff] %vm170_vm0, %v276_v24  ;;  %v279_v28 = vadd.f32 %v278_v27, %v212_v22 }
 0x16e   : > { %293 = vst.msk [vmem:[%s167_s9 + $0x18] sm:$0xff] %vm170_vm0, %v287_v26 }
 0x16f   : > { %291 = vst.msk [vmem:[%s167_s9 + $0x8] sm:$0xff] %vm170_vm0, %v279_v28 }
 0x170 PF: > { %s13_s12 = sadd.s32 1, %s398_s12  }
 0x171   : > { %p10_p4 = scmp.ge.s32.totalorder %s13_s12, 4  }
 0x173   :  { %12 = sbr.rel (!%p10_p4) target bundleno = 1 (0x1), region = 62 }

// kernel: audio_ae_forward.15
= control target key start
LH: loop header
LB: loop body
LE: loop exit
PB: predicated region body
PF: predicated region fallthrough
CT: control target
= control target key end

     0   :  { %s370_s12 = smov 0   ;;  %s400_s0 = inlined_call_operand.vmem [shape: f32[2,8,256], index: 0, kind: input, shape index: {}]   ;;  %s401_s1 = inlined_call_operand.vmem [shape: bf16[8,8], index: 1, kind: input, shape index: {}]   ;;  %s402_s2 = inlined_call_operand.vmem [shape: f32[8,1], index: 2, kind: input, shape index: {}]   ;;  %s403_s3 = inlined_call_operand.vmem [shape: f32[2,8,256], index: 3, kind: output, shape index: {}]  }
   0x1 LB: > { %s308_s13 = sadd.s32 4294967295, %s347_s12   ;;  %p312_p0 = scmp.ge.s32.totalorder %s347_s12, 1  ;;  %s347_s12 = sphi %s370_s12, %s13_s12  }
   0x2   : > { %p137_p1 = scmp.lt.s32.totalorder %s347_s12, 3 }
   0x4   : > { %p138_p2 = pnand %p312_p0, %p137_p1 }
   0x5   : > { %p161_p3 = scmp.lt.s32.totalorder (!%p138_p2), %s308_s13, 1  ;;  %v349_v0 = vmov (!%p138_p2), 0   ;;  %v181_v1 = vld [vmem:[%s402_s2] sm:$0xff] (!%p138_p2)  ;;  %vm191_vm0 = vcmask (!%p138_p2), 1043456   ;;  %vm187_vm1 = vcmask (!%p138_p2), 64512  }
   0x6   : > { %141 = sbr.rel (%p138_p2) target bundleno = 267 (0x10b), region = 32  ;;  %230 = vmatprep.mubr.bf16.mxu0 (!%p138_p2), %v349_v0  ;;  %332 = vset.pattern.permute.xlu0 (!%p138_p2), %v349_v0  ;;  %v180_v7 = vld [vmem:[%s401_s1] sm:$0xf] (!%p138_p2) }
   0x7   : > { %184 = vperm.xlu0 (!%p138_p2), %332, %v181_v1  }
   0xd   : > { %s405_s13 = smov (!%p161_p3, %s308_s13), 1 }
   0xe   : > { %s321_s16 = sshll.u32 %s405_s13, 4 }
   0xf   : > { %s165_s19 = scalar_lea.vmem %s400_s0, %s321_s16  ;;  %s170_s24 = scalar_lea.vmem %s403_s3, %s321_s16 }
  0x10   : > { %v173_v2 = vld [vmem:[%s165_s19 + $0x8] sm:$0xff]  ;;  %v172_v3 = vld [vmem:[%s165_s19] sm:$0xff] }
  0x11   : > { %v179_v4 = vpack.c.bf16 %v173_v2, %v173_v2  ;;  %v178_v5 = vpack.c.bf16 %v172_v3, %v172_v3 }
  0x13   : > { %317 = vmatprep.subr.msk.bf16.mxu0 %vm191_vm0, %v179_v4  ;;  %v193_v6 = vsel %vm191_vm0, %v178_v5, 0 }
  0x14   : > { %199 = vmatpush1.bf16.msra.mxu0 %v193_v6 }
  0x17   : > { %318 = vmatmul.mubr.msk.bf16.vlgmr.msra.gmra.mrb[0].mxu0 %vm187_vm1, %v180_v7 }
  0x86   : > { %v185_v8 = vpop.permute.xlu0 %184 }
  0xea   : > { %v232_v9 = vpop.f32.mrb[0].mxu0 }
  0xeb   : > { %v233_v10 = vadd.f32 %v232_v9, %v185_v8  ;;  %v234_v11 = vpop.f32.mrb[1].mxu0 }
  0xec   : > { %v235_v12 = vadd.f32 %v234_v11, %v185_v8  ;;  %v236_v13 = vpop.f32.mrb[2].mxu0 }
  0xed   : > { %v239_v14 = vsub.f32 0.0, %v233_v10  ;;  %v237_v15 = vpop.f32.mrb[3].mxu0 }
  0xee   : > { %v240_v16 = vsub.f32 0.0, %v235_v12 }
  0xef   : > { %v241_v17 = vmul.f32 1.442695, %v239_v14 }
  0xf0   : > { %v243_v18 = vmul.f32 1.442695, %v240_v16 }
  0xf1   : > { %333 = vpow2.f32 %v241_v17 }
  0xf2   : > { %335 = vpow2.f32 %v243_v18 }
  0xfb   : > { %v334_v19 = vpop.eup %333 }
  0xfc   : > { %v336_v20 = vpop.eup %335  ;;  %v245_v21 = vadd.f32 1.0, %v334_v19 }
  0xfd   : > { %v246_v22 = vadd.f32 1.0, %v336_v20 }
  0xfe   : > { %337 = vrcp.f32 %v245_v21 }
  0xff   : > { %339 = vrcp.f32 %v246_v22 }
 0x108   : > { %v338_v23 = vpop.eup %337 }
 0x109   : > { %v340_v24 = vpop.eup %339  ;;  %251 = vst [vmem:[%s170_s24] sm:$0xff] %v338_v23 }
 0x10a   : > { %252 = vst [vmem:[%s170_s24 + $0x8] sm:$0xff] %v340_v24 }
 0x10b PF: > { %s13_s12 = sadd.s32 1, %s347_s12  }
 0x10c   : > { %p10_p4 = scmp.ge.s32.totalorder %s13_s12, 4  }
 0x10e   :  { %12 = sbr.rel (!%p10_p4) target bundleno = 1 (0x1), region = 62 }

</bundles_post_ra>
